<compile_context>
chip_gen: v5e
topology: v5e:2x2
jax: 0.10.0
libtpu: 0.0.40
codegen_flags: <defaults>
</compile_context>

<pallas_src>
import functools

import jax
import jax.numpy as jnp
from jax import lax
from jax.experimental import pallas as pl
from jax.experimental.pallas import tpu as pltpu

EPS = 1e-5           # torch.nn.functional.layer_norm default
L2_EPS = 1e-12       # torch.nn.functional.normalize default
ATTN_SCALE = 8.0     # Attention(scale=8) default
VMEM_LIMIT = 48 * 1024 * 1024   # safe scoped-VMEM budget on v5e/v6e/v7x
MAX_TILE_ROWS = 256
VMEM_BLOCK_BUDGET = 32 * 1024 * 1024


# ---------------------------------------------------------------------------
# helpers
# ---------------------------------------------------------------------------
def _round_up(n, m):
    return ((n + m - 1) // m) * m


def _pick_tile_rows(rows, per_row_bytes, weight_bytes):
    """Largest row tile (multiple of 8, <= MAX_TILE_ROWS) whose double-buffered
    activation blocks + resident weight blocks stay inside the VMEM budget."""
    t = min(MAX_TILE_ROWS, _round_up(max(rows, 1), 8))
    while t > 8 and 2 * (weight_bytes + t * per_row_bytes) > VMEM_BLOCK_BUDGET:
        t = max(8, _round_up(t // 2, 8))
    return t


def _layer_norm_f32(x, gamma):
    # Single-pass statistics: one sum + one sum-of-squares reduction per row
    # (halves XLU reduction traffic vs two jnp.mean calls).
    d = x.shape[-1]
    s = jnp.sum(x, axis=-1, keepdims=True)
    ss = jnp.sum(x * x, axis=-1, keepdims=True)
    mean = s / d
    var = jnp.maximum(ss / d - mean * mean, 0.0)  # clamp: E[x^2]-E[x]^2 can dip < 0
    return (x - mean) * lax.rsqrt(var + EPS) * gamma


def _erf_f32(x):
    # Abramowitz & Stegun 7.1.26 (|err| <= 1.5e-7): avoids depending on an erf
    # primitive lowering inside the kernel while matching exact-GELU semantics.
    a1, a2, a3, a4, a5 = (0.254829592, -0.284496736, 1.421413741,
                          -1.453152027, 1.061405429)
    p = 0.3275911
    ax = jnp.abs(x)
    t = 1.0 / (1.0 + p * ax)
    poly = ((((a5 * t + a4) * t + a3) * t + a2) * t + a1) * t
    y = 1.0 - poly * jnp.exp(-ax * ax)
    return jnp.where(x < 0.0, -y, y)


def _gelu_exact_f32(x):
    # matches torch.nn.functional.gelu(approximate='none') to ~1e-7
    return 0.5 * x * (1.0 + _erf_f32(x * 0.7071067811865476))


def _compiler_params():
    return pltpu.CompilerParams(
        dimension_semantics=("parallel",),
        vmem_limit_bytes=VMEM_LIMIT,
    )


# ---------------------------------------------------------------------------
# Kernel 1: fused LayerNorm + Q/K/V projections
# ---------------------------------------------------------------------------
def _ln_qkv_kernel(x_ref, g_ref, wq_ref, wk_ref, wv_ref, q_ref, k_ref, v_ref):
    x = x_ref[...].astype(jnp.float32)
    xn = _layer_norm_f32(x, g_ref[...].astype(jnp.float32))
    q_ref[...] = jnp.dot(xn, wq_ref[...].astype(jnp.float32),
                         preferred_element_type=jnp.float32).astype(q_ref.dtype)
    k_ref[...] = jnp.dot(xn, wk_ref[...].astype(jnp.float32),
                         preferred_element_type=jnp.float32).astype(k_ref.dtype)
    v_ref[...] = jnp.dot(xn, wv_ref[...].astype(jnp.float32),
                         preferred_element_type=jnp.float32).astype(v_ref.dtype)


def _ln_qkv(x2, gamma, w_q, w_k, w_v):
    R, D = x2.shape
    I = w_q.shape[1]
    tile = _pick_tile_rows(R, per_row_bytes=(2 * D + 3 * I) * 4,
                           weight_bytes=(3 * D * I + D) * 4)
    grid = (pl.cdiv(R, tile),)
    return pl.pallas_call(
        _ln_qkv_kernel,
        out_shape=(
            jax.ShapeDtypeStruct((R, I), x2.dtype),
            jax.ShapeDtypeStruct((R, I), x2.dtype),
            jax.ShapeDtypeStruct((R, I), x2.dtype),
        ),
        grid_spec=pltpu.PrefetchScalarGridSpec(
            num_scalar_prefetch=0,
            grid=grid,
            in_specs=[
                pl.BlockSpec((tile, D), lambda i: (i, 0)),
                pl.BlockSpec((1, D), lambda i: (0, 0)),
                pl.BlockSpec((D, I), lambda i: (0, 0)),
                pl.BlockSpec((D, I), lambda i: (0, 0)),
                pl.BlockSpec((D, I), lambda i: (0, 0)),
            ],
            out_specs=(
                pl.BlockSpec((tile, I), lambda i: (i, 0)),
                pl.BlockSpec((tile, I), lambda i: (i, 0)),
                pl.BlockSpec((tile, I), lambda i: (i, 0)),
            ),
        ),
        compiler_params=_compiler_params(),
    )(x2, gamma.reshape(1, D), w_q, w_k, w_v)


# ---------------------------------------------------------------------------
# Kernel 2: per-(batch*head) attention core
# ---------------------------------------------------------------------------
def _attn_kernel(q_ref, k_ref, v_ref, qs_ref, ks_ref, o_ref, *, scale):
    q = q_ref[0].astype(jnp.float32)   # (N, Dh)
    k = k_ref[0].astype(jnp.float32)
    v = v_ref[0].astype(jnp.float32)
    # l2norm over head dim (matches F.normalize), then learned per-dim scales
    q = q * lax.rsqrt(jnp.sum(q * q, axis=-1, keepdims=True) + L2_EPS)
    k = k * lax.rsqrt(jnp.sum(k * k, axis=-1, keepdims=True) + L2_EPS)
    q = q * qs_ref[...].astype(jnp.float32)
    k = k * ks_ref[...].astype(jnp.float32)
    sim = jnp.dot(q, k.T, preferred_element_type=jnp.float32) * scale
    sim = sim - jnp.max(sim, axis=-1, keepdims=True)
    p = jnp.exp(sim)
    p = p / jnp.sum(p, axis=-1, keepdims=True)
    o_ref[0] = jnp.dot(p, v, preferred_element_type=jnp.float32).astype(o_ref.dtype)
    # TODO(synk): add rel_pos_bias / key-padding mask / causal paths (Transformer
    # instantiates Attention with causal=False and passes None for both by default).
    # TODO(synk): switch to a flash-style kv-tiled kernel for long sequences.


def _attention_core(q, k, v, q_scale, k_scale):
    BH, N, Dh = q.shape
    kernel = functools.partial(_attn_kernel, scale=ATTN_SCALE)
    return pl.pallas_call(
        kernel,
        out_shape=jax.ShapeDtypeStruct((BH, N, Dh), q.dtype),
        grid_spec=pltpu.PrefetchScalarGridSpec(
            num_scalar_prefetch=0,
            grid=(BH,),
            in_specs=[
                pl.BlockSpec((1, N, Dh), lambda i: (i, 0, 0)),
                pl.BlockSpec((1, N, Dh), lambda i: (i, 0, 0)),
                pl.BlockSpec((1, N, Dh), lambda i: (i, 0, 0)),
                pl.BlockSpec((1, Dh), lambda i: (0, 0)),
                pl.BlockSpec((1, Dh), lambda i: (0, 0)),
            ],
            out_specs=pl.BlockSpec((1, N, Dh), lambda i: (i, 0, 0)),
        ),
        compiler_params=_compiler_params(),
    )(q, k, v, q_scale.reshape(1, Dh), k_scale.reshape(1, Dh))


# ---------------------------------------------------------------------------
# Kernel 3: output projection + residual add
# ---------------------------------------------------------------------------
def _proj_res_kernel(a_ref, w_ref, r_ref, o_ref):
    y = jnp.dot(a_ref[...].astype(jnp.float32), w_ref[...].astype(jnp.float32),
                preferred_element_type=jnp.float32)
    o_ref[...] = (y + r_ref[...].astype(jnp.float32)).astype(o_ref.dtype)


def _proj_residual(a2, w_o, res2):
    R, I = a2.shape
    D = w_o.shape[1]
    tile = _pick_tile_rows(R, per_row_bytes=(I + 2 * D) * 4, weight_bytes=I * D * 4)
    grid = (pl.cdiv(R, tile),)
    return pl.pallas_call(
        _proj_res_kernel,
        out_shape=jax.ShapeDtypeStruct((R, D), res2.dtype),
        grid_spec=pltpu.PrefetchScalarGridSpec(
            num_scalar_prefetch=0,
            grid=grid,
            in_specs=[
                pl.BlockSpec((tile, I), lambda i: (i, 0)),
                pl.BlockSpec((I, D), lambda i: (0, 0)),
                pl.BlockSpec((tile, D), lambda i: (i, 0)),
            ],
            out_specs=pl.BlockSpec((tile, D), lambda i: (i, 0)),
        ),
        compiler_params=_compiler_params(),
    )(a2, w_o, res2)


# ---------------------------------------------------------------------------
# Kernel 4: fully fused FeedForward (LN -> W1 -> GEGLU -> W2 -> + residual)
# ---------------------------------------------------------------------------
def _ff_kernel(x_ref, g_ref, wu_ref, wg_ref, wo_ref, o_ref):
    x = x_ref[...].astype(jnp.float32)
    xn = _layer_norm_f32(x, g_ref[...].astype(jnp.float32))
    u = jnp.dot(xn, wu_ref[...].astype(jnp.float32), preferred_element_type=jnp.float32)
    g = jnp.dot(xn, wg_ref[...].astype(jnp.float32), preferred_element_type=jnp.float32)
    h = _gelu_exact_f32(g) * u                                   # GEGLU
    y = jnp.dot(h, wo_ref[...].astype(jnp.float32), preferred_element_type=jnp.float32)
    o_ref[...] = (y + x).astype(o_ref.dtype)                     # + residual
    # TODO(synk): dropout (p=0 in this config) is an identity and is omitted.


def _feed_forward(x2, gamma, w_u, w_g, w_o):
    R, D = x2.shape
    H = w_u.shape[1]
    tile = _pick_tile_rows(R, per_row_bytes=(2 * D + 3 * H) * 4,
                           weight_bytes=(3 * D * H + D) * 4)
    grid = (pl.cdiv(R, tile),)
    return pl.pallas_call(
        _ff_kernel,
        out_shape=jax.ShapeDtypeStruct((R, D), x2.dtype),
        grid_spec=pltpu.PrefetchScalarGridSpec(
            num_scalar_prefetch=0,
            grid=grid,
            in_specs=[
                pl.BlockSpec((tile, D), lambda i: (i, 0)),
                pl.BlockSpec((1, D), lambda i: (0, 0)),
                pl.BlockSpec((D, H), lambda i: (0, 0)),
                pl.BlockSpec((D, H), lambda i: (0, 0)),
                pl.BlockSpec((H, D), lambda i: (0, 0)),
            ],
            out_specs=pl.BlockSpec((tile, D), lambda i: (i, 0)),
        ),
        compiler_params=_compiler_params(),
    )(x2, gamma.reshape(1, D), w_u, w_g, w_o)


# ---------------------------------------------------------------------------
# Full Transformer forward
# ---------------------------------------------------------------------------
@functools.partial(jax.jit, static_argnames=("heads", "dim_head", "return_all_layers"))
def transformer_forward(x, params, *, heads, dim_head, return_all_layers=False):
    B, N, D = x.shape
    R = B * N
    inner = heads * dim_head
    x2 = x.reshape(R, D)
    layer_outs = []

    def to_heads(t):
        return (t.reshape(B, N, heads, dim_head)
                 .transpose(0, 2, 1, 3)
                 .reshape(B * heads, N, dim_head))

    for layer in params:
        # --- Attention block: x = Attn(LN(x)) + x ---
        q2, k2, v2 = _ln_qkv(x2, layer["attn_gamma"],
                             layer["w_q"], layer["w_k"], layer["w_v"])
        oh = _attention_core(to_heads(q2), to_heads(k2), to_heads(v2),
                             layer["q_scale"], layer["k_scale"])
        o2 = (oh.reshape(B, heads, N, dim_head)
                .transpose(0, 2, 1, 3)
                .reshape(R, inner))
        x2 = _proj_residual(o2, layer["w_o"], x2)
        # --- FeedForward block: x = FF(LN(x)) + x (single fused kernel) ---
        x2 = _feed_forward(x2, layer["ff_gamma"],
                           layer["ff_w_u"], layer["ff_w_g"], layer["ff_w_o"])
        layer_outs.append(x2.reshape(B, N, D))

    out = x2.reshape(B, N, D)
    if not return_all_layers:
        return out
    all_layers = jnp.stack(layer_outs[:-1]) if len(params) > 1 else None
    return out, all_layers


# ---------------------------------------------------------------------------
# Pure-JAX reference (mirrors the PyTorch forward math)
# ---------------------------------------------------------------------------
def _ref_layer_norm(x, gamma):
    xf = x.astype(jnp.float32)
    mean = jnp.mean(xf, axis=-1, keepdims=True)
    var = jnp.mean((xf - mean) ** 2, axis=-1, keepdims=True)
    return (xf - mean) * lax.rsqrt(var + EPS) * gamma


def _ref_l2norm(t):
    return t * lax.rsqrt(jnp.sum(t * t, axis=-1, keepdims=True) + L2_EPS)


def transformer_ref(x, params, *, heads, dim_head):
    HI = lax.Precision.HIGHEST
    B, N, D = x.shape
    for layer in params:
        xn = _ref_layer_norm(x, layer["attn_gamma"])
        q = jnp.dot(xn, layer["w_q"], precision=HI)
        k = jnp.dot(xn, layer["w_k"], precision=HI)
        v = jnp.dot(xn, layer["w_v"], precision=HI)
        split = lambda t: t.reshape(B, N, heads, dim_head).transpose(0, 2, 1, 3)
        q, k, v = split(q), split(k), split(v)
        q = _ref_l2norm(q) * layer["q_scale"]
        k = _ref_l2norm(k) * layer["k_scale"]
        sim = jnp.einsum("bhid,bhjd->bhij", q, k, precision=HI) * ATTN_SCALE
        attn = jax.nn.softmax(sim, axis=-1)
        o = jnp.einsum("bhij,bhjd->bhid", attn, v, precision=HI)
        o = o.transpose(0, 2, 1, 3).reshape(B, N, heads * dim_head)
        x = jnp.dot(o, layer["w_o"], precision=HI) + x
        xn = _ref_layer_norm(x, layer["ff_gamma"])
        u = jnp.dot(xn, layer["ff_w_u"], precision=HI)
        g = jnp.dot(xn, layer["ff_w_g"], precision=HI)
        h = jax.nn.gelu(g, approximate=False) * u
        x = jnp.dot(h, layer["ff_w_o"], precision=HI) + x
    return x


# ---------------------------------------------------------------------------
# Deterministic parameter init (gamma/scales = ones, matching torch init)
# ---------------------------------------------------------------------------
def init_params(key, dim, depth, heads, dim_head, ff_mult):
    inner = heads * dim_head
    dim_hidden = int(dim * ff_mult * 2 / 3)
    layers = []
    for _ in range(depth):
        key, kq, kk, kv, ko, k1, k2 = jax.random.split(key, 7)
        w1 = jax.random.normal(k1, (dim, 2 * dim_hidden), jnp.float32) * dim ** -0.5
        layers.append(dict(
            attn_gamma=jnp.ones((dim,), jnp.float32),
            w_q=jax.random.normal(kq, (dim, inner), jnp.float32) * dim ** -0.5,
            w_k=jax.random.normal(kk, (dim, inner), jnp.float32) * dim ** -0.5,
            w_v=jax.random.normal(kv, (dim, inner), jnp.float32) * dim ** -0.5,
            q_scale=jnp.ones((dim_head,), jnp.float32),
            k_scale=jnp.ones((dim_head,), jnp.float32),
            w_o=jax.random.normal(ko, (inner, dim), jnp.float32) * inner ** -0.5,
            ff_gamma=jnp.ones((dim,), jnp.float32),
            ff_w_u=w1[:, :dim_hidden],     # GEGLU value half
            ff_w_g=w1[:, dim_hidden:],     # GEGLU gate half
            ff_w_o=jax.random.normal(k2, (dim_hidden, dim), jnp.float32) * dim_hidden ** -0.5,
        ))
    return tuple(layers)


if __name__ == "__main__":
    key = jax.random.PRNGKey(0)
    key_p, key_x = jax.random.split(key)

    # small, lane-dense demo shapes consistent with the module
    batch, seq, dim = 2, 8, 128
    depth, heads, dim_head, ff_mult = 2, 4, 32, 3   # dim_hidden = 256

    params = init_params(key_p, dim, depth, heads, dim_head, ff_mult)
    x = jax.random.normal(key_x, (batch, seq, dim), dtype=jnp.float32)

    out = transformer_forward(x, params, heads=heads, dim_head=dim_head)
    out = jax.block_until_ready(out)

    ref = transformer_ref(x, params, heads=heads, dim_head=dim_head)
    assert out.shape == x.shape and out.dtype == x.dtype
    max_diff = float(jnp.max(jnp.abs(out - ref)))
    assert jnp.allclose(out, ref, atol=2e-3, rtol=2e-3), f"max abs diff {max_diff}"
    print("KERNEL_OK")
</pallas_src>

<mosaic_0001>
module attributes {stable_mosaic.version = 11 : i64} {
  func.func @_attn_kernel(%arg0: i32, %arg1: memref<1x8x32xf32, #tpu.memory_space<vmem>>, %arg2: memref<1x8x32xf32, #tpu.memory_space<vmem>>, %arg3: memref<1x8x32xf32, #tpu.memory_space<vmem>>, %arg4: memref<1x32xf32, #tpu.memory_space<vmem>>, %arg5: memref<1x32xf32, #tpu.memory_space<vmem>>, %arg6: memref<1x8x32xf32, #tpu.memory_space<vmem>>) attributes {dimension_semantics = [#tpu.dimension_semantics<parallel>], iteration_bounds = array<i64: 8>, scalar_prefetch = 0 : i64, scratch_operands = 0 : i64, tpu.core_type = #tpu.core_type<tc>, window_params = [{transform_indices = @transform_0, window_bounds = array<i64: 1, 8, 32>}, {transform_indices = @transform_1, window_bounds = array<i64: 1, 8, 32>}, {transform_indices = @transform_2, window_bounds = array<i64: 1, 8, 32>}, {pipeline_mode = #tpu.pipeline_mode<synchronous>, transform_indices = @transform_3, window_bounds = array<i64: 1, 32>}, {pipeline_mode = #tpu.pipeline_mode<synchronous>, transform_indices = @transform_4, window_bounds = array<i64: 1, 32>}, {transform_indices = @transform_5, window_bounds = array<i64: 1, 8, 32>}]} {
    %c0 = arith.constant 0 : index
    %c0_0 = arith.constant 0 : index
    %c0_1 = arith.constant 0 : index
    %0 = vector.load %arg1[%c0, %c0_0, %c0_1] : memref<1x8x32xf32, #tpu.memory_space<vmem>>, vector<1x8x32xf32>
    %1 = vector.shape_cast %0 : vector<1x8x32xf32> to vector<8x32xf32>
    %c0_2 = arith.constant 0 : index
    %c0_3 = arith.constant 0 : index
    %c0_4 = arith.constant 0 : index
    %2 = vector.load %arg2[%c0_2, %c0_3, %c0_4] : memref<1x8x32xf32, #tpu.memory_space<vmem>>, vector<1x8x32xf32>
    %3 = vector.shape_cast %2 : vector<1x8x32xf32> to vector<8x32xf32>
    %c0_5 = arith.constant 0 : index
    %c0_6 = arith.constant 0 : index
    %c0_7 = arith.constant 0 : index
    %4 = vector.load %arg3[%c0_5, %c0_6, %c0_7] : memref<1x8x32xf32, #tpu.memory_space<vmem>>, vector<1x8x32xf32>
    %5 = vector.shape_cast %4 : vector<1x8x32xf32> to vector<8x32xf32>
    %6 = arith.mulf %1, %1 : vector<8x32xf32>
    %cst = arith.constant dense<0.000000e+00> : vector<8xf32>
    %7 = vector.multi_reduction <add>, %6, %cst [1] : vector<8x32xf32> to vector<8xf32>
    %8 = vector.shape_cast %7 : vector<8xf32> to vector<8x1xf32>
    %cst_8 = arith.constant 9.99999996E-13 : f32
    %9 = vector.broadcast %cst_8 : f32 to vector<8x1xf32>
    %10 = arith.addf %8, %9 : vector<8x1xf32>
    %11 = math.rsqrt %10 : vector<8x1xf32>
    %12 = vector.broadcast %11 : vector<8x1xf32> to vector<8x32xf32>
    %13 = arith.mulf %1, %12 : vector<8x32xf32>
    %14 = arith.mulf %3, %3 : vector<8x32xf32>
    %cst_9 = arith.constant dense<0.000000e+00> : vector<8xf32>
    %15 = vector.multi_reduction <add>, %14, %cst_9 [1] : vector<8x32xf32> to vector<8xf32>
    %16 = vector.shape_cast %15 : vector<8xf32> to vector<8x1xf32>
    %cst_10 = arith.constant 9.99999996E-13 : f32
    %17 = vector.broadcast %cst_10 : f32 to vector<8x1xf32>
    %18 = arith.addf %16, %17 : vector<8x1xf32>
    %19 = math.rsqrt %18 : vector<8x1xf32>
    %20 = vector.broadcast %19 : vector<8x1xf32> to vector<8x32xf32>
    %21 = arith.mulf %3, %20 : vector<8x32xf32>
    %c0_11 = arith.constant 0 : index
    %c0_12 = arith.constant 0 : index
    %22 = vector.load %arg4[%c0_11, %c0_12] : memref<1x32xf32, #tpu.memory_space<vmem>>, vector<1x32xf32>
    %23 = vector.broadcast %22 : vector<1x32xf32> to vector<8x32xf32>
    %24 = arith.mulf %13, %23 : vector<8x32xf32>
    %c0_13 = arith.constant 0 : index
    %c0_14 = arith.constant 0 : index
    %25 = vector.load %arg5[%c0_13, %c0_14] : memref<1x32xf32, #tpu.memory_space<vmem>>, vector<1x32xf32>
    %26 = vector.broadcast %25 : vector<1x32xf32> to vector<8x32xf32>
    %27 = arith.mulf %21, %26 : vector<8x32xf32>
    %28 = tpu.transpose %27, [1, 0] : vector<8x32xf32> -> vector<32x8xf32>
    %cst_15 = arith.constant dense<0.000000e+00> : vector<8x8xf32>
    %29 = tpu.matmul %24, %28, %cst_15 {dimension_numbers = #tpu.dot_dimension_numbers<[1], [0], [0], [1], [0, 0, 1, 1], [], []>} : vector<8x32xf32>, vector<32x8xf32>, vector<8x8xf32> -> vector<8x8xf32>
    %cst_16 = arith.constant 8.000000e+00 : f32
    %30 = vector.broadcast %cst_16 : f32 to vector<8x8xf32>
    %31 = arith.mulf %29, %30 : vector<8x8xf32>
    %cst_17 = arith.constant dense<0xFF800000> : vector<8xf32>
    %32 = vector.multi_reduction <maximumf>, %31, %cst_17 [1] : vector<8x8xf32> to vector<8xf32>
    %33 = vector.shape_cast %32 : vector<8xf32> to vector<8x1xf32>
    %34 = vector.broadcast %33 : vector<8x1xf32> to vector<8x8xf32>
    %35 = arith.subf %31, %34 : vector<8x8xf32>
    %36 = math.exp %35 : vector<8x8xf32>
    %cst_18 = arith.constant dense<0.000000e+00> : vector<8xf32>
    %37 = vector.multi_reduction <add>, %36, %cst_18 [1] : vector<8x8xf32> to vector<8xf32>
    %38 = vector.shape_cast %37 : vector<8xf32> to vector<8x1xf32>
    %39 = vector.broadcast %38 : vector<8x1xf32> to vector<8x8xf32>
    %40 = arith.divf %36, %39 : vector<8x8xf32>
    %cst_19 = arith.constant dense<0.000000e+00> : vector<8x32xf32>
    %41 = tpu.matmul %40, %5, %cst_19 {dimension_numbers = #tpu.dot_dimension_numbers<[1], [0], [0], [1], [0, 0, 1, 1], [], []>} : vector<8x8xf32>, vector<8x32xf32>, vector<8x32xf32> -> vector<8x32xf32>
    %c0_20 = arith.constant 0 : index
    %c0_21 = arith.constant 0 : index
    %c0_22 = arith.constant 0 : index
    %42 = vector.load %arg6[%c0_20, %c0_21, %c0_22] : memref<1x8x32xf32, #tpu.memory_space<vmem>>, vector<1x8x32xf32>
    %43 = vector.shape_cast %42 : vector<1x8x32xf32> to vector<8x32xf32>
    %44 = vector.shape_cast %41 : vector<8x32xf32> to vector<1x8x32xf32>
    tpu.vector_store %arg6[%c0_20, %c0_21, %c0_22], %44 {strides = array<i32>} : memref<1x8x32xf32, #tpu.memory_space<vmem>>, vector<1x8x32xf32>,
    return
  }
  func.func @transform_0(%arg0: i32) -> (i32, i32, i32) {
    %c0_i32 = arith.constant 0 : i32
    %c0_i32_0 = arith.constant 0 : i32
    %c0_i32_1 = arith.constant 0 : i32
    return %arg0, %c0_i32, %c0_i32_0 : i32, i32, i32
  }
  func.func @transform_1(%arg0: i32) -> (i32, i32, i32) {
    %c0_i32 = arith.constant 0 : i32
    %c0_i32_0 = arith.constant 0 : i32
    %c0_i32_1 = arith.constant 0 : i32
    return %arg0, %c0_i32, %c0_i32_0 : i32, i32, i32
  }
  func.func @transform_2(%arg0: i32) -> (i32, i32, i32) {
    %c0_i32 = arith.constant 0 : i32
    %c0_i32_0 = arith.constant 0 : i32
    %c0_i32_1 = arith.constant 0 : i32
    return %arg0, %c0_i32, %c0_i32_0 : i32, i32, i32
  }
  func.func @transform_3(%arg0: i32) -> (i32, i32) {
    %c0_i32 = arith.constant 0 : i32
    %c0_i32_0 = arith.constant 0 : i32
    %c0_i32_1 = arith.constant 0 : i32
    return %c0_i32, %c0_i32_0 : i32, i32
  }
  func.func @transform_4(%arg0: i32) -> (i32, i32) {
    %c0_i32 = arith.constant 0 : i32
    %c0_i32_0 = arith.constant 0 : i32
    %c0_i32_1 = arith.constant 0 : i32
    return %c0_i32, %c0_i32_0 : i32, i32
  }
  func.func @transform_5(%arg0: i32) -> (i32, i32, i32) {
    %c0_i32 = arith.constant 0 : i32
    %c0_i32_0 = arith.constant 0 : i32
    %c0_i32_1 = arith.constant 0 : i32
    return %arg0, %c0_i32, %c0_i32_0 : i32, i32, i32
  }
}

module attributes {stable_mosaic.version = 11 : i64} {
  func.func @_ln_qkv_kernel(%arg0: i32, %arg1: memref<16x128xf32, #tpu.memory_space<vmem>>, %arg2: memref<1x128xf32, #tpu.memory_space<vmem>>, %arg3: memref<128x128xf32, #tpu.memory_space<vmem>>, %arg4: memref<128x128xf32, #tpu.memory_space<vmem>>, %arg5: memref<128x128xf32, #tpu.memory_space<vmem>>, %arg6: memref<16x128xf32, #tpu.memory_space<vmem>>, %arg7: memref<16x128xf32, #tpu.memory_space<vmem>>, %arg8: memref<16x128xf32, #tpu.memory_space<vmem>>) attributes {dimension_semantics = [#tpu.dimension_semantics<parallel>], iteration_bounds = array<i64: 1>, scalar_prefetch = 0 : i64, scratch_operands = 0 : i64, tpu.core_type = #tpu.core_type<tc>, window_params = [{transform_indices = @transform_0, window_bounds = array<i64: 16, 128>}, {pipeline_mode = #tpu.pipeline_mode<synchronous>, transform_indices = @transform_1, window_bounds = array<i64: 1, 128>}, {pipeline_mode = #tpu.pipeline_mode<synchronous>, transform_indices = @transform_2, window_bounds = array<i64: 128, 128>}, {pipeline_mode = #tpu.pipeline_mode<synchronous>, transform_indices = @transform_3, window_bounds = array<i64: 128, 128>}, {pipeline_mode = #tpu.pipeline_mode<synchronous>, transform_indices = @transform_4, window_bounds = array<i64: 128, 128>}, {transform_indices = @transform_5, window_bounds = array<i64: 16, 128>}, {transform_indices = @transform_6, window_bounds = array<i64: 16, 128>}, {transform_indices = @transform_7, window_bounds = array<i64: 16, 128>}]} {
    %c0 = arith.constant 0 : index
    %c0_0 = arith.constant 0 : index
    %0 = vector.load %arg1[%c0, %c0_0] : memref<16x128xf32, #tpu.memory_space<vmem>>, vector<16x128xf32>
    %c0_1 = arith.constant 0 : index
    %c0_2 = arith.constant 0 : index
    %1 = vector.load %arg2[%c0_1, %c0_2] : memref<1x128xf32, #tpu.memory_space<vmem>>, vector<1x128xf32>
    %cst = arith.constant dense<0.000000e+00> : vector<16xf32>
    %2 = vector.multi_reduction <add>, %0, %cst [1] : vector<16x128xf32> to vector<16xf32>
    %3 = vector.shape_cast %2 : vector<16xf32> to vector<16x1xf32>
    %4 = arith.mulf %0, %0 : vector<16x128xf32>
    %cst_3 = arith.constant dense<0.000000e+00> : vector<16xf32>
    %5 = vector.multi_reduction <add>, %4, %cst_3 [1] : vector<16x128xf32> to vector<16xf32>
    %6 = vector.shape_cast %5 : vector<16xf32> to vector<16x1xf32>
    %cst_4 = arith.constant 1.280000e+02 : f32
    %7 = vector.broadcast %cst_4 : f32 to vector<16x1xf32>
    %8 = arith.divf %3, %7 : vector<16x1xf32>
    %cst_5 = arith.constant 1.280000e+02 : f32
    %9 = vector.broadcast %cst_5 : f32 to vector<16x1xf32>
    %10 = arith.divf %6, %9 : vector<16x1xf32>
    %11 = arith.mulf %8, %8 : vector<16x1xf32>
    %12 = arith.subf %10, %11 : vector<16x1xf32>
    %cst_6 = arith.constant 0.000000e+00 : f32
    %13 = vector.broadcast %cst_6 : f32 to vector<16x1xf32>
    %14 = arith.maximumf %12, %13 : vector<16x1xf32>
    %15 = vector.broadcast %8 : vector<16x1xf32> to vector<16x128xf32>
    %16 = arith.subf %0, %15 : vector<16x128xf32>
    %cst_7 = arith.constant 9.99999974E-6 : f32
    %17 = vector.broadcast %cst_7 : f32 to vector<16x1xf32>
    %18 = arith.addf %14, %17 : vector<16x1xf32>
    %19 = math.rsqrt %18 : vector<16x1xf32>
    %20 = vector.broadcast %19 : vector<16x1xf32> to vector<16x128xf32>
    %21 = arith.mulf %16, %20 : vector<16x128xf32>
    %22 = vector.broadcast %1 : vector<1x128xf32> to vector<16x128xf32>
    %23 = arith.mulf %21, %22 : vector<16x128xf32>
    %c0_8 = arith.constant 0 : index
    %c0_9 = arith.constant 0 : index
    %24 = vector.load %arg3[%c0_8, %c0_9] : memref<128x128xf32, #tpu.memory_space<vmem>>, vector<128x128xf32>
    %cst_10 = arith.constant dense<0.000000e+00> : vector<16x128xf32>
    %25 = tpu.matmul %23, %24, %cst_10 {dimension_numbers = #tpu.dot_dimension_numbers<[1], [0], [0], [1], [0, 0, 1, 1], [], []>} : vector<16x128xf32>, vector<128x128xf32>, vector<16x128xf32> -> vector<16x128xf32>
    %c0_11 = arith.constant 0 : index
    %c0_12 = arith.constant 0 : index
    %26 = vector.load %arg6[%c0_11, %c0_12] : memref<16x128xf32, #tpu.memory_space<vmem>>, vector<16x128xf32>
    tpu.vector_store %arg6[%c0_11, %c0_12], %25 {strides = array<i32>} : memref<16x128xf32, #tpu.memory_space<vmem>>, vector<16x128xf32>,
    %c0_13 = arith.constant 0 : index
    %c0_14 = arith.constant 0 : index
    %27 = vector.load %arg4[%c0_13, %c0_14] : memref<128x128xf32, #tpu.memory_space<vmem>>, vector<128x128xf32>
    %cst_15 = arith.constant dense<0.000000e+00> : vector<16x128xf32>
    %28 = tpu.matmul %23, %27, %cst_15 {dimension_numbers = #tpu.dot_dimension_numbers<[1], [0], [0], [1], [0, 0, 1, 1], [], []>} : vector<16x128xf32>, vector<128x128xf32>, vector<16x128xf32> -> vector<16x128xf32>
    %c0_16 = arith.constant 0 : index
    %c0_17 = arith.constant 0 : index
    %29 = vector.load %arg7[%c0_16, %c0_17] : memref<16x128xf32, #tpu.memory_space<vmem>>, vector<16x128xf32>
    tpu.vector_store %arg7[%c0_16, %c0_17], %28 {strides = array<i32>} : memref<16x128xf32, #tpu.memory_space<vmem>>, vector<16x128xf32>,
    %c0_18 = arith.constant 0 : index
    %c0_19 = arith.constant 0 : index
    %30 = vector.load %arg5[%c0_18, %c0_19] : memref<128x128xf32, #tpu.memory_space<vmem>>, vector<128x128xf32>
    %cst_20 = arith.constant dense<0.000000e+00> : vector<16x128xf32>
    %31 = tpu.matmul %23, %30, %cst_20 {dimension_numbers = #tpu.dot_dimension_numbers<[1], [0], [0], [1], [0, 0, 1, 1], [], []>} : vector<16x128xf32>, vector<128x128xf32>, vector<16x128xf32> -> vector<16x128xf32>
    %c0_21 = arith.constant 0 : index
    %c0_22 = arith.constant 0 : index
    %32 = vector.load %arg8[%c0_21, %c0_22] : memref<16x128xf32, #tpu.memory_space<vmem>>, vector<16x128xf32>
    tpu.vector_store %arg8[%c0_21, %c0_22], %31 {strides = array<i32>} : memref<16x128xf32, #tpu.memory_space<vmem>>, vector<16x128xf32>,
    return
  }
  func.func @transform_0(%arg0: i32) -> (i32, i32) {
    %c0_i32 = arith.constant 0 : i32
    %c0_i32_0 = arith.constant 0 : i32
    return %arg0, %c0_i32 : i32, i32
  }
  func.func @transform_1(%arg0: i32) -> (i32, i32) {
    %c0_i32 = arith.constant 0 : i32
    %c0_i32_0 = arith.constant 0 : i32
    %c0_i32_1 = arith.constant 0 : i32
    return %c0_i32, %c0_i32_0 : i32, i32
  }
  func.func @transform_2(%arg0: i32) -> (i32, i32) {
    %c0_i32 = arith.constant 0 : i32
    %c0_i32_0 = arith.constant 0 : i32
    %c0_i32_1 = arith.constant 0 : i32
    return %c0_i32, %c0_i32_0 : i32, i32
  }
  func.func @transform_3(%arg0: i32) -> (i32, i32) {
    %c0_i32 = arith.constant 0 : i32
    %c0_i32_0 = arith.constant 0 : i32
    %c0_i32_1 = arith.constant 0 : i32
    return %c0_i32, %c0_i32_0 : i32, i32
  }
  func.func @transform_4(%arg0: i32) -> (i32, i32) {
    %c0_i32 = arith.constant 0 : i32
    %c0_i32_0 = arith.constant 0 : i32
    %c0_i32_1 = arith.constant 0 : i32
    return %c0_i32, %c0_i32_0 : i32, i32
  }
  func.func @transform_5(%arg0: i32) -> (i32, i32) {
    %c0_i32 = arith.constant 0 : i32
    %c0_i32_0 = arith.constant 0 : i32
    return %arg0, %c0_i32 : i32, i32
  }
  func.func @transform_6(%arg0: i32) -> (i32, i32) {
    %c0_i32 = arith.constant 0 : i32
    %c0_i32_0 = arith.constant 0 : i32
    return %arg0, %c0_i32 : i32, i32
  }
  func.func @transform_7(%arg0: i32) -> (i32, i32) {
    %c0_i32 = arith.constant 0 : i32
    %c0_i32_0 = arith.constant 0 : i32
    return %arg0, %c0_i32 : i32, i32
  }
}

module attributes {stable_mosaic.version = 11 : i64} {
  func.func @_proj_res_kernel(%arg0: i32, %arg1: memref<16x128xf32, #tpu.memory_space<vmem>>, %arg2: memref<128x128xf32, #tpu.memory_space<vmem>>, %arg3: memref<16x128xf32, #tpu.memory_space<vmem>>, %arg4: memref<16x128xf32, #tpu.memory_space<vmem>>) attributes {dimension_semantics = [#tpu.dimension_semantics<parallel>], iteration_bounds = array<i64: 1>, scalar_prefetch = 0 : i64, scratch_operands = 0 : i64, tpu.core_type = #tpu.core_type<tc>, window_params = [{transform_indices = @transform_0, window_bounds = array<i64: 16, 128>}, {pipeline_mode = #tpu.pipeline_mode<synchronous>, transform_indices = @transform_1, window_bounds = array<i64: 128, 128>}, {transform_indices = @transform_2, window_bounds = array<i64: 16, 128>}, {transform_indices = @transform_3, window_bounds = array<i64: 16, 128>}]} {
    %c0 = arith.constant 0 : index
    %c0_0 = arith.constant 0 : index
    %0 = vector.load %arg1[%c0, %c0_0] : memref<16x128xf32, #tpu.memory_space<vmem>>, vector<16x128xf32>
    %c0_1 = arith.constant 0 : index
    %c0_2 = arith.constant 0 : index
    %1 = vector.load %arg2[%c0_1, %c0_2] : memref<128x128xf32, #tpu.memory_space<vmem>>, vector<128x128xf32>
    %cst = arith.constant dense<0.000000e+00> : vector<16x128xf32>
    %2 = tpu.matmul %0, %1, %cst {dimension_numbers = #tpu.dot_dimension_numbers<[1], [0], [0], [1], [0, 0, 1, 1], [], []>} : vector<16x128xf32>, vector<128x128xf32>, vector<16x128xf32> -> vector<16x128xf32>
    %c0_3 = arith.constant 0 : index
    %c0_4 = arith.constant 0 : index
    %3 = vector.load %arg3[%c0_3, %c0_4] : memref<16x128xf32, #tpu.memory_space<vmem>>, vector<16x128xf32>
    %4 = arith.addf %2, %3 : vector<16x128xf32>
    %c0_5 = arith.constant 0 : index
    %c0_6 = arith.constant 0 : index
    %5 = vector.load %arg4[%c0_5, %c0_6] : memref<16x128xf32, #tpu.memory_space<vmem>>, vector<16x128xf32>
    tpu.vector_store %arg4[%c0_5, %c0_6], %4 {strides = array<i32>} : memref<16x128xf32, #tpu.memory_space<vmem>>, vector<16x128xf32>,
    return
  }
  func.func @transform_0(%arg0: i32) -> (i32, i32) {
    %c0_i32 = arith.constant 0 : i32
    %c0_i32_0 = arith.constant 0 : i32
    return %arg0, %c0_i32 : i32, i32
  }
  func.func @transform_1(%arg0: i32) -> (i32, i32) {
    %c0_i32 = arith.constant 0 : i32
    %c0_i32_0 = arith.constant 0 : i32
    %c0_i32_1 = arith.constant 0 : i32
    return %c0_i32, %c0_i32_0 : i32, i32
  }
  func.func @transform_2(%arg0: i32) -> (i32, i32) {
    %c0_i32 = arith.constant 0 : i32
    %c0_i32_0 = arith.constant 0 : i32
    return %arg0, %c0_i32 : i32, i32
  }
  func.func @transform_3(%arg0: i32) -> (i32, i32) {
    %c0_i32 = arith.constant 0 : i32
    %c0_i32_0 = arith.constant 0 : i32
    return %arg0, %c0_i32 : i32, i32
  }
}

module attributes {stable_mosaic.version = 11 : i64} {
  func.func @_ff_kernel(%arg0: i32, %arg1: memref<16x128xf32, #tpu.memory_space<vmem>>, %arg2: memref<1x128xf32, #tpu.memory_space<vmem>>, %arg3: memref<128x256xf32, #tpu.memory_space<vmem>>, %arg4: memref<128x256xf32, #tpu.memory_space<vmem>>, %arg5: memref<256x128xf32, #tpu.memory_space<vmem>>, %arg6: memref<16x128xf32, #tpu.memory_space<vmem>>) attributes {dimension_semantics = [#tpu.dimension_semantics<parallel>], iteration_bounds = array<i64: 1>, scalar_prefetch = 0 : i64, scratch_operands = 0 : i64, tpu.core_type = #tpu.core_type<tc>, window_params = [{transform_indices = @transform_0, window_bounds = array<i64: 16, 128>}, {pipeline_mode = #tpu.pipeline_mode<synchronous>, transform_indices = @transform_1, window_bounds = array<i64: 1, 128>}, {pipeline_mode = #tpu.pipeline_mode<synchronous>, transform_indices = @transform_2, window_bounds = array<i64: 128, 256>}, {pipeline_mode = #tpu.pipeline_mode<synchronous>, transform_indices = @transform_3, window_bounds = array<i64: 128, 256>}, {pipeline_mode = #tpu.pipeline_mode<synchronous>, transform_indices = @transform_4, window_bounds = array<i64: 256, 128>}, {transform_indices = @transform_5, window_bounds = array<i64: 16, 128>}]} {
    %c0 = arith.constant 0 : index
    %c0_0 = arith.constant 0 : index
    %0 = vector.load %arg1[%c0, %c0_0] : memref<16x128xf32, #tpu.memory_space<vmem>>, vector<16x128xf32>
    %c0_1 = arith.constant 0 : index
    %c0_2 = arith.constant 0 : index
    %1 = vector.load %arg2[%c0_1, %c0_2] : memref<1x128xf32, #tpu.memory_space<vmem>>, vector<1x128xf32>
    %cst = arith.constant dense<0.000000e+00> : vector<16xf32>
    %2 = vector.multi_reduction <add>, %0, %cst [1] : vector<16x128xf32> to vector<16xf32>
    %3 = vector.shape_cast %2 : vector<16xf32> to vector<16x1xf32>
    %4 = arith.mulf %0, %0 : vector<16x128xf32>
    %cst_3 = arith.constant dense<0.000000e+00> : vector<16xf32>
    %5 = vector.multi_reduction <add>, %4, %cst_3 [1] : vector<16x128xf32> to vector<16xf32>
    %6 = vector.shape_cast %5 : vector<16xf32> to vector<16x1xf32>
    %cst_4 = arith.constant 1.280000e+02 : f32
    %7 = vector.broadcast %cst_4 : f32 to vector<16x1xf32>
    %8 = arith.divf %3, %7 : vector<16x1xf32>
    %cst_5 = arith.constant 1.280000e+02 : f32
    %9 = vector.broadcast %cst_5 : f32 to vector<16x1xf32>
    %10 = arith.divf %6, %9 : vector<16x1xf32>
    %11 = arith.mulf %8, %8 : vector<16x1xf32>
    %12 = arith.subf %10, %11 : vector<16x1xf32>
    %cst_6 = arith.constant 0.000000e+00 : f32
    %13 = vector.broadcast %cst_6 : f32 to vector<16x1xf32>
    %14 = arith.maximumf %12, %13 : vector<16x1xf32>
    %15 = vector.broadcast %8 : vector<16x1xf32> to vector<16x128xf32>
    %16 = arith.subf %0, %15 : vector<16x128xf32>
    %cst_7 = arith.constant 9.99999974E-6 : f32
    %17 = vector.broadcast %cst_7 : f32 to vector<16x1xf32>
    %18 = arith.addf %14, %17 : vector<16x1xf32>
    %19 = math.rsqrt %18 : vector<16x1xf32>
    %20 = vector.broadcast %19 : vector<16x1xf32> to vector<16x128xf32>
    %21 = arith.mulf %16, %20 : vector<16x128xf32>
    %22 = vector.broadcast %1 : vector<1x128xf32> to vector<16x128xf32>
    %23 = arith.mulf %21, %22 : vector<16x128xf32>
    %c0_8 = arith.constant 0 : index
    %c0_9 = arith.constant 0 : index
    %24 = vector.load %arg3[%c0_8, %c0_9] : memref<128x256xf32, #tpu.memory_space<vmem>>, vector<128x256xf32>
    %cst_10 = arith.constant dense<0.000000e+00> : vector<16x256xf32>
    %25 = tpu.matmul %23, %24, %cst_10 {dimension_numbers = #tpu.dot_dimension_numbers<[1], [0], [0], [1], [0, 0, 1, 1], [], []>} : vector<16x128xf32>, vector<128x256xf32>, vector<16x256xf32> -> vector<16x256xf32>
    %c0_11 = arith.constant 0 : index
    %c0_12 = arith.constant 0 : index
    %26 = vector.load %arg4[%c0_11, %c0_12] : memref<128x256xf32, #tpu.memory_space<vmem>>, vector<128x256xf32>
    %cst_13 = arith.constant dense<0.000000e+00> : vector<16x256xf32>
    %27 = tpu.matmul %23, %26, %cst_13 {dimension_numbers = #tpu.dot_dimension_numbers<[1], [0], [0], [1], [0, 0, 1, 1], [], []>} : vector<16x128xf32>, vector<128x256xf32>, vector<16x256xf32> -> vector<16x256xf32>
    %cst_14 = arith.constant 5.000000e-01 : f32
    %28 = vector.broadcast %cst_14 : f32 to vector<16x256xf32>
    %29 = arith.mulf %28, %27 : vector<16x256xf32>
    %cst_15 = arith.constant 0.707106769 : f32
    %30 = vector.broadcast %cst_15 : f32 to vector<16x256xf32>
    %31 = arith.mulf %27, %30 : vector<16x256xf32>
    %32 = math.absf %31 : vector<16x256xf32>
    %cst_16 = arith.constant 0.327591091 : f32
    %33 = vector.broadcast %cst_16 : f32 to vector<16x256xf32>
    %34 = arith.mulf %33, %32 : vector<16x256xf32>
    %cst_17 = arith.constant 1.000000e+00 : f32
    %35 = vector.broadcast %cst_17 : f32 to vector<16x256xf32>
    %36 = arith.addf %35, %34 : vector<16x256xf32>
    %cst_18 = arith.constant 1.000000e+00 : f32
    %37 = vector.broadcast %cst_18 : f32 to vector<16x256xf32>
    %38 = arith.divf %37, %36 : vector<16x256xf32>
    %cst_19 = arith.constant 1.06140542 : f32
    %39 = vector.broadcast %cst_19 : f32 to vector<16x256xf32>
    %40 = arith.mulf %39, %38 : vector<16x256xf32>
    %cst_20 = arith.constant -1.45315206 : f32
    %41 = vector.broadcast %cst_20 : f32 to vector<16x256xf32>
    %42 = arith.addf %40, %41 : vector<16x256xf32>
    %43 = arith.mulf %42, %38 : vector<16x256xf32>
    %cst_21 = arith.constant 1.42141378 : f32
    %44 = vector.broadcast %cst_21 : f32 to vector<16x256xf32>
    %45 = arith.addf %43, %44 : vector<16x256xf32>
    %46 = arith.mulf %45, %38 : vector<16x256xf32>
    %cst_22 = arith.constant -0.284496725 : f32
    %47 = vector.broadcast %cst_22 : f32 to vector<16x256xf32>
    %48 = arith.addf %46, %47 : vector<16x256xf32>
    %49 = arith.mulf %48, %38 : vector<16x256xf32>
    %cst_23 = arith.constant 0.254829586 : f32
    %50 = vector.broadcast %cst_23 : f32 to vector<16x256xf32>
    %51 = arith.addf %49, %50 : vector<16x256xf32>
    %52 = arith.mulf %51, %38 : vector<16x256xf32>
    %cst_24 = arith.constant 0.000000e+00 : f32
    %53 = vector.broadcast %cst_24 : f32 to vector<16x256xf32>
    %54 = arith.subf %53, %32 : vector<16x256xf32>
    %55 = arith.mulf %54, %32 : vector<16x256xf32>
    %56 = math.exp %55 : vector<16x256xf32>
    %57 = arith.mulf %52, %56 : vector<16x256xf32>
    %cst_25 = arith.constant 1.000000e+00 : f32
    %58 = vector.broadcast %cst_25 : f32 to vector<16x256xf32>
    %59 = arith.subf %58, %57 : vector<16x256xf32>
    %cst_26 = arith.constant 0.000000e+00 : f32
    %60 = vector.broadcast %cst_26 : f32 to vector<16x256xf32>
    %61 = arith.cmpf olt, %31, %60 : vector<16x256xf32>
    %cst_27 = arith.constant 0.000000e+00 : f32
    %62 = vector.broadcast %cst_27 : f32 to vector<16x256xf32>
    %63 = arith.subf %62, %59 : vector<16x256xf32>
    %64 = arith.select %61, %63, %59 : vector<16x256xi1>, vector<16x256xf32>
    %cst_28 = arith.constant 1.000000e+00 : f32
    %65 = vector.broadcast %cst_28 : f32 to vector<16x256xf32>
    %66 = arith.addf %65, %64 : vector<16x256xf32>
    %67 = arith.mulf %29, %66 : vector<16x256xf32>
    %68 = arith.mulf %67, %25 : vector<16x256xf32>
    %c0_29 = arith.constant 0 : index
    %c0_30 = arith.constant 0 : index
    %69 = vector.load %arg5[%c0_29, %c0_30] : memref<256x128xf32, #tpu.memory_space<vmem>>, vector<256x128xf32>
    %cst_31 = arith.constant dense<0.000000e+00> : vector<16x128xf32>
    %70 = tpu.matmul %68, %69, %cst_31 {dimension_numbers = #tpu.dot_dimension_numbers<[1], [0], [0], [1], [0, 0, 1, 1], [], []>} : vector<16x256xf32>, vector<256x128xf32>, vector<16x128xf32> -> vector<16x128xf32>
    %71 = arith.addf %70, %0 : vector<16x128xf32>
    %c0_32 = arith.constant 0 : index
    %c0_33 = arith.constant 0 : index
    %72 = vector.load %arg6[%c0_32, %c0_33] : memref<16x128xf32, #tpu.memory_space<vmem>>, vector<16x128xf32>
    tpu.vector_store %arg6[%c0_32, %c0_33], %71 {strides = array<i32>} : memref<16x128xf32, #tpu.memory_space<vmem>>, vector<16x128xf32>,
    return
  }
  func.func @transform_0(%arg0: i32) -> (i32, i32) {
    %c0_i32 = arith.constant 0 : i32
    %c0_i32_0 = arith.constant 0 : i32
    return %arg0, %c0_i32 : i32, i32
  }
  func.func @transform_1(%arg0: i32) -> (i32, i32) {
    %c0_i32 = arith.constant 0 : i32
    %c0_i32_0 = arith.constant 0 : i32
    %c0_i32_1 = arith.constant 0 : i32
    return %c0_i32, %c0_i32_0 : i32, i32
  }
  func.func @transform_2(%arg0: i32) -> (i32, i32) {
    %c0_i32 = arith.constant 0 : i32
    %c0_i32_0 = arith.constant 0 : i32
    %c0_i32_1 = arith.constant 0 : i32
    return %c0_i32, %c0_i32_0 : i32, i32
  }
  func.func @transform_3(%arg0: i32) -> (i32, i32) {
    %c0_i32 = arith.constant 0 : i32
    %c0_i32_0 = arith.constant 0 : i32
    %c0_i32_1 = arith.constant 0 : i32
    return %c0_i32, %c0_i32_0 : i32, i32
  }
  func.func @transform_4(%arg0: i32) -> (i32, i32) {
    %c0_i32 = arith.constant 0 : i32
    %c0_i32_0 = arith.constant 0 : i32
    %c0_i32_1 = arith.constant 0 : i32
    return %c0_i32, %c0_i32_0 : i32, i32
  }
  func.func @transform_5(%arg0: i32) -> (i32, i32) {
    %c0_i32 = arith.constant 0 : i32
    %c0_i32_0 = arith.constant 0 : i32
    return %arg0, %c0_i32 : i32, i32
  }
}

module attributes {stable_mosaic.version = 11 : i64} {
  func.func @_ff_kernel(%arg0: i32, %arg1: memref<16x128xf32, #tpu.memory_space<vmem>>, %arg2: memref<1x128xf32, #tpu.memory_space<vmem>>, %arg3: memref<128x256xf32, #tpu.memory_space<vmem>>, %arg4: memref<128x256xf32, #tpu.memory_space<vmem>>, %arg5: memref<256x128xf32, #tpu.memory_space<vmem>>, %arg6: memref<16x128xf32, #tpu.memory_space<vmem>>) attributes {dimension_semantics = [#tpu.dimension_semantics<parallel>], iteration_bounds = array<i64: 1>, scalar_prefetch = 0 : i64, scratch_operands = 0 : i64, tpu.core_type = #tpu.core_type<tc>, window_params = [{transform_indices = @transform_0, window_bounds = array<i64: 16, 128>}, {pipeline_mode = #tpu.pipeline_mode<synchronous>, transform_indices = @transform_1, window_bounds = array<i64: 1, 128>}, {pipeline_mode = #tpu.pipeline_mode<synchronous>, transform_indices = @transform_2, window_bounds = array<i64: 128, 256>}, {pipeline_mode = #tpu.pipeline_mode<synchronous>, transform_indices = @transform_3, window_bounds = array<i64: 128, 256>}, {pipeline_mode = #tpu.pipeline_mode<synchronous>, transform_indices = @transform_4, window_bounds = array<i64: 256, 128>}, {transform_indices = @transform_5, window_bounds = array<i64: 16, 128>}]} {
    %c0 = arith.constant 0 : index
    %c0_0 = arith.constant 0 : index
    %0 = vector.load %arg1[%c0, %c0_0] : memref<16x128xf32, #tpu.memory_space<vmem>>, vector<16x128xf32>
    %c0_1 = arith.constant 0 : index
    %c0_2 = arith.constant 0 : index
    %1 = vector.load %arg2[%c0_1, %c0_2] : memref<1x128xf32, #tpu.memory_space<vmem>>, vector<1x128xf32>
    %cst = arith.constant dense<0.000000e+00> : vector<16xf32>
    %2 = vector.multi_reduction <add>, %0, %cst [1] : vector<16x128xf32> to vector<16xf32>
    %3 = vector.shape_cast %2 : vector<16xf32> to vector<16x1xf32>
    %4 = arith.mulf %0, %0 : vector<16x128xf32>
    %cst_3 = arith.constant dense<0.000000e+00> : vector<16xf32>
    %5 = vector.multi_reduction <add>, %4, %cst_3 [1] : vector<16x128xf32> to vector<16xf32>
    %6 = vector.shape_cast %5 : vector<16xf32> to vector<16x1xf32>
    %cst_4 = arith.constant 1.280000e+02 : f32
    %7 = vector.broadcast %cst_4 : f32 to vector<16x1xf32>
    %8 = arith.divf %3, %7 : vector<16x1xf32>
    %cst_5 = arith.constant 1.280000e+02 : f32
    %9 = vector.broadcast %cst_5 : f32 to vector<16x1xf32>
    %10 = arith.divf %6, %9 : vector<16x1xf32>
    %11 = arith.mulf %8, %8 : vector<16x1xf32>
    %12 = arith.subf %10, %11 : vector<16x1xf32>
    %cst_6 = arith.constant 0.000000e+00 : f32
    %13 = vector.broadcast %cst_6 : f32 to vector<16x1xf32>
    %14 = arith.maximumf %12, %13 : vector<16x1xf32>
    %15 = vector.broadcast %8 : vector<16x1xf32> to vector<16x128xf32>
    %16 = arith.subf %0, %15 : vector<16x128xf32>
    %cst_7 = arith.constant 9.99999974E-6 : f32
    %17 = vector.broadcast %cst_7 : f32 to vector<16x1xf32>
    %18 = arith.addf %14, %17 : vector<16x1xf32>
    %19 = math.rsqrt %18 : vector<16x1xf32>
    %20 = vector.broadcast %19 : vector<16x1xf32> to vector<16x128xf32>
    %21 = arith.mulf %16, %20 : vector<16x128xf32>
    %22 = vector.broadcast %1 : vector<1x128xf32> to vector<16x128xf32>
    %23 = arith.mulf %21, %22 : vector<16x128xf32>
    %c0_8 = arith.constant 0 : index
    %c0_9 = arith.constant 0 : index
    %24 = vector.load %arg3[%c0_8, %c0_9] : memref<128x256xf32, #tpu.memory_space<vmem>>, vector<128x256xf32>
    %cst_10 = arith.constant dense<0.000000e+00> : vector<16x256xf32>
    %25 = tpu.matmul %23, %24, %cst_10 {dimension_numbers = #tpu.dot_dimension_numbers<[1], [0], [0], [1], [0, 0, 1, 1], [], []>} : vector<16x128xf32>, vector<128x256xf32>, vector<16x256xf32> -> vector<16x256xf32>
    %c0_11 = arith.constant 0 : index
    %c0_12 = arith.constant 0 : index
    %26 = vector.load %arg4[%c0_11, %c0_12] : memref<128x256xf32, #tpu.memory_space<vmem>>, vector<128x256xf32>
    %cst_13 = arith.constant dense<0.000000e+00> : vector<16x256xf32>
    %27 = tpu.matmul %23, %26, %cst_13 {dimension_numbers = #tpu.dot_dimension_numbers<[1], [0], [0], [1], [0, 0, 1, 1], [], []>} : vector<16x128xf32>, vector<128x256xf32>, vector<16x256xf32> -> vector<16x256xf32>
    %cst_14 = arith.constant 5.000000e-01 : f32
    %28 = vector.broadcast %cst_14 : f32 to vector<16x256xf32>
    %29 = arith.mulf %28, %27 : vector<16x256xf32>
    %cst_15 = arith.constant 0.707106769 : f32
    %30 = vector.broadcast %cst_15 : f32 to vector<16x256xf32>
    %31 = arith.mulf %27, %30 : vector<16x256xf32>
    %32 = math.absf %31 : vector<16x256xf32>
    %cst_16 = arith.constant 0.327591091 : f32
    %33 = vector.broadcast %cst_16 : f32 to vector<16x256xf32>
    %34 = arith.mulf %33, %32 : vector<16x256xf32>
    %cst_17 = arith.constant 1.000000e+00 : f32
    %35 = vector.broadcast %cst_17 : f32 to vector<16x256xf32>
    %36 = arith.addf %35, %34 : vector<16x256xf32>
    %cst_18 = arith.constant 1.000000e+00 : f32
    %37 = vector.broadcast %cst_18 : f32 to vector<16x256xf32>
    %38 = arith.divf %37, %36 : vector<16x256xf32>
    %cst_19 = arith.constant 1.06140542 : f32
    %39 = vector.broadcast %cst_19 : f32 to vector<16x256xf32>
    %40 = arith.mulf %39, %38 : vector<16x256xf32>
    %cst_20 = arith.constant -1.45315206 : f32
    %41 = vector.broadcast %cst_20 : f32 to vector<16x256xf32>
    %42 = arith.addf %40, %41 : vector<16x256xf32>
    %43 = arith.mulf %42, %38 : vector<16x256xf32>
    %cst_21 = arith.constant 1.42141378 : f32
    %44 = vector.broadcast %cst_21 : f32 to vector<16x256xf32>
    %45 = arith.addf %43, %44 : vector<16x256xf32>
    %46 = arith.mulf %45, %38 : vector<16x256xf32>
    %cst_22 = arith.constant -0.284496725 : f32
    %47 = vector.broadcast %cst_22 : f32 to vector<16x256xf32>
    %48 = arith.addf %46, %47 : vector<16x256xf32>
    %49 = arith.mulf %48, %38 : vector<16x256xf32>
    %cst_23 = arith.constant 0.254829586 : f32
    %50 = vector.broadcast %cst_23 : f32 to vector<16x256xf32>
    %51 = arith.addf %49, %50 : vector<16x256xf32>
    %52 = arith.mulf %51, %38 : vector<16x256xf32>
    %cst_24 = arith.constant 0.000000e+00 : f32
    %53 = vector.broadcast %cst_24 : f32 to vector<16x256xf32>
    %54 = arith.subf %53, %32 : vector<16x256xf32>
    %55 = arith.mulf %54, %32 : vector<16x256xf32>
    %56 = math.exp %55 : vector<16x256xf32>
    %57 = arith.mulf %52, %56 : vector<16x256xf32>
    %cst_25 = arith.constant 1.000000e+00 : f32
    %58 = vector.broadcast %cst_25 : f32 to vector<16x256xf32>
    %59 = arith.subf %58, %57 : vector<16x256xf32>
    %cst_26 = arith.constant 0.000000e+00 : f32
    %60 = vector.broadcast %cst_26 : f32 to vector<16x256xf32>
    %61 = arith.cmpf olt, %31, %60 : vector<16x256xf32>
    %cst_27 = arith.constant 0.000000e+00 : f32
    %62 = vector.broadcast %cst_27 : f32 to vector<16x256xf32>
    %63 = arith.subf %62, %59 : vector<16x256xf32>
    %64 = arith.select %61, %63, %59 : vector<16x256xi1>, vector<16x256xf32>
    %cst_28 = arith.constant 1.000000e+00 : f32
    %65 = vector.broadcast %cst_28 : f32 to vector<16x256xf32>
    %66 = arith.addf %65, %64 : vector<16x256xf32>
    %67 = arith.mulf %29, %66 : vector<16x256xf32>
    %68 = arith.mulf %67, %25 : vector<16x256xf32>
    %c0_29 = arith.constant 0 : index
    %c0_30 = arith.constant 0 : index
    %69 = vector.load %arg5[%c0_29, %c0_30] : memref<256x128xf32, #tpu.memory_space<vmem>>, vector<256x128xf32>
    %cst_31 = arith.constant dense<0.000000e+00> : vector<16x128xf32>
    %70 = tpu.matmul %68, %69, %cst_31 {dimension_numbers = #tpu.dot_dimension_numbers<[1], [0], [0], [1], [0, 0, 1, 1], [], []>} : vector<16x256xf32>, vector<256x128xf32>, vector<16x128xf32> -> vector<16x128xf32>
    %71 = arith.addf %70, %0 : vector<16x128xf32>
    %c0_32 = arith.constant 0 : index
    %c0_33 = arith.constant 0 : index
    %72 = vector.load %arg6[%c0_32, %c0_33] : memref<16x128xf32, #tpu.memory_space<vmem>>, vector<16x128xf32>
    tpu.vector_store %arg6[%c0_32, %c0_33], %71 {strides = array<i32>} : memref<16x128xf32, #tpu.memory_space<vmem>>, vector<16x128xf32>,
    return
  }
  func.func @transform_0(%arg0: i32) -> (i32, i32) {
    %c0_i32 = arith.constant 0 : i32
    %c0_i32_0 = arith.constant 0 : i32
    return %arg0, %c0_i32 : i32, i32
  }
  func.func @transform_1(%arg0: i32) -> (i32, i32) {
    %c0_i32 = arith.constant 0 : i32
    %c0_i32_0 = arith.constant 0 : i32
    %c0_i32_1 = arith.constant 0 : i32
    return %c0_i32, %c0_i32_0 : i32, i32
  }
  func.func @transform_2(%arg0: i32) -> (i32, i32) {
    %c0_i32 = arith.constant 0 : i32
    %c0_i32_0 = arith.constant 0 : i32
    %c0_i32_1 = arith.constant 0 : i32
    return %c0_i32, %c0_i32_0 : i32, i32
  }
  func.func @transform_3(%arg0: i32) -> (i32, i32) {
    %c0_i32 = arith.constant 0 : i32
    %c0_i32_0 = arith.constant 0 : i32
    %c0_i32_1 = arith.constant 0 : i32
    return %c0_i32, %c0_i32_0 : i32, i32
  }
  func.func @transform_4(%arg0: i32) -> (i32, i32) {
    %c0_i32 = arith.constant 0 : i32
    %c0_i32_0 = arith.constant 0 : i32
    %c0_i32_1 = arith.constant 0 : i32
    return %c0_i32, %c0_i32_0 : i32, i32
  }
  func.func @transform_5(%arg0: i32) -> (i32, i32) {
    %c0_i32 = arith.constant 0 : i32
    %c0_i32_0 = arith.constant 0 : i32
    return %arg0, %c0_i32 : i32, i32
  }
}

module attributes {stable_mosaic.version = 11 : i64} {
  func.func @_ln_qkv_kernel(%arg0: i32, %arg1: memref<16x128xf32, #tpu.memory_space<vmem>>, %arg2: memref<1x128xf32, #tpu.memory_space<vmem>>, %arg3: memref<128x128xf32, #tpu.memory_space<vmem>>, %arg4: memref<128x128xf32, #tpu.memory_space<vmem>>, %arg5: memref<128x128xf32, #tpu.memory_space<vmem>>, %arg6: memref<16x128xf32, #tpu.memory_space<vmem>>, %arg7: memref<16x128xf32, #tpu.memory_space<vmem>>, %arg8: memref<16x128xf32, #tpu.memory_space<vmem>>) attributes {dimension_semantics = [#tpu.dimension_semantics<parallel>], iteration_bounds = array<i64: 1>, scalar_prefetch = 0 : i64, scratch_operands = 0 : i64, tpu.core_type = #tpu.core_type<tc>, window_params = [{transform_indices = @transform_0, window_bounds = array<i64: 16, 128>}, {pipeline_mode = #tpu.pipeline_mode<synchronous>, transform_indices = @transform_1, window_bounds = array<i64: 1, 128>}, {pipeline_mode = #tpu.pipeline_mode<synchronous>, transform_indices = @transform_2, window_bounds = array<i64: 128, 128>}, {pipeline_mode = #tpu.pipeline_mode<synchronous>, transform_indices = @transform_3, window_bounds = array<i64: 128, 128>}, {pipeline_mode = #tpu.pipeline_mode<synchronous>, transform_indices = @transform_4, window_bounds = array<i64: 128, 128>}, {transform_indices = @transform_5, window_bounds = array<i64: 16, 128>}, {transform_indices = @transform_6, window_bounds = array<i64: 16, 128>}, {transform_indices = @transform_7, window_bounds = array<i64: 16, 128>}]} {
    %c0 = arith.constant 0 : index
    %c0_0 = arith.constant 0 : index
    %0 = vector.load %arg1[%c0, %c0_0] : memref<16x128xf32, #tpu.memory_space<vmem>>, vector<16x128xf32>
    %c0_1 = arith.constant 0 : index
    %c0_2 = arith.constant 0 : index
    %1 = vector.load %arg2[%c0_1, %c0_2] : memref<1x128xf32, #tpu.memory_space<vmem>>, vector<1x128xf32>
    %cst = arith.constant dense<0.000000e+00> : vector<16xf32>
    %2 = vector.multi_reduction <add>, %0, %cst [1] : vector<16x128xf32> to vector<16xf32>
    %3 = vector.shape_cast %2 : vector<16xf32> to vector<16x1xf32>
    %4 = arith.mulf %0, %0 : vector<16x128xf32>
    %cst_3 = arith.constant dense<0.000000e+00> : vector<16xf32>
    %5 = vector.multi_reduction <add>, %4, %cst_3 [1] : vector<16x128xf32> to vector<16xf32>
    %6 = vector.shape_cast %5 : vector<16xf32> to vector<16x1xf32>
    %cst_4 = arith.constant 1.280000e+02 : f32
    %7 = vector.broadcast %cst_4 : f32 to vector<16x1xf32>
    %8 = arith.divf %3, %7 : vector<16x1xf32>
    %cst_5 = arith.constant 1.280000e+02 : f32
    %9 = vector.broadcast %cst_5 : f32 to vector<16x1xf32>
    %10 = arith.divf %6, %9 : vector<16x1xf32>
    %11 = arith.mulf %8, %8 : vector<16x1xf32>
    %12 = arith.subf %10, %11 : vector<16x1xf32>
    %cst_6 = arith.constant 0.000000e+00 : f32
    %13 = vector.broadcast %cst_6 : f32 to vector<16x1xf32>
    %14 = arith.maximumf %12, %13 : vector<16x1xf32>
    %15 = vector.broadcast %8 : vector<16x1xf32> to vector<16x128xf32>
    %16 = arith.subf %0, %15 : vector<16x128xf32>
    %cst_7 = arith.constant 9.99999974E-6 : f32
    %17 = vector.broadcast %cst_7 : f32 to vector<16x1xf32>
    %18 = arith.addf %14, %17 : vector<16x1xf32>
    %19 = math.rsqrt %18 : vector<16x1xf32>
    %20 = vector.broadcast %19 : vector<16x1xf32> to vector<16x128xf32>
    %21 = arith.mulf %16, %20 : vector<16x128xf32>
    %22 = vector.broadcast %1 : vector<1x128xf32> to vector<16x128xf32>
    %23 = arith.mulf %21, %22 : vector<16x128xf32>
    %c0_8 = arith.constant 0 : index
    %c0_9 = arith.constant 0 : index
    %24 = vector.load %arg3[%c0_8, %c0_9] : memref<128x128xf32, #tpu.memory_space<vmem>>, vector<128x128xf32>
    %cst_10 = arith.constant dense<0.000000e+00> : vector<16x128xf32>
    %25 = tpu.matmul %23, %24, %cst_10 {dimension_numbers = #tpu.dot_dimension_numbers<[1], [0], [0], [1], [0, 0, 1, 1], [], []>} : vector<16x128xf32>, vector<128x128xf32>, vector<16x128xf32> -> vector<16x128xf32>
    %c0_11 = arith.constant 0 : index
    %c0_12 = arith.constant 0 : index
    %26 = vector.load %arg6[%c0_11, %c0_12] : memref<16x128xf32, #tpu.memory_space<vmem>>, vector<16x128xf32>
    tpu.vector_store %arg6[%c0_11, %c0_12], %25 {strides = array<i32>} : memref<16x128xf32, #tpu.memory_space<vmem>>, vector<16x128xf32>,
    %c0_13 = arith.constant 0 : index
    %c0_14 = arith.constant 0 : index
    %27 = vector.load %arg4[%c0_13, %c0_14] : memref<128x128xf32, #tpu.memory_space<vmem>>, vector<128x128xf32>
    %cst_15 = arith.constant dense<0.000000e+00> : vector<16x128xf32>
    %28 = tpu.matmul %23, %27, %cst_15 {dimension_numbers = #tpu.dot_dimension_numbers<[1], [0], [0], [1], [0, 0, 1, 1], [], []>} : vector<16x128xf32>, vector<128x128xf32>, vector<16x128xf32> -> vector<16x128xf32>
    %c0_16 = arith.constant 0 : index
    %c0_17 = arith.constant 0 : index
    %29 = vector.load %arg7[%c0_16, %c0_17] : memref<16x128xf32, #tpu.memory_space<vmem>>, vector<16x128xf32>
    tpu.vector_store %arg7[%c0_16, %c0_17], %28 {strides = array<i32>} : memref<16x128xf32, #tpu.memory_space<vmem>>, vector<16x128xf32>,
    %c0_18 = arith.constant 0 : index
    %c0_19 = arith.constant 0 : index
    %30 = vector.load %arg5[%c0_18, %c0_19] : memref<128x128xf32, #tpu.memory_space<vmem>>, vector<128x128xf32>
    %cst_20 = arith.constant dense<0.000000e+00> : vector<16x128xf32>
    %31 = tpu.matmul %23, %30, %cst_20 {dimension_numbers = #tpu.dot_dimension_numbers<[1], [0], [0], [1], [0, 0, 1, 1], [], []>} : vector<16x128xf32>, vector<128x128xf32>, vector<16x128xf32> -> vector<16x128xf32>
    %c0_21 = arith.constant 0 : index
    %c0_22 = arith.constant 0 : index
    %32 = vector.load %arg8[%c0_21, %c0_22] : memref<16x128xf32, #tpu.memory_space<vmem>>, vector<16x128xf32>
    tpu.vector_store %arg8[%c0_21, %c0_22], %31 {strides = array<i32>} : memref<16x128xf32, #tpu.memory_space<vmem>>, vector<16x128xf32>,
    return
  }
  func.func @transform_0(%arg0: i32) -> (i32, i32) {
    %c0_i32 = arith.constant 0 : i32
    %c0_i32_0 = arith.constant 0 : i32
    return %arg0, %c0_i32 : i32, i32
  }
  func.func @transform_1(%arg0: i32) -> (i32, i32) {
    %c0_i32 = arith.constant 0 : i32
    %c0_i32_0 = arith.constant 0 : i32
    %c0_i32_1 = arith.constant 0 : i32
    return %c0_i32, %c0_i32_0 : i32, i32
  }
  func.func @transform_2(%arg0: i32) -> (i32, i32) {
    %c0_i32 = arith.constant 0 : i32
    %c0_i32_0 = arith.constant 0 : i32
    %c0_i32_1 = arith.constant 0 : i32
    return %c0_i32, %c0_i32_0 : i32, i32
  }
  func.func @transform_3(%arg0: i32) -> (i32, i32) {
    %c0_i32 = arith.constant 0 : i32
    %c0_i32_0 = arith.constant 0 : i32
    %c0_i32_1 = arith.constant 0 : i32
    return %c0_i32, %c0_i32_0 : i32, i32
  }
  func.func @transform_4(%arg0: i32) -> (i32, i32) {
    %c0_i32 = arith.constant 0 : i32
    %c0_i32_0 = arith.constant 0 : i32
    %c0_i32_1 = arith.constant 0 : i32
    return %c0_i32, %c0_i32_0 : i32, i32
  }
  func.func @transform_5(%arg0: i32) -> (i32, i32) {
    %c0_i32 = arith.constant 0 : i32
    %c0_i32_0 = arith.constant 0 : i32
    return %arg0, %c0_i32 : i32, i32
  }
  func.func @transform_6(%arg0: i32) -> (i32, i32) {
    %c0_i32 = arith.constant 0 : i32
    %c0_i32_0 = arith.constant 0 : i32
    return %arg0, %c0_i32 : i32, i32
  }
  func.func @transform_7(%arg0: i32) -> (i32, i32) {
    %c0_i32 = arith.constant 0 : i32
    %c0_i32_0 = arith.constant 0 : i32
    return %arg0, %c0_i32 : i32, i32
  }
}

</mosaic_0001>

<bundles_post_ra>
// kernel: transformer_forward.9
= control target key start
LH: loop header
LB: loop body
LE: loop exit
PB: predicated region body
PF: predicated region fallthrough
CT: control target
= control target key end

     0   :  { %s523_s18 = smov 0   ;;  %s566_s0 = inlined_call_operand.vmem [shape: f32[8,8,32], index: 0, kind: input, shape index: {}]   ;;  %s567_s1 = inlined_call_operand.vmem [shape: f32[8,8,32], index: 1, kind: input, shape index: {}]   ;;  %s568_s2 = inlined_call_operand.vmem [shape: f32[8,8,32], index: 2, kind: input, shape index: {}]   ;;  %s569_s3 = inlined_call_operand.vmem [shape: f32[1,32], index: 3, kind: input, shape index: {}]   ;;  %s570_s4 = inlined_call_operand.vmem [shape: f32[1,32], index: 4, kind: input, shape index: {}]   ;;  %s571_s5 = inlined_call_operand.vmem [shape: f32[8,8,32], index: 5, kind: output, shape index: {}]  }
   0x1 LB: > { %s453_s19 = sadd.s32 4294967295, %s491_s18   ;;  %p457_p0 = scmp.ge.s32.totalorder %s491_s18, 1  ;;  %s491_s18 = sphi %s523_s18, %s15_s18  }
   0x2   : > { %p204_p1 = scmp.lt.s32.totalorder %s491_s18, 9 }
   0x4   : > { %p205_p2 = pnand %p457_p0, %p204_p1 }
   0x5   : > { %p238_p3 = scmp.lt.s32.totalorder (!%p205_p2), %s453_s19, 7 }
   0x6   : > { %208 = sbr.rel (%p205_p2) target bundleno = 685 (0x2ad), region = 40 }
   0xb   : > { %s573_s19 = smov (!%p238_p3, %s453_s19), 7  ;;  %vm258_vm0 = vcmask 261120   ;;  %v475_v18 = vld [vmem:[%s570_s4] ss:$0 sm:$0xff]  ;;  %vm327_vm7 = vcmask 64512  }
   0xc   : > { %s531_s20 = sshll.u32 %s573_s19, 3  ;;  %v476_v26 = vld [vmem:[%s569_s3] ss:$0 sm:$0xff] }
   0xd   : > { %s245_s23 = scalar_lea.vmem %s567_s1, %s531_s20  ;;  %s241_s26 = scalar_lea.vmem %s566_s0, %s531_s20 }
   0xe   : > { %v255_v0 = vld [vmem:[%s245_s23] sm:$0xff]  ;;  %s249_s8 = scalar_lea.vmem %s568_s2, %s531_s20  ;;  %s253_s11 = scalar_lea.vmem %s571_s5, %s531_s20 }
   0xf   : > { %v274_v1 = vmul.f32 %v255_v0, %v255_v0  ;;  %v254_v2 = vld [vmem:[%s241_s26] sm:$0xff] }
  0x10   : > { %v257_v4 = vmul.f32 %v254_v2, %v254_v2  ;;  %v256_v38 = vld [vmem:[%s249_s8] sm:$0xff] }
  0x11   : > { %v275_v3 = vsel %vm258_vm0, %v274_v1, 0.0  ;;  %370 = vmatpush.msra.mxu1 %v256_v38 }
  0x12   : > { %276 = vadd.xlane.f32.xlu0 %v275_v3  ;;  %v259_v5 = vsel %vm258_vm0, %v257_v4, 0.0 }
  0x1a   : > { %260 = vadd.xlane.f32.xlu0 %v259_v5 }
  0x85   : > { %v277_v6 = vpop.xlane.xlu0 %276 }
  0x86   : > { %v278_v7 = vadd.f32 1e-12, %v277_v6 }
  0x88   : > { %477 = vrsqrt.f32 %v278_v7  ;;  %vm285_vm2 = vweird.f32 %v278_v7 }
  0x8d   : > { %v261_v8 = vpop.xlane.xlu0 %260 }
  0x8e   : > { %v478_v9 = vpop.eup %477  ;;  %v262_v10 = vadd.f32 1e-12, %v261_v8 }
  0x8f   : > { %v280_v11 = vmul.f32 %v478_v9, %v278_v7  ;;  %vm286_vm1 = vweird.f32 %v478_v9 }
  0x90   : > { %479 = vrsqrt.f32 %v262_v10  ;;  %vm287_vm3 = vmor %vm285_vm2, %vm286_vm1  ;;  %vm269_vm5 = vweird.f32 %v262_v10 }
  0x91   : > { %v281_v12 = vmul.f32 %v478_v9, %v280_v11 }
  0x93   : > { %v282_v13 = vmul.f32 0.5, %v281_v12 }
  0x95   : > { %v283_v14 = vsub.f32 1.5, %v282_v13 }
  0x96   : > { %v480_v15 = vpop.eup %479 }
  0x97   : > { %v264_v16 = vmul.f32 %v480_v15, %v262_v10  ;;  %v284_v17 = vmul.f32 %v478_v9, %v283_v14  ;;  %vm270_vm4 = vweird.f32 %v480_v15 }
  0x98   : > { %vm271_vm6 = vmor %vm269_vm5, %vm270_vm4 }
  0x99   : > { %v265_v19 = vmul.f32 %v480_v15, %v264_v16  ;;  %v288_v20 = vsel %vm287_vm3, %v478_v9, %v284_v17 }
  0x9a   : > { %v289_v21 = vmul.f32 %v288_v20, %v255_v0 }
  0x9b   : > { %v266_v22 = vmul.f32 0.5, %v265_v19 }
  0x9c   : > { %v299_v23 = vmul.f32 %v475_v18, %v289_v21 }
  0x9d   : > { %v267_v24 = vsub.f32 1.5, %v266_v22 }
  0x9e   : > { %462 = vmatpush.xpose.msk.msra.mxu0 %vm258_vm0, %v299_v23 }
  0x9f   : > { %v268_v25 = vmul.f32 %v480_v15, %v267_v24 }
  0xa1   : > { %v272_v27 = vsel %vm271_vm6, %v480_v15, %v268_v25 }
  0xa2   : > { %v273_v28 = vmul.f32 %v272_v27, %v254_v2 }
  0xa4   : > { %v294_v29 = vmul.f32 %v476_v26, %v273_v28 }
  0xa6   : > { %463 = vmatmul.msk.f32.vlgmr.msra.gmra.mxu0 %vm258_vm0, %v294_v29 }
 0x123   : > { %v323_v30 = vpop.f32.mrf.mxu0 }
 0x124   : > { %v326_v31 = vmul.f32 8.0, %v323_v30 }
 0x126   : > { %v328_v32 = vsel %vm327_vm7, %v326_v31, -inf }
 0x127   : > { %329 = vmax.xlane.f32.xlu1 %v328_v32 }
 0x19a   : > { %v330_v33 = vpop.xlane.xlu1 %329 }
 0x19b   : > { %v331_v34 = vsub.f32 %v326_v31, %v330_v33 }
 0x19d   : > { %v332_v35 = vmul.f32 1.442695, %v331_v34 }
 0x19f   : > { %481 = vpow2.f32 %v332_v35 }
 0x1a5   : > { %v482_v36 = vpop.eup %481 }
 0x1a6   : > { %v334_v37 = vsel %vm327_vm7, %v482_v36, 0.0 }
 0x1a7   : > { %335 = vadd.xlane.f32.xlu1 %v334_v37 }
 0x21a   : > { %v336_v39 = vpop.xlane.xlu1 %335 }
 0x21b   : > { %483 = vrcp.f32 %v336_v39  ;;  %v348_v43 = vand.u32 2147483648, %v336_v39  ;;  %v346_v45 = vand.u32 2147483647, %v336_v39  ;;  %vm342_vm9 = vweird.f32 %v336_v39 }
 0x21d   : > { %v349_v47 = vor.u32 1.1754944e-38, %v348_v43  ;;  %vm347_vm11 = vcmp.eq.f32.partialorder %v346_v45, 8.507059e+37 }
 0x221   : > { %v484_v40 = vpop.eup %483 }
 0x222   : > { %v338_v41 = vmul.f32 %v484_v40, %v336_v39  ;;  %vm343_vm8 = vweird.f32 %v484_v40 }
 0x223   : > { %vm344_vm10 = vmor %vm342_vm9, %vm343_vm8 }
 0x224   : > { %v339_v42 = vsub.f32 1.0, %v338_v41 }
 0x226   : > { %v340_v44 = vmul.f32 %v484_v40, %v339_v42 }
 0x228   : > { %v341_v46 = vadd.f32 %v484_v40, %v340_v44 }
 0x22a   : > { %v345_v48 = vsel %vm344_vm10, %v484_v40, %v341_v46 }
 0x22b   : > { %v350_v49 = vsel %vm347_vm11, %v349_v47, %v345_v48 }
 0x22c   : > { %v351_v50 = vmul.f32 %v482_v36, %v350_v49 }
 0x22e   : > { %464 = vmatmul.msk.f32.vlgmr.msra.gmra.mxu1 %vm327_vm7, %v351_v50 }
 0x2ab   : > { %v372_v51 = vpop.f32.mrf.mxu1 }
 0x2ac   : > { %375 = vst.msk [vmem:[%s253_s11] sm:$0xff] %vm258_vm0, %v372_v51 }
 0x2ad PF: > { %s15_s18 = sadd.s32 1, %s491_s18  }
 0x2ae   : > { %p12_p4 = scmp.ge.s32.totalorder %s15_s18, 10  }
 0x2b0   :  { %14 = sbr.rel (!%p12_p4) target bundleno = 1 (0x1), region = 76 }

// kernel: transformer_forward.8
= control target key start
LH: loop header
LB: loop body
LE: loop exit
PB: predicated region body
PF: predicated region fallthrough
CT: control target
= control target key end

     0   :  { %13 = vsyncpa [#allocation3], 0  ;;  %s516_s0 = inlined_call_operand.hbm [shape: f32[16,128], index: 0, kind: input, shape index: {}]   ;;  %s517_s1 = inlined_call_operand.vmem [shape: f32[1,128], index: 1, kind: input, shape index: {}]   ;;  %s518_s2 = inlined_call_operand.hbm [shape: f32[128,128], index: 2, kind: input, shape index: {}]   ;;  %s519_s3 = inlined_call_operand.hbm [shape: f32[128,128], index: 3, kind: input, shape index: {}]   ;;  %s520_s4 = inlined_call_operand.hbm [shape: f32[128,128], index: 4, kind: input, shape index: {}]   ;;  %s521_s5 = inlined_call_operand.vmem [shape: f32[16,128], index: 5, kind: output, shape index: {0}]   ;;  %s522_s6 = inlined_call_operand.vmem [shape: f32[16,128], index: 6, kind: output, shape index: {1}]   ;;  %s523_s7 = inlined_call_operand.vmem [shape: f32[16,128], index: 7, kind: output, shape index: {2}]  }
   0x1   :  { %14 = vsyncpa [#allocation5], 0 }
   0x2   :  { %15 = vsyncpa [#allocation8], 0  ;;  %s35_s26 = sshll.u32 %s518_s2, 4  ;;  %s417_s27 = smov [#allocation4]   ;;  %s36_s26 = int_to_ptr.hbm [resolvable:$true] %s35_s26 }
   0x3   :  { %s37_s28 = sshll.u32 %s417_s27, 4  ;;  %s20_s8 = sshll.u32 %s516_s0, 4  ;;  %s38_s28 = int_to_ptr.vmem [resolvable:$true] %s37_s28  ;;  %s21_s8 = int_to_ptr.hbm [resolvable:$true] %s20_s8 }
   0x4   :  { %s418_s9 = smov 128   ;;  %s419_s10 = smov 8  }
   0x5   :  { %43 = dma.hbm_to_vmem [thread:$0]  %s36_s26, 2048, %s38_s28, [#allocation5], %s418_s9, %s418_s9, %s419_s10  }
   0x6   :  { %s420_s11 = smov [#allocation2]   ;;  %s48_s15 = sshll.u32 %s519_s3, 4  ;;  %s49_s15 = int_to_ptr.hbm [resolvable:$true] %s48_s15 }
   0x7   :  { %s22_s12 = sshll.u32 %s420_s11, 4  ;;  %s61_s17 = sshll.u32 %s520_s4, 4  ;;  %s23_s12 = int_to_ptr.vmem [resolvable:$true] %s22_s12  ;;  %s62_s17 = int_to_ptr.hbm [resolvable:$true] %s61_s17 }
   0x8   :  { %28 = dma.hbm_to_vmem [thread:$0]  %s21_s8, 256, %s23_s12, [#allocation3], %s418_s9, %s418_s9, %s419_s10  }
   0x9   :  { %s421_s18 = smov [#allocation6]   ;;  %s422_s0 = smov [#allocation7]  }
   0xa   :  { %s50_s19 = sshll.u32 %s421_s18, 4  ;;  %s63_s20 = sshll.u32 %s422_s0, 4  ;;  %s51_s19 = int_to_ptr.vmem [resolvable:$true] %s50_s19  ;;  %s64_s20 = int_to_ptr.vmem [resolvable:$true] %s63_s20 }
   0xb   :  { %56 = dma.hbm_to_vmem [thread:$0]  %s49_s15, 2048, %s51_s19, [#allocation5], %s418_s9, %s418_s9, %s419_s10  }
   0xc   :  { %69 = dma.hbm_to_vmem [thread:$0]  %s62_s17, 2048, %s64_s20, [#allocation8], %s418_s9, %s418_s9, %s419_s10  }
   0xd   :  { %411 = dma.done.wait [#allocation3], 256  }
   0xe   :  { %412 = vsyncadd [#allocation3], 4294967040 }
   0xf   :  { %413 = dma.done.wait [#allocation5], 4096  }
  0x10   :  { %414 = vsyncadd [#allocation5], 4294963200 }
  0x11   :  { %415 = dma.done.wait [#allocation8], 2048  }
  0x12   :  { %416 = vsyncadd [#allocation8], 4294965248  ;;  %v476_v0 = vld [vmem:[#allocation2 + $0x8] sm:$0xff]  ;;  %v478_v1 = vld [vmem:[#allocation2] sm:$0xff]  ;;  %v423_v7 = vmov 128.0  }
  0x13   :  { %91 = vadd.xlane.f32.xlu1 %v476_v0  ;;  %89 = vadd.xlane.f32.xlu0 %v478_v1  ;;  %v94_v2 = vmul.f32 %v476_v0, %v476_v0  ;;  %v93_v3 = vmul.f32 %v478_v1, %v478_v1  ;;  %v162_v4 = vld [vmem:[#allocation4 + $0x78] sm:$0xff]  ;;  %309 = vrcp.f32 %v423_v7  ;;  %v161_v8 = vld [vmem:[#allocation4 + $0x70] sm:$0xff]  ;;  %v160_v11 = vld [vmem:[#allocation4 + $0x68] sm:$0xff] }
  0x14   :  { %v203_v5 = vld [vmem:[#allocation6 + $0x78] sm:$0xff]  ;;  %163 = vmatpush.msra.mxu0 %v162_v4  ;;  %285 = vmatpush.msra.mxu3 %v162_v4  ;;  %v202_v9 = vld [vmem:[#allocation6 + $0x70] sm:$0xff]  ;;  %v201_v12 = vld [vmem:[#allocation6 + $0x68] sm:$0xff] }
  0x15   :  { %v244_v6 = vld [vmem:[#allocation7 + $0x78] sm:$0xff]  ;;  %204 = vmatpush.msra.mxu1 %v203_v5  ;;  %v243_v10 = vld [vmem:[#allocation7 + $0x70] sm:$0xff]  ;;  %v242_v13 = vld [vmem:[#allocation7 + $0x68] sm:$0xff] }
  0x16   :  { %245 = vmatpush.msra.mxu2 %v244_v6  ;;  %164 = vmatpush.msra.mxu0 %v161_v8  ;;  %v159_v14 = vld [vmem:[#allocation4 + $0x60] sm:$0xff]  ;;  %v158_v18 = vld [vmem:[#allocation4 + $0x58] sm:$0xff]  ;;  %v157_v22 = vld [vmem:[#allocation4 + $0x50] sm:$0xff] }
  0x17   :  { %286 = vmatpush.msra.mxu3 %v161_v8  ;;  %205 = vmatpush.msra.mxu1 %v202_v9  ;;  %v200_v15 = vld [vmem:[#allocation6 + $0x60] sm:$0xff]  ;;  %v199_v19 = vld [vmem:[#allocation6 + $0x58] sm:$0xff]  ;;  %v198_v23 = vld [vmem:[#allocation6 + $0x50] sm:$0xff] }
  0x18   :  { %246 = vmatpush.msra.mxu2 %v243_v10  ;;  %165 = vmatpush.msra.mxu0 %v160_v11  ;;  %v241_v16 = vld [vmem:[#allocation7 + $0x60] sm:$0xff]  ;;  %v240_v20 = vld [vmem:[#allocation7 + $0x58] sm:$0xff]  ;;  %v239_v24 = vld [vmem:[#allocation7 + $0x50] sm:$0xff] }
  0x19   :  { %287 = vmatpush.msra.mxu3 %v160_v11  ;;  %206 = vmatpush.msra.mxu1 %v201_v12  ;;  %v486_v17 = vpop.eup %309  ;;  %v156_v25 = vld [vmem:[#allocation4 + $0x48] sm:$0xff]  ;;  %v155_v29 = vld [vmem:[#allocation4 + $0x40] sm:$0xff]  ;;  %v154_v32 = vld [vmem:[#allocation4 + $0x38] sm:$0xff] }
  0x1a   :  { %247 = vmatpush.msra.mxu2 %v242_v13  ;;  %166 = vmatpush.msra.mxu0 %v159_v14  ;;  %v100_v21 = vmul.f32 128.0, %v486_v17  ;;  %v197_v26 = vld [vmem:[#allocation6 + $0x48] sm:$0xff]  ;;  %v196_v30 = vld [vmem:[#allocation6 + $0x40] sm:$0xff]  ;;  %v195_v33 = vld [vmem:[#allocation6 + $0x38] sm:$0xff]  ;;  %vm104_vm0 = vweird.f32 %v486_v17 }
  0x1b   :  { %97 = vadd.xlane.f32.xlu1 %v94_v2  ;;  %95 = vadd.xlane.f32.xlu0 %v93_v3  ;;  %v238_v27 = vld [vmem:[#allocation7 + $0x48] sm:$0xff]  ;;  %v237_v31 = vld [vmem:[#allocation7 + $0x40] sm:$0xff]  ;;  %v236_v34 = vld [vmem:[#allocation7 + $0x38] sm:$0xff] }
  0x1c   :  { %288 = vmatpush.msra.mxu3 %v159_v14  ;;  %207 = vmatpush.msra.mxu1 %v200_v15  ;;  %v101_v28 = vsub.f32 1.0, %v100_v21  ;;  %v153_v36 = vld [vmem:[#allocation4 + $0x30] sm:$0xff]  ;;  %v152_v39 = vld [vmem:[#allocation4 + $0x28] sm:$0xff]  ;;  %v151_v43 = vld [vmem:[#allocation4 + $0x20] sm:$0xff] }
  0x1d   :  { %248 = vmatpush.msra.mxu2 %v241_v16  ;;  %167 = vmatpush.msra.mxu0 %v158_v18  ;;  %v194_v37 = vld [vmem:[#allocation6 + $0x30] sm:$0xff]  ;;  %v193_v40 = vld [vmem:[#allocation6 + $0x28] sm:$0xff]  ;;  %v192_v44 = vld [vmem:[#allocation6 + $0x20] sm:$0xff] }
  0x1e   :  { %289 = vmatpush.msra.mxu3 %v158_v18  ;;  %208 = vmatpush.msra.mxu1 %v199_v19  ;;  %v102_v35 = vmul.f32 %v486_v17, %v101_v28  ;;  %v235_v38 = vld [vmem:[#allocation7 + $0x30] sm:$0xff]  ;;  %v234_v41 = vld [vmem:[#allocation7 + $0x28] sm:$0xff]  ;;  %v233_v45 = vld [vmem:[#allocation7 + $0x20] sm:$0xff] }
  0x1f   :  { %249 = vmatpush.msra.mxu2 %v240_v20  ;;  %168 = vmatpush.msra.mxu0 %v157_v22  ;;  %v150_v46 = vld [vmem:[#allocation4 + $0x18] sm:$0xff]  ;;  %v149_v51 = vld [vmem:[#allocation4 + $0x10] sm:$0xff]  ;;  %v148_v55 = vld [vmem:[#allocation4 + $0x8] sm:$0xff] }
  0x20   :  { %290 = vmatpush.msra.mxu3 %v157_v22  ;;  %209 = vmatpush.msra.mxu1 %v198_v23  ;;  %v103_v42 = vadd.f32 %v486_v17, %v102_v35  ;;  %v191_v47 = vld [vmem:[#allocation6 + $0x18] sm:$0xff]  ;;  %v190_v52 = vld [vmem:[#allocation6 + $0x10] sm:$0xff]  ;;  %v189_v57 = vld [vmem:[#allocation6 + $0x8] sm:$0xff] }
  0x21   :  { %250 = vmatpush.msra.mxu2 %v239_v24  ;;  %169 = vmatpush.msra.mxu0 %v156_v25  ;;  %v232_v48 = vld [vmem:[#allocation7 + $0x18] sm:$0xff]  ;;  %v231_v54 = vld [vmem:[#allocation7 + $0x10] sm:$0xff]  ;;  %v230_v58 = vld [vmem:[#allocation7 + $0x8] sm:$0xff] }
  0x22   :  { %291 = vmatpush.msra.mxu3 %v156_v25  ;;  %210 = vmatpush.msra.mxu1 %v197_v26  ;;  %v105_v53 = vsel %vm104_vm0, %v486_v17, %v103_v42  ;;  %v147_v59 = vld [vmem:[#allocation4] sm:$0xff]  ;;  %v308_v26 = vld [vmem:[%s517_s1] ss:$0 sm:$0xff] }
  0x23   :  { %251 = vmatpush.msra.mxu2 %v238_v27  ;;  %170 = vmatpush.msra.mxu0 %v155_v29  ;;  %v188_v61 = vld [vmem:[#allocation6] sm:$0xff] }
  0x24   :  { %292 = vmatpush.msra.mxu3 %v155_v29  ;;  %211 = vmatpush.msra.mxu1 %v196_v30  ;;  %v229_v62 = vld [vmem:[#allocation7] sm:$0xff] }
  0x25   :  { %252 = vmatpush.msra.mxu2 %v237_v31  ;;  %171 = vmatpush.msra.mxu0 %v154_v32 }
  0x26   :  { %293 = vmatpush.msra.mxu3 %v154_v32  ;;  %212 = vmatpush.msra.mxu1 %v195_v33 }
  0x27   :  { %253 = vmatpush.msra.mxu2 %v236_v34  ;;  %172 = vmatpush.msra.mxu0 %v153_v36 }
  0x28   :  { %294 = vmatpush.msra.mxu3 %v153_v36  ;;  %213 = vmatpush.msra.mxu1 %v194_v37 }
  0x29   :  { %254 = vmatpush.msra.mxu2 %v235_v38  ;;  %173 = vmatpush.msra.mxu0 %v152_v39 }
  0x2a   :  { %295 = vmatpush.msra.mxu3 %v152_v39  ;;  %214 = vmatpush.msra.mxu1 %v193_v40 }
  0x2b   :  { %255 = vmatpush.msra.mxu2 %v234_v41  ;;  %174 = vmatpush.msra.mxu0 %v151_v43 }
  0x2c   :  { %296 = vmatpush.msra.mxu3 %v151_v43  ;;  %215 = vmatpush.msra.mxu1 %v192_v44 }
  0x2d   :  { %256 = vmatpush.msra.mxu2 %v233_v45  ;;  %175 = vmatpush.msra.mxu0 %v150_v46 }
  0x2e   :  { %297 = vmatpush.msra.mxu3 %v150_v46  ;;  %216 = vmatpush.msra.mxu1 %v191_v47 }
  0x2f   :  { %257 = vmatpush.msra.mxu2 %v232_v48  ;;  %176 = vmatpush.msra.mxu0 %v149_v51 }
  0x30   :  { %298 = vmatpush.msra.mxu3 %v149_v51  ;;  %217 = vmatpush.msra.mxu1 %v190_v52 }
  0x31   :  { %258 = vmatpush.msra.mxu2 %v231_v54  ;;  %177 = vmatpush.msra.mxu0 %v148_v55 }
  0x32   :  { %299 = vmatpush.msra.mxu3 %v148_v55  ;;  %218 = vmatpush.msra.mxu1 %v189_v57 }
  0x33   :  { %259 = vmatpush.msra.mxu2 %v230_v58  ;;  %178 = vmatpush.msra.mxu0 %v147_v59 }
  0x34   :  { %300 = vmatpush.msra.mxu3 %v147_v59  ;;  %219 = vmatpush.msra.mxu1 %v188_v61 }
  0x35   :  { %260 = vmatpush.msra.mxu2 %v229_v62 }
  0x86   :  { %v92_v49 = vpop.xlane.xlu1 %91  ;;  %v90_v50 = vpop.xlane.xlu0 %89 }
  0x87   :  { %v107_v56 = vmul.f32 %v105_v53, %v92_v49  ;;  %v106_v60 = vmul.f32 %v105_v53, %v90_v50 }
  0x89   :  { %v111_v63 = vmul.f32 %v107_v56, %v107_v56  ;;  %v110_v4 = vmul.f32 %v106_v60, %v106_v60  ;;  %v117_v24 = vsub.f32 %v476_v0, %v107_v56  ;;  %v116_v27 = vsub.f32 %v478_v1, %v106_v60 }
  0x8e   :  { %v98_v2 = vpop.xlane.xlu1 %97  ;;  %v96_v3 = vpop.xlane.xlu0 %95 }
  0x8f   :  { %v109_v5 = vmul.f32 %v105_v53, %v98_v2  ;;  %v108_v6 = vmul.f32 %v105_v53, %v96_v3 }
  0x91   :  { %v113_v7 = vsub.f32 %v109_v5, %v111_v63  ;;  %v112_v8 = vsub.f32 %v108_v6, %v110_v4 }
  0x93   :  { %v115_v9 = vmax.f32 %v113_v7, 0.0  ;;  %v114_v10 = vmax.f32 %v112_v8, 0.0 }
  0x95   :  { %v119_v11 = vadd.f32 1e-05, %v115_v9  ;;  %v118_v12 = vadd.f32 1e-05, %v114_v10 }
  0x97   :  { %311 = vrsqrt.f32 %v119_v11  ;;  %vm136_vm3 = vweird.f32 %v119_v11  ;;  %vm126_vm5 = vweird.f32 %v118_v12 }
  0x98   :  { %313 = vrsqrt.f32 %v118_v12 }
  0x9d   :  { %v312_v13 = vpop.eup %311 }
  0x9e   :  { %v314_v14 = vpop.eup %313  ;;  %v131_v15 = vmul.f32 %v312_v13, %v119_v11  ;;  %vm137_vm1 = vweird.f32 %v312_v13 }
  0x9f   :  { %v121_v16 = vmul.f32 %v314_v14, %v118_v12  ;;  %vm127_vm2 = vweird.f32 %v314_v14  ;;  %vm138_vm4 = vmor %vm136_vm3, %vm137_vm1 }
  0xa0   :  { %v132_v17 = vmul.f32 %v312_v13, %v131_v15  ;;  %vm128_vm6 = vmor %vm126_vm5, %vm127_vm2 }
  0xa1   :  { %v122_v18 = vmul.f32 %v314_v14, %v121_v16 }
  0xa2   :  { %v133_v19 = vmul.f32 0.5, %v132_v17 }
  0xa3   :  { %v123_v20 = vmul.f32 0.5, %v122_v18 }
  0xa4   :  { %v134_v21 = vsub.f32 1.5, %v133_v19 }
  0xa5   :  { %v124_v22 = vsub.f32 1.5, %v123_v20 }
  0xa6   :  { %v135_v23 = vmul.f32 %v312_v13, %v134_v21 }
  0xa7   :  { %v125_v25 = vmul.f32 %v314_v14, %v124_v22 }
  0xa8   :  { %v139_v28 = vsel %vm138_vm4, %v312_v13, %v135_v23 }
  0xa9   :  { %v129_v29 = vsel %vm128_vm6, %v314_v14, %v125_v25  ;;  %v141_v30 = vmul.f32 %v139_v28, %v117_v24 }
  0xaa   :  { %v140_v31 = vmul.f32 %v129_v29, %v116_v27 }
  0xab   :  { %v146_v32 = vmul.f32 %v308_v26, %v141_v30 }
  0xac   :  { %v145_v33 = vmul.f32 %v308_v26, %v140_v31 }
  0xad   :  { %182 = vmatmul.f32.vlgmr.msra.gmra.mxu3 %v146_v32 }
  0xae   :  { %179 = vmatmul.f32.vlgmr.msra.gmra.mxu0 %v145_v33  ;;  %220 = vmatmul.f32.vlgmr.msra.gmra.mxu1 %v145_v33 }
  0xaf   :  { %261 = vmatmul.f32.vlgmr.msra.gmra.mxu2 %v145_v33 }
  0xb6   :  { %223 = vmatmul.f32.gmra.mxu1 %v146_v32 }
  0xb7   :  { %264 = vmatmul.f32.gmra.mxu2 %v146_v32 }
 0x12b   :  { %v180_v0 = vpop.f32.mrf.mxu0  ;;  %v221_v34 = vpop.f32.mrf.mxu1 }
 0x12c   :  { %186 = vst [vmem:[%s521_s5] sm:$0xff] %v180_v0 }
 0x12d   :  { %227 = vst [vmem:[%s522_s6] sm:$0xff] %v221_v34 }
 0x130   :  { %v183_v1 = vpop.f32.mrf.mxu3 }
 0x131   :  { %187 = vst [vmem:[%s521_s5 + $0x8] sm:$0xff] %v183_v1 }
 0x132   :  { %v262_v35 = vpop.f32.mrf.mxu2 }
 0x133   :  { %268 = vst [vmem:[%s523_s7] sm:$0xff] %v262_v35  ;;  %v224_v36 = vpop.f32.mrf.mxu1 }
 0x134   :  { %228 = vst [vmem:[%s522_s6 + $0x8] sm:$0xff] %v224_v36 }
 0x13a   :  { %v265_v37 = vpop.f32.mrf.mxu2 }
 0x13b   :  { %269 = vst [vmem:[%s523_s7 + $0x8] sm:$0xff] %v265_v37 }
 0x13c   :  { %282 = vsyncpa [#allocation3], 1 }
 0x13d   :  { %283 = vsyncpa [#allocation5], 1 }
 0x13e   :  { %284 = vsyncpa [#allocation8], 1 }

// kernel: transformer_forward.10
= control target key start
LH: loop header
LB: loop body
LE: loop exit
PB: predicated region body
PF: predicated region fallthrough
CT: control target
= control target key end

     0   :  { %8 = vsyncpa [#allocation3], 0  ;;  %s125_s15 = smov [#allocation2]   ;;  %s126_s17 = smov 128   ;;  %s169_s0 = inlined_call_operand.vmem [shape: f32[16,128], index: 0, kind: input, shape index: {}]   ;;  %s170_s1 = inlined_call_operand.hbm [shape: f32[128,128], index: 1, kind: input, shape index: {}]   ;;  %s171_s2 = inlined_call_operand.vmem [shape: f32[16,128], index: 2, kind: input, shape index: {}]   ;;  %s172_s3 = inlined_call_operand.vmem [shape: f32[16,128], index: 3, kind: output, shape index: {}]  }
   0x1   :  { %s15_s14 = sshll.u32 %s170_s1, 4  ;;  %s17_s16 = sshll.u32 %s125_s15, 4  ;;  %s16_s14 = int_to_ptr.hbm [resolvable:$true] %s15_s14  ;;  %s18_s16 = int_to_ptr.vmem [resolvable:$true] %s17_s16 }
   0x2   :  { %s127_s18 = smov 8  }
   0x3   :  { %23 = dma.hbm_to_vmem [thread:$0]  %s16_s14, 2048, %s18_s16, [#allocation3], %s126_s17, %s126_s17, %s127_s18  }
   0x4   :  { %123 = dma.done.wait [#allocation3], 2048  }
   0x5   :  { %124 = vsyncadd [#allocation3], 4294965248  ;;  %v47_v0 = vld [vmem:[#allocation2 + $0x78] sm:$0xff]  ;;  %v46_v1 = vld [vmem:[#allocation2 + $0x70] sm:$0xff] }
   0x6   :  { %50 = vmatpush.msra.mxu0 %v47_v0  ;;  %80 = vmatpush.msra.mxu1 %v47_v0  ;;  %v45_v2 = vld [vmem:[#allocation2 + $0x68] sm:$0xff]  ;;  %v44_v3 = vld [vmem:[#allocation2 + $0x60] sm:$0xff]  ;;  %v43_v4 = vld [vmem:[#allocation2 + $0x58] sm:$0xff] }
   0x7   :  { %v42_v5 = vld [vmem:[#allocation2 + $0x50] sm:$0xff]  ;;  %v41_v6 = vld [vmem:[#allocation2 + $0x48] sm:$0xff]  ;;  %v40_v7 = vld [vmem:[#allocation2 + $0x40] sm:$0xff] }
   0x8   :  { %51 = vmatpush.msra.mxu0 %v46_v1  ;;  %81 = vmatpush.msra.mxu1 %v46_v1  ;;  %v39_v8 = vld [vmem:[#allocation2 + $0x38] sm:$0xff]  ;;  %v38_v9 = vld [vmem:[#allocation2 + $0x30] sm:$0xff]  ;;  %v37_v10 = vld [vmem:[#allocation2 + $0x28] sm:$0xff] }
   0x9   :  { %v36_v11 = vld [vmem:[#allocation2 + $0x20] sm:$0xff]  ;;  %v35_v12 = vld [vmem:[#allocation2 + $0x18] sm:$0xff]  ;;  %v34_v13 = vld [vmem:[#allocation2 + $0x10] sm:$0xff] }
   0xa   :  { %52 = vmatpush.msra.mxu0 %v45_v2  ;;  %82 = vmatpush.msra.mxu1 %v45_v2  ;;  %v33_v14 = vld [vmem:[#allocation2 + $0x8] sm:$0xff]  ;;  %v32_v15 = vld [vmem:[#allocation2] sm:$0xff] }
   0xb   :  { %v30_v16 = vld [vmem:[%s169_s0] sm:$0xff]  ;;  %v31_v17 = vld [vmem:[%s169_s0 + $0x8] sm:$0xff] }
   0xc   :  { %53 = vmatpush.msra.mxu0 %v44_v3  ;;  %83 = vmatpush.msra.mxu1 %v44_v3  ;;  %v48_v18 = vld [vmem:[%s171_s2] sm:$0xff]  ;;  %v49_v19 = vld [vmem:[%s171_s2 + $0x8] sm:$0xff] }
   0xe   :  { %54 = vmatpush.msra.mxu0 %v43_v4  ;;  %84 = vmatpush.msra.mxu1 %v43_v4 }
  0x10   :  { %55 = vmatpush.msra.mxu0 %v42_v5  ;;  %85 = vmatpush.msra.mxu1 %v42_v5 }
  0x12   :  { %56 = vmatpush.msra.mxu0 %v41_v6  ;;  %86 = vmatpush.msra.mxu1 %v41_v6 }
  0x14   :  { %57 = vmatpush.msra.mxu0 %v40_v7  ;;  %87 = vmatpush.msra.mxu1 %v40_v7 }
  0x16   :  { %58 = vmatpush.msra.mxu0 %v39_v8  ;;  %88 = vmatpush.msra.mxu1 %v39_v8 }
  0x18   :  { %59 = vmatpush.msra.mxu0 %v38_v9  ;;  %89 = vmatpush.msra.mxu1 %v38_v9 }
  0x1a   :  { %60 = vmatpush.msra.mxu0 %v37_v10  ;;  %90 = vmatpush.msra.mxu1 %v37_v10 }
  0x1c   :  { %61 = vmatpush.msra.mxu0 %v36_v11  ;;  %91 = vmatpush.msra.mxu1 %v36_v11 }
  0x1e   :  { %62 = vmatpush.msra.mxu0 %v35_v12  ;;  %92 = vmatpush.msra.mxu1 %v35_v12 }
  0x20   :  { %63 = vmatpush.msra.mxu0 %v34_v13  ;;  %93 = vmatpush.msra.mxu1 %v34_v13 }
  0x22   :  { %64 = vmatpush.msra.mxu0 %v33_v14  ;;  %94 = vmatpush.msra.mxu1 %v33_v14 }
  0x24   :  { %65 = vmatpush.msra.mxu0 %v32_v15  ;;  %95 = vmatpush.msra.mxu1 %v32_v15 }
  0x25   :  { %66 = vmatmul.f32.vlgmr.msra.gmra.mxu0 %v30_v16  ;;  %69 = vmatmul.f32.vlgmr.msra.gmra.mxu1 %v31_v17 }
  0xa2   :  { %v67_v20 = vpop.f32.mrf.mxu0  ;;  %v70_v21 = vpop.f32.mrf.mxu1 }
  0xa3   :  { %v68_v22 = vadd.f32 %v67_v20, %v48_v18  ;;  %v71_v23 = vadd.f32 %v70_v21, %v49_v19 }
  0xa5   :  { %73 = vst [vmem:[%s172_s3] sm:$0xff] %v68_v22 }
  0xa6   :  { %74 = vst [vmem:[%s172_s3 + $0x8] sm:$0xff] %v71_v23 }
  0xa7   :  { %79 = vsyncpa [#allocation3], 1 }

// kernel: transformer_forward.11
= control target key start
LH: loop header
LB: loop body
LE: loop exit
PB: predicated region body
PF: predicated region fallthrough
CT: control target
= control target key end

     0   :  { %v541_v8 = vmov 128.0   ;;  %s1029_s0 = inlined_call_operand.vmem [shape: f32[16,128], index: 0, kind: input, shape index: {}]   ;;  %s1030_s1 = inlined_call_operand.vmem [shape: f32[1,128], index: 1, kind: input, shape index: {}]   ;;  %s1031_s2 = inlined_call_operand.vmem [shape: f32[128,256], index: 2, kind: input, shape index: {}]   ;;  %s1032_s3 = inlined_call_operand.vmem [shape: f32[128,256], index: 3, kind: input, shape index: {}]   ;;  %s1033_s4 = inlined_call_operand.vmem [shape: f32[256,128], index: 4, kind: input, shape index: {}]   ;;  %s1034_s5 = inlined_call_operand.vmem [shape: f32[16,128], index: 5, kind: output, shape index: {}]  }
   0x1   :  { %v575_v0 = vld [vmem:[%s1029_s0 + $0x8] sm:$0xff]  ;;  %v580_v1 = vld [vmem:[%s1029_s0] sm:$0xff]  ;;  %v111_v4 = vld [vmem:[%s1031_s2 + $0xf0] sm:$0xff]  ;;  %519 = vrcp.f32 %v541_v8 }
   0x2   :  { %25 = vadd.xlane.f32.xlu1 %v575_v0  ;;  %23 = vadd.xlane.f32.xlu0 %v580_v1  ;;  %v28_v2 = vmul.f32 %v575_v0, %v575_v0  ;;  %v27_v3 = vmul.f32 %v580_v1, %v580_v1  ;;  %v112_v5 = vld [vmem:[%s1031_s2 + $0xf8] sm:$0xff]  ;;  %v189_v6 = vld [vmem:[%s1032_s3 + $0xf0] sm:$0xff]  ;;  %v109_v9 = vld [vmem:[%s1031_s2 + $0xe0] sm:$0xff] }
   0x3   :  { %113 = vmatpush.msra.mxu0 %v111_v4  ;;  %136 = vmatpush.msra.mxu1 %v112_v5  ;;  %v190_v7 = vld [vmem:[%s1032_s3 + $0xf8] sm:$0xff]  ;;  %v110_v10 = vld [vmem:[%s1031_s2 + $0xe8] sm:$0xff]  ;;  %v187_v11 = vld [vmem:[%s1032_s3 + $0xe0] sm:$0xff] }
   0x4   :  { %191 = vmatpush.msra.mxu2 %v189_v6  ;;  %214 = vmatpush.msra.mxu3 %v190_v7  ;;  %v188_v12 = vld [vmem:[%s1032_s3 + $0xe8] sm:$0xff]  ;;  %v107_v13 = vld [vmem:[%s1031_s2 + $0xd0] sm:$0xff]  ;;  %v108_v14 = vld [vmem:[%s1031_s2 + $0xd8] sm:$0xff] }
   0x5   :  { %114 = vmatpush.msra.mxu0 %v109_v9  ;;  %137 = vmatpush.msra.mxu1 %v110_v10  ;;  %v185_v15 = vld [vmem:[%s1032_s3 + $0xd0] sm:$0xff]  ;;  %v186_v16 = vld [vmem:[%s1032_s3 + $0xd8] sm:$0xff]  ;;  %v105_v17 = vld [vmem:[%s1031_s2 + $0xc0] sm:$0xff] }
   0x6   :  { %192 = vmatpush.msra.mxu2 %v187_v11  ;;  %215 = vmatpush.msra.mxu3 %v188_v12  ;;  %v106_v18 = vld [vmem:[%s1031_s2 + $0xc8] sm:$0xff]  ;;  %v183_v19 = vld [vmem:[%s1032_s3 + $0xc0] sm:$0xff]  ;;  %v103_v22 = vld [vmem:[%s1031_s2 + $0xb0] sm:$0xff] }
   0x7   :  { %115 = vmatpush.msra.mxu0 %v107_v13  ;;  %138 = vmatpush.msra.mxu1 %v108_v14  ;;  %v633_v20 = vpop.eup %519  ;;  %v184_v21 = vld [vmem:[%s1032_s3 + $0xc8] sm:$0xff]  ;;  %v104_v23 = vld [vmem:[%s1031_s2 + $0xb8] sm:$0xff]  ;;  %v181_v24 = vld [vmem:[%s1032_s3 + $0xb0] sm:$0xff] }
   0x8   :  { %193 = vmatpush.msra.mxu2 %v185_v15  ;;  %216 = vmatpush.msra.mxu3 %v186_v16  ;;  %v182_v25 = vld [vmem:[%s1032_s3 + $0xb8] sm:$0xff]  ;;  %v34_v26 = vmul.f32 128.0, %v633_v20  ;;  %v101_v27 = vld [vmem:[%s1031_s2 + $0xa0] sm:$0xff]  ;;  %v102_v28 = vld [vmem:[%s1031_s2 + $0xa8] sm:$0xff]  ;;  %vm38_vm0 = vweird.f32 %v633_v20 }
   0x9   :  { %116 = vmatpush.msra.mxu0 %v105_v17  ;;  %139 = vmatpush.msra.mxu1 %v106_v18  ;;  %v179_v29 = vld [vmem:[%s1032_s3 + $0xa0] sm:$0xff]  ;;  %v180_v30 = vld [vmem:[%s1032_s3 + $0xa8] sm:$0xff]  ;;  %v99_v31 = vld [vmem:[%s1031_s2 + $0x90] sm:$0xff] }
   0xa   :  { %31 = vadd.xlane.f32.xlu1 %v28_v2  ;;  %29 = vadd.xlane.f32.xlu0 %v27_v3  ;;  %v100_v32 = vld [vmem:[%s1031_s2 + $0x98] sm:$0xff]  ;;  %v177_v33 = vld [vmem:[%s1032_s3 + $0x90] sm:$0xff]  ;;  %v35_v35 = vsub.f32 1.0, %v34_v26  ;;  %v97_v36 = vld [vmem:[%s1031_s2 + $0x80] sm:$0xff] }
   0xb   :  { %194 = vmatpush.msra.mxu2 %v183_v19  ;;  %217 = vmatpush.msra.mxu3 %v184_v21  ;;  %v178_v34 = vld [vmem:[%s1032_s3 + $0x98] sm:$0xff]  ;;  %v98_v37 = vld [vmem:[%s1031_s2 + $0x88] sm:$0xff]  ;;  %v175_v38 = vld [vmem:[%s1032_s3 + $0x80] sm:$0xff] }
   0xc   :  { %117 = vmatpush.msra.mxu0 %v103_v22  ;;  %140 = vmatpush.msra.mxu1 %v104_v23  ;;  %v176_v39 = vld [vmem:[%s1032_s3 + $0x88] sm:$0xff]  ;;  %v95_v40 = vld [vmem:[%s1031_s2 + $0x70] sm:$0xff]  ;;  %v96_v41 = vld [vmem:[%s1031_s2 + $0x78] sm:$0xff]  ;;  %v36_v44 = vmul.f32 %v633_v20, %v35_v35 }
   0xd   :  { %195 = vmatpush.msra.mxu2 %v181_v24  ;;  %218 = vmatpush.msra.mxu3 %v182_v25  ;;  %v173_v42 = vld [vmem:[%s1032_s3 + $0x70] sm:$0xff]  ;;  %v174_v43 = vld [vmem:[%s1032_s3 + $0x78] sm:$0xff]  ;;  %v93_v45 = vld [vmem:[%s1031_s2 + $0x60] sm:$0xff] }
   0xe   :  { %118 = vmatpush.msra.mxu0 %v101_v27  ;;  %141 = vmatpush.msra.mxu1 %v102_v28  ;;  %v94_v46 = vld [vmem:[%s1031_s2 + $0x68] sm:$0xff]  ;;  %v171_v47 = vld [vmem:[%s1032_s3 + $0x60] sm:$0xff]  ;;  %v91_v49 = vld [vmem:[%s1031_s2 + $0x50] sm:$0xff]  ;;  %v37_v53 = vadd.f32 %v633_v20, %v36_v44 }
   0xf   :  { %196 = vmatpush.msra.mxu2 %v179_v29  ;;  %219 = vmatpush.msra.mxu3 %v180_v30  ;;  %v172_v48 = vld [vmem:[%s1032_s3 + $0x68] sm:$0xff]  ;;  %v92_v50 = vld [vmem:[%s1031_s2 + $0x58] sm:$0xff]  ;;  %v169_v51 = vld [vmem:[%s1032_s3 + $0x50] sm:$0xff] }
  0x10   :  { %119 = vmatpush.msra.mxu0 %v99_v31  ;;  %142 = vmatpush.msra.mxu1 %v100_v32  ;;  %v170_v52 = vld [vmem:[%s1032_s3 + $0x58] sm:$0xff]  ;;  %v89_v54 = vld [vmem:[%s1031_s2 + $0x40] sm:$0xff]  ;;  %v90_v55 = vld [vmem:[%s1031_s2 + $0x48] sm:$0xff]  ;;  %v39_v4 = vsel %vm38_vm0, %v633_v20, %v37_v53 }
  0x11   :  { %197 = vmatpush.msra.mxu2 %v177_v33  ;;  %220 = vmatpush.msra.mxu3 %v178_v34  ;;  %v167_v56 = vld [vmem:[%s1032_s3 + $0x40] sm:$0xff]  ;;  %v168_v57 = vld [vmem:[%s1032_s3 + $0x48] sm:$0xff]  ;;  %v87_v60 = vld [vmem:[%s1031_s2 + $0x30] sm:$0xff] }
  0x12   :  { %120 = vmatpush.msra.mxu0 %v97_v36  ;;  %143 = vmatpush.msra.mxu1 %v98_v37  ;;  %v88_v61 = vld [vmem:[%s1031_s2 + $0x38] sm:$0xff]  ;;  %v165_v62 = vld [vmem:[%s1032_s3 + $0x30] sm:$0xff]  ;;  %v85_v2 = vld [vmem:[%s1031_s2 + $0x20] sm:$0xff] }
  0x13   :  { %198 = vmatpush.msra.mxu2 %v175_v38  ;;  %221 = vmatpush.msra.mxu3 %v176_v39  ;;  %v166_v63 = vld [vmem:[%s1032_s3 + $0x38] sm:$0xff]  ;;  %v86_v3 = vld [vmem:[%s1031_s2 + $0x28] sm:$0xff]  ;;  %v163_v5 = vld [vmem:[%s1032_s3 + $0x20] sm:$0xff] }
  0x14   :  { %121 = vmatpush.msra.mxu0 %v95_v40  ;;  %144 = vmatpush.msra.mxu1 %v96_v41  ;;  %v164_v6 = vld [vmem:[%s1032_s3 + $0x28] sm:$0xff]  ;;  %v83_v7 = vld [vmem:[%s1031_s2 + $0x10] sm:$0xff]  ;;  %v84_v9 = vld [vmem:[%s1031_s2 + $0x18] sm:$0xff] }
  0x15   :  { %199 = vmatpush.msra.mxu2 %v173_v42  ;;  %222 = vmatpush.msra.mxu3 %v174_v43  ;;  %v161_v10 = vld [vmem:[%s1032_s3 + $0x10] sm:$0xff]  ;;  %v162_v11 = vld [vmem:[%s1032_s3 + $0x18] sm:$0xff]  ;;  %v81_v12 = vld [vmem:[%s1031_s2] sm:$0xff] }
  0x16   :  { %122 = vmatpush.msra.mxu0 %v93_v45  ;;  %145 = vmatpush.msra.mxu1 %v94_v46  ;;  %v82_v14 = vld [vmem:[%s1031_s2 + $0x8] sm:$0xff]  ;;  %v159_v15 = vld [vmem:[%s1032_s3] sm:$0xff]  ;;  %v432_v53 = vld [vmem:[%s1033_s4 + $0xf8] sm:$0xff] }
  0x17   :  { %200 = vmatpush.msra.mxu2 %v171_v47  ;;  %223 = vmatpush.msra.mxu3 %v172_v48  ;;  %v160_v16 = vld [vmem:[%s1032_s3 + $0x8] sm:$0xff]  ;;  %v518_v41 = vld [vmem:[%s1030_s1] ss:$0 sm:$0xff] }
  0x18   :  { %123 = vmatpush.msra.mxu0 %v91_v49  ;;  %146 = vmatpush.msra.mxu1 %v92_v50 }
  0x19   :  { %201 = vmatpush.msra.mxu2 %v169_v51  ;;  %224 = vmatpush.msra.mxu3 %v170_v52  ;;  %v416_v52 = vld [vmem:[%s1033_s4 + $0x78] sm:$0xff] }
  0x1a   :  { %124 = vmatpush.msra.mxu0 %v89_v54  ;;  %147 = vmatpush.msra.mxu1 %v90_v55 }
  0x1b   :  { %202 = vmatpush.msra.mxu2 %v167_v56  ;;  %225 = vmatpush.msra.mxu3 %v168_v57  ;;  %v415_v56 = vld [vmem:[%s1033_s4 + $0x70] sm:$0xff] }
  0x1c   :  { %125 = vmatpush.msra.mxu0 %v87_v60  ;;  %148 = vmatpush.msra.mxu1 %v88_v61  ;;  %v431_v57 = vld [vmem:[%s1033_s4 + $0xf0] sm:$0xff]  ;;  %v414_v60 = vld [vmem:[%s1033_s4 + $0x68] sm:$0xff] }
  0x1d   :  { %203 = vmatpush.msra.mxu2 %v165_v62  ;;  %226 = vmatpush.msra.mxu3 %v166_v63  ;;  %v430_v61 = vld [vmem:[%s1033_s4 + $0xe8] sm:$0xff] }
  0x1e   :  { %126 = vmatpush.msra.mxu0 %v85_v2  ;;  %149 = vmatpush.msra.mxu1 %v86_v3  ;;  %v413_v2 = vld [vmem:[%s1033_s4 + $0x60] sm:$0xff] }
  0x1f   :  { %204 = vmatpush.msra.mxu2 %v163_v5  ;;  %227 = vmatpush.msra.mxu3 %v164_v6  ;;  %v429_v3 = vld [vmem:[%s1033_s4 + $0xe0] sm:$0xff]  ;;  %v412_v6 = vld [vmem:[%s1033_s4 + $0x58] sm:$0xff] }
  0x20   :  { %127 = vmatpush.msra.mxu0 %v83_v7  ;;  %150 = vmatpush.msra.mxu1 %v84_v9  ;;  %v428_v7 = vld [vmem:[%s1033_s4 + $0xd8] sm:$0xff] }
  0x21   :  { %205 = vmatpush.msra.mxu2 %v161_v10  ;;  %228 = vmatpush.msra.mxu3 %v162_v11  ;;  %v411_v10 = vld [vmem:[%s1033_s4 + $0x50] sm:$0xff] }
  0x22   :  { %128 = vmatpush.msra.mxu0 %v81_v12  ;;  %151 = vmatpush.msra.mxu1 %v82_v14  ;;  %v427_v11 = vld [vmem:[%s1033_s4 + $0xd0] sm:$0xff]  ;;  %v426_v14 = vld [vmem:[%s1033_s4 + $0xc8] sm:$0xff] }
  0x23   :  { %206 = vmatpush.msra.mxu2 %v159_v15  ;;  %229 = vmatpush.msra.mxu3 %v160_v16 }
  0x24   :  { %433 = vmatpush.msrb.mxu0 %v416_v52  ;;  %456 = vmatpush.msrb.mxu1 %v432_v53 }
  0x25   :  { %485 = vmatpush.msrb.mxu2 %v416_v52  ;;  %501 = vmatpush.msrb.mxu3 %v432_v53 }
  0x26   :  { %434 = vmatpush.msrb.mxu0 %v415_v56  ;;  %457 = vmatpush.msrb.mxu1 %v431_v57 }
  0x27   :  { %486 = vmatpush.msrb.mxu2 %v415_v56  ;;  %502 = vmatpush.msrb.mxu3 %v431_v57 }
  0x28   :  { %435 = vmatpush.msrb.mxu0 %v414_v60  ;;  %458 = vmatpush.msrb.mxu1 %v430_v61 }
  0x29   :  { %487 = vmatpush.msrb.mxu2 %v414_v60  ;;  %503 = vmatpush.msrb.mxu3 %v430_v61  ;;  %v404_v60 = vld [vmem:[%s1033_s4 + $0x18] sm:$0xff] }
  0x2a   :  { %436 = vmatpush.msrb.mxu0 %v413_v2  ;;  %459 = vmatpush.msrb.mxu1 %v429_v3  ;;  %v420_v61 = vld [vmem:[%s1033_s4 + $0x98] sm:$0xff] }
  0x2b   :  { %488 = vmatpush.msrb.mxu2 %v413_v2  ;;  %504 = vmatpush.msrb.mxu3 %v429_v3 }
  0x2c   :  { %437 = vmatpush.msrb.mxu0 %v412_v6  ;;  %460 = vmatpush.msrb.mxu1 %v428_v7 }
  0x2d   :  { %489 = vmatpush.msrb.mxu2 %v412_v6  ;;  %505 = vmatpush.msrb.mxu3 %v428_v7  ;;  %v419_v6 = vld [vmem:[%s1033_s4 + $0x90] sm:$0xff] }
  0x2e   :  { %438 = vmatpush.msrb.mxu0 %v411_v10  ;;  %461 = vmatpush.msrb.mxu1 %v427_v11 }
  0x2f   :  { %490 = vmatpush.msrb.mxu2 %v411_v10  ;;  %506 = vmatpush.msrb.mxu3 %v427_v11 }
  0x30   :  { %462 = vmatpush.msrb.mxu1 %v426_v14 }
  0x31   :  { %507 = vmatpush.msrb.mxu3 %v426_v14 }
  0x75   :  { %v26_v58 = vpop.xlane.xlu1 %25  ;;  %v24_v59 = vpop.xlane.xlu0 %23 }
  0x76   :  { %v768_v8 = vmul.f32 %v39_v4, %v26_v58  ;;  %v40_v13 = vmul.f32 %v39_v4, %v24_v59 }
  0x78   :  { %v45_v17 = vmul.f32 %v768_v8, %v768_v8  ;;  %v44_v20 = vmul.f32 %v40_v13, %v40_v13  ;;  %v50_v40 = vsub.f32 %v580_v1, %v40_v13  ;;  %v51_v47 = vsub.f32 %v575_v0, %v768_v8  ;;  %v410_v13 = vld [vmem:[%s1033_s4 + $0x48] sm:$0xff] }
  0x79   :  { %439 = vmatpush.msrb.mxu0 %v410_v13  ;;  %491 = vmatpush.msrb.mxu2 %v410_v13 }
  0x7d   :  { %v32_v18 = vpop.xlane.xlu1 %31  ;;  %v30_v19 = vpop.xlane.xlu0 %29 }
  0x7e   :  { %v43_v21 = vmul.f32 %v39_v4, %v32_v18  ;;  %v42_v22 = vmul.f32 %v39_v4, %v30_v19  ;;  %v409_v18 = vld [vmem:[%s1033_s4 + $0x40] sm:$0xff] }
  0x7f   :  { %v425_v19 = vld [vmem:[%s1033_s4 + $0xc0] sm:$0xff]  ;;  %440 = vmatpush.msrb.mxu0 %v409_v18  ;;  %492 = vmatpush.msrb.mxu2 %v409_v18  ;;  %v418_v18 = vld [vmem:[%s1033_s4 + $0x88] sm:$0xff] }
  0x80   :  { %v47_v23 = vsub.f32 %v43_v21, %v45_v17  ;;  %v46_v24 = vsub.f32 %v42_v22, %v44_v20  ;;  %463 = vmatpush.msrb.mxu1 %v425_v19  ;;  %508 = vmatpush.msrb.mxu3 %v425_v19 }
  0x82   :  { %v49_v25 = vmax.f32 %v47_v23, 0.0  ;;  %v48_v26 = vmax.f32 %v46_v24, 0.0 }
  0x84   :  { %v53_v27 = vadd.f32 1e-05, %v49_v25  ;;  %v52_v28 = vadd.f32 1e-05, %v48_v26  ;;  %v408_v25 = vld [vmem:[%s1033_s4 + $0x38] sm:$0xff] }
  0x85   :  { %v424_v26 = vld [vmem:[%s1033_s4 + $0xb8] sm:$0xff]  ;;  %441 = vmatpush.msrb.mxu0 %v408_v25  ;;  %493 = vmatpush.msrb.mxu2 %v408_v25 }
  0x86   :  { %521 = vrsqrt.f32 %v53_v27  ;;  %vm60_vm2 = vweird.f32 %v52_v28  ;;  %vm70_vm5 = vweird.f32 %v53_v27  ;;  %464 = vmatpush.msrb.mxu1 %v424_v26  ;;  %509 = vmatpush.msrb.mxu3 %v424_v26 }
  0x87   :  { %523 = vrsqrt.f32 %v52_v28 }
  0x8c   :  { %v522_v29 = vpop.eup %521 }
  0x8d   :  { %v524_v30 = vpop.eup %523  ;;  %v65_v31 = vmul.f32 %v522_v29, %v53_v27  ;;  %vm71_vm4 = vweird.f32 %v522_v29 }
  0x8e   :  { %v55_v32 = vmul.f32 %v524_v30, %v52_v28  ;;  %vm61_vm1 = vweird.f32 %v524_v30  ;;  %vm72_vm6 = vmor %vm70_vm5, %vm71_vm4 }
  0x8f   :  { %v66_v33 = vmul.f32 %v522_v29, %v65_v31  ;;  %vm62_vm3 = vmor %vm60_vm2, %vm61_vm1 }
  0x90   :  { %v56_v34 = vmul.f32 %v524_v30, %v55_v32 }
  0x91   :  { %v67_v35 = vmul.f32 0.5, %v66_v33  ;;  %v407_v33 = vld [vmem:[%s1033_s4 + $0x30] sm:$0xff] }
  0x92   :  { %v57_v36 = vmul.f32 0.5, %v56_v34  ;;  %v423_v34 = vld [vmem:[%s1033_s4 + $0xb0] sm:$0xff]  ;;  %442 = vmatpush.msrb.mxu0 %v407_v33  ;;  %494 = vmatpush.msrb.mxu2 %v407_v33 }
  0x93   :  { %v68_v37 = vsub.f32 1.5, %v67_v35  ;;  %465 = vmatpush.msrb.mxu1 %v423_v34  ;;  %510 = vmatpush.msrb.mxu3 %v423_v34 }
  0x94   :  { %v58_v38 = vsub.f32 1.5, %v57_v36 }
  0x95   :  { %v69_v42 = vmul.f32 %v522_v29, %v68_v37 }
  0x96   :  { %v59_v39 = vmul.f32 %v524_v30, %v58_v38 }
  0x97   :  { %v73_v46 = vsel %vm72_vm6, %v522_v29, %v69_v42  ;;  %v422_v42 = vld [vmem:[%s1033_s4 + $0xa8] sm:$0xff] }
  0x98   :  { %v63_v43 = vsel %vm62_vm3, %v524_v30, %v59_v39  ;;  %v75_v48 = vmul.f32 %v73_v46, %v51_v47  ;;  %466 = vmatpush.msrb.mxu1 %v422_v42  ;;  %v405_v46 = vld [vmem:[%s1033_s4 + $0x20] sm:$0xff]  ;;  %511 = vmatpush.msrb.mxu3 %v422_v42 }
  0x99   :  { %v74_v44 = vmul.f32 %v63_v43, %v50_v40  ;;  %v421_v47 = vld [vmem:[%s1033_s4 + $0xa0] sm:$0xff] }
  0x9a   :  { %v80_v49 = vmul.f32 %v518_v41, %v75_v48  ;;  %467 = vmatpush.msrb.mxu1 %v421_v47  ;;  %512 = vmatpush.msrb.mxu3 %v421_v47 }
  0x9b   :  { %v79_v45 = vmul.f32 %v518_v41, %v74_v44  ;;  %v406_v41 = vld [vmem:[%s1033_s4 + $0x28] sm:$0xff] }
  0x9c   :  { %443 = vmatpush.msrb.mxu0 %v406_v41  ;;  %495 = vmatpush.msrb.mxu2 %v406_v41 }
  0x9d   :  { %129 = vmatmul.f32.vlgmr.msra.gmra.mxu0 %v79_v45  ;;  %152 = vmatmul.f32.vlgmr.msra.gmra.mxu1 %v79_v45 }
  0x9e   :  { %207 = vmatmul.f32.vlgmr.msra.gmra.mxu2 %v79_v45  ;;  %230 = vmatmul.f32.vlgmr.msra.gmra.mxu3 %v79_v45 }
  0x9f   :  { %444 = vmatpush.msrb.mxu0 %v405_v46  ;;  %496 = vmatpush.msrb.mxu2 %v405_v46 }
  0xa0   :  { %468 = vmatpush.msrb.mxu1 %v420_v61  ;;  %513 = vmatpush.msrb.mxu3 %v420_v61 }
  0xa1   :  { %445 = vmatpush.msrb.mxu0 %v404_v60  ;;  %497 = vmatpush.msrb.mxu2 %v404_v60 }
  0xa2   :  { %469 = vmatpush.msrb.mxu1 %v419_v6  ;;  %514 = vmatpush.msrb.mxu3 %v419_v6 }
  0xa4   :  { %470 = vmatpush.msrb.mxu1 %v418_v18  ;;  %515 = vmatpush.msrb.mxu3 %v418_v18 }
  0xa5   :  { %132 = vmatmul.f32.gmra.mxu0 %v80_v49  ;;  %155 = vmatmul.f32.gmra.mxu1 %v80_v49 }
  0xa6   :  { %210 = vmatmul.f32.gmra.mxu2 %v80_v49  ;;  %233 = vmatmul.f32.gmra.mxu3 %v80_v49 }
 0x121   :  { %v799_v50 = vpop.f32.mrf.mxu2  ;;  %v801_v51 = vpop.f32.mrf.mxu3 }
 0x122   :  { %v810_v54 = vmul.f32 0.70710677, %v799_v50  ;;  %v813_v55 = vmul.f32 0.70710677, %v801_v51 }
 0x124   :  { %v822_v58 = vand.u32 2147483647, %v810_v54  ;;  %v825_v59 = vand.u32 2147483647, %v813_v55 }
 0x126   :  { %v249_v62 = vmul.f32 0.3275911, %v822_v58  ;;  %v250_v63 = vmul.f32 0.3275911, %v825_v59  ;;  %v353_v16 = vsub.f32 0.0, %v822_v58  ;;  %v354_v31 = vsub.f32 0.0, %v825_v59 }
 0x128   :  { %v841_v4 = vadd.f32 1.0, %v249_v62  ;;  %v843_v5 = vadd.f32 1.0, %v250_v63  ;;  %v357_v30 = vmul.f32 %v353_v16, %v822_v58  ;;  %v358_v58 = vmul.f32 %v354_v31, %v825_v59  ;;  %v402_v16 = vld [vmem:[%s1033_s4 + $0x8] sm:$0xff] }
 0x129   :  { %v852_v8 = vpop.f32.mrf.mxu2  ;;  %v855_v9 = vpop.f32.mrf.mxu3 }
 0x12a   :  { %525 = vrcp.f32 %v841_v4  ;;  %v864_v12 = vmul.f32 0.70710677, %v852_v8  ;;  %v873_v15 = vmul.f32 0.70710677, %v855_v9  ;;  %v266_v35 = vand.u32 2147483647, %v841_v4 }
 0x12b   :  { %527 = vrcp.f32 %v843_v5  ;;  %v268_v36 = vand.u32 2147483648, %v841_v4  ;;  %v283_v40 = vand.u32 2147483648, %v843_v5  ;;  %v281_v44 = vand.u32 2147483647, %v843_v5 }
 0x12c   :  { %v877_v17 = vand.u32 2147483647, %v864_v12  ;;  %v888_v21 = vand.u32 2147483647, %v873_v15  ;;  %vm262_vm9 = vweird.f32 %v841_v4  ;;  %vm277_vm11 = vweird.f32 %v843_v5 }
 0x12d   :  { %v269_v49 = vor.u32 1.1754944e-38, %v268_v36  ;;  %vm267_vm12 = vcmp.eq.f32.partialorder %v266_v35, 8.507059e+37  ;;  %v284_v57 = vor.u32 1.1754944e-38, %v283_v40  ;;  %v361_v63 = vmul.f32 1.442695, %v357_v30 }
 0x12e   :  { %v251_v24 = vmul.f32 0.3275911, %v877_v17  ;;  %v252_v28 = vmul.f32 0.3275911, %v888_v21  ;;  %vm282_vm14 = vcmp.eq.f32.partialorder %v281_v44, 8.507059e+37  ;;  %v356_v56 = vsub.f32 0.0, %v888_v21 }
 0x130   :  { %v885_v20 = vpop.eup %525  ;;  %v906_v32 = vadd.f32 1.0, %v251_v24  ;;  %v916_v38 = vadd.f32 1.0, %v252_v28  ;;  %v417_v28 = vld [vmem:[%s1033_s4 + $0x80] sm:$0xff] }
 0x131   :  { %v890_v22 = vpop.eup %527  ;;  %v258_v23 = vmul.f32 %v885_v20, %v841_v4  ;;  %vm263_vm7 = vweird.f32 %v885_v20  ;;  %471 = vmatpush.msrb.mxu1 %v417_v28  ;;  %516 = vmatpush.msrb.mxu3 %v417_v28 }
 0x132   :  { %v273_v27 = vmul.f32 %v890_v22, %v843_v5  ;;  %529 = vrcp.f32 %v906_v32  ;;  %vm278_vm8 = vweird.f32 %v890_v22  ;;  %vm942_vm10 = vmor %vm262_vm9, %vm263_vm7  ;;  %v403_v5 = vld [vmem:[%s1033_s4 + $0x10] sm:$0xff]  ;;  %v296_v24 = vand.u32 2147483647, %v906_v32 }
 0x133   :  { %v259_v29 = vsub.f32 1.0, %v258_v23  ;;  %531 = vrcp.f32 %v916_v38  ;;  %vm953_vm13 = vmor %vm277_vm11, %vm278_vm8  ;;  %446 = vmatpush.msrb.mxu0 %v403_v5  ;;  %498 = vmatpush.msrb.mxu2 %v403_v5  ;;  %v298_v25 = vand.u32 2147483648, %v906_v32  ;;  %v313_v31 = vand.u32 2147483648, %v916_v38 }
 0x134   :  { %v274_v37 = vsub.f32 1.0, %v273_v27  ;;  %533 = vpow2.f32 %v361_v63  ;;  %v401_v27 = vld [vmem:[%s1033_s4] sm:$0xff]  ;;  %v311_v35 = vand.u32 2147483647, %v916_v38  ;;  %vm292_vm1 = vweird.f32 %v906_v32 }
 0x135   :  { %v260_v39 = vmul.f32 %v885_v20, %v259_v29  ;;  %447 = vmatpush.msrb.mxu0 %v402_v16  ;;  %499 = vmatpush.msrb.mxu2 %v402_v16  ;;  %v299_v41 = vor.u32 1.1754944e-38, %v298_v25  ;;  %vm307_vm3 = vweird.f32 %v916_v38  ;;  %vm297_vm4 = vcmp.eq.f32.partialorder %v296_v24, 8.507059e+37 }
 0x136   :  { %v275_v43 = vmul.f32 %v890_v22, %v274_v37  ;;  %v314_v46 = vor.u32 1.1754944e-38, %v313_v31  ;;  %vm312_vm6 = vcmp.eq.f32.partialorder %v311_v35, 8.507059e+37  ;;  %v360_v5 = vmul.f32 %v356_v56, %v888_v21 }
 0x137   :  { %v261_v45 = vadd.f32 %v885_v20, %v260_v39  ;;  %448 = vmatpush.msrb.mxu0 %v401_v27  ;;  %500 = vmatpush.msrb.mxu2 %v401_v27  ;;  %v355_v39 = vsub.f32 0.0, %v877_v17  ;;  %vm377_vm7 = vcmp.lt.f32.partialorder %v810_v54, 0.0  ;;  %vm378_vm8 = vcmp.lt.f32.partialorder %v813_v55, 0.0  ;;  %v130_v54 = vpop.f32.mrf.mxu0 }
 0x138   :  { %v276_v52 = vadd.f32 %v890_v22, %v275_v43  ;;  %v530_v59 = vpop.eup %529  ;;  %vm379_vm9 = vcmp.lt.f32.partialorder %v864_v12, 0.0 }
 0x139   :  { %v265_v53 = vsel %vm942_vm10, %v885_v20, %v261_v45  ;;  %v532_v7 = vpop.eup %531  ;;  %v288_v11 = vmul.f32 %v530_v59, %v906_v32  ;;  %v363_v20 = vmul.f32 1.442695, %v358_v58  ;;  %vm293_vm15 = vweird.f32 %v530_v59 }
 0x13a   :  { %v964_v62 = vsel %vm267_vm12, %v269_v49, %v265_v53  ;;  %v280_v2 = vsel %vm953_vm13, %v890_v22, %v276_v52  ;;  %v303_v14 = vmul.f32 %v532_v7, %v916_v38  ;;  %vm308_vm0 = vweird.f32 %v532_v7  ;;  %vm294_vm2 = vmor %vm292_vm1, %vm293_vm15  ;;  %v534_v43 = vpop.eup %533 }
 0x13b   :  { %v317_v3 = vmul.f32 1.0614054, %v964_v62  ;;  %v970_v4 = vsel %vm282_vm14, %v284_v57, %v280_v2  ;;  %v289_v22 = vsub.f32 1.0, %v288_v11  ;;  %vm309_vm5 = vmor %vm307_vm3, %vm308_vm0  ;;  %535 = vpow2.f32 %v363_v20 }
 0x13c   :  { %v318_v10 = vmul.f32 1.0614054, %v970_v4  ;;  %v304_v26 = vsub.f32 1.0, %v303_v14  ;;  %v359_v63 = vmul.f32 %v355_v39, %v877_v17  ;;  %vm380_vm10 = vcmp.lt.f32.partialorder %v873_v15, 0.0 }
 0x13d   :  { %v321_v13 = vadd.f32 -1.4531521, %v317_v3  ;;  %v290_v30 = vmul.f32 %v530_v59, %v289_v22  ;;  %v367_v22 = vmul.f32 1.442695, %v360_v5 }
 0x13e   :  { %v322_v19 = vadd.f32 -1.4531521, %v318_v10  ;;  %v305_v34 = vmul.f32 %v532_v7, %v304_v26  ;;  %v365_v16 = vmul.f32 1.442695, %v359_v63 }
 0x13f   :  { %v325_v23 = vmul.f32 %v321_v13, %v964_v62  ;;  %v291_v37 = vadd.f32 %v530_v59, %v290_v30 }
 0x140   :  { %v326_v29 = vmul.f32 %v322_v19, %v970_v4  ;;  %v306_v42 = vadd.f32 %v532_v7, %v305_v34  ;;  %537 = vpow2.f32 %v365_v16  ;;  %v238_v34 = vmul.f32 0.5, %v801_v51 }
 0x141   :  { %v329_v33 = vadd.f32 1.4214138, %v325_v23  ;;  %v295_v45 = vsel %vm294_vm2, %v530_v59, %v291_v37  ;;  %v536_v13 = vpop.eup %535  ;;  %539 = vpow2.f32 %v367_v22 }
 0x142   :  { %v330_v36 = vadd.f32 1.4214138, %v326_v29  ;;  %v300_v32 = vsel %vm297_vm4, %v299_v41, %v295_v45  ;;  %v310_v48 = vsel %vm309_vm5, %v532_v7, %v306_v42  ;;  %v237_v29 = vmul.f32 0.5, %v799_v50 }
 0x143   :  { %v333_v40 = vmul.f32 %v329_v33, %v964_v62  ;;  %v319_v52 = vmul.f32 1.0614054, %v300_v32  ;;  %v315_v53 = vsel %vm312_vm6, %v314_v46, %v310_v48 }
 0x144   :  { %v334_v44 = vmul.f32 %v330_v36, %v970_v4  ;;  %v320_v38 = vmul.f32 1.0614054, %v315_v53 }
 0x145   :  { %v337_v47 = vadd.f32 -0.28449672, %v333_v40  ;;  %v323_v60 = vadd.f32 -1.4531521, %v319_v52 }
 0x146   :  { %v338_v49 = vadd.f32 -0.28449672, %v334_v44  ;;  %v324_v2 = vadd.f32 -1.4531521, %v320_v38  ;;  %v538_v40 = vpop.eup %537  ;;  %v153_v44 = vpop.f32.mrf.mxu1 }
 0x147   :  { %v341_v57 = vmul.f32 %v337_v47, %v964_v62  ;;  %v327_v3 = vmul.f32 %v323_v60, %v300_v32  ;;  %v133_v60 = vpop.f32.mrf.mxu0 }
 0x148   :  { %v342_v58 = vmul.f32 %v338_v49, %v970_v4  ;;  %v328_v7 = vmul.f32 %v324_v2, %v315_v53 }
 0x149   :  { %v345_v61 = vadd.f32 0.2548296, %v341_v57  ;;  %v331_v11 = vadd.f32 1.4214138, %v327_v3  ;;  %v240_v57 = vmul.f32 0.5, %v855_v9 }
 0x14a   :  { %v346_v59 = vadd.f32 0.2548296, %v342_v58  ;;  %v332_v18 = vadd.f32 1.4214138, %v328_v7 }
 0x14b   :  { %v349_v6 = vmul.f32 %v345_v61, %v964_v62  ;;  %v335_v20 = vmul.f32 %v331_v11, %v300_v32 }
 0x14c   :  { %v350_v10 = vmul.f32 %v346_v59, %v970_v4  ;;  %v336_v17 = vmul.f32 %v332_v18, %v315_v53 }
 0x14d   :  { %v369_v14 = vmul.f32 %v534_v43, %v349_v6  ;;  %v339_v25 = vadd.f32 -0.28449672, %v335_v20  ;;  %v540_v43 = vpop.eup %539 }
 0x14e   :  { %v370_v19 = vmul.f32 %v536_v13, %v350_v10  ;;  %v340_v21 = vadd.f32 -0.28449672, %v336_v17  ;;  %v156_v63 = vpop.f32.mrf.mxu1 }
 0x14f   :  { %v373_v23 = vsub.f32 1.0, %v369_v14  ;;  %v343_v27 = vmul.f32 %v339_v25, %v300_v32 }
 0x150   :  { %v374_v24 = vsub.f32 1.0, %v370_v19  ;;  %v344_v28 = vmul.f32 %v340_v21, %v315_v53 }
 0x151   :  { %v381_v26 = vsub.f32 0.0, %v373_v23  ;;  %v347_v33 = vadd.f32 0.2548296, %v343_v27 }
 0x152   :  { %v382_v62 = vsub.f32 0.0, %v374_v24  ;;  %v348_v36 = vadd.f32 0.2548296, %v344_v28 }
 0x153   :  { %v385_v4 = vsel %vm377_vm7, %v381_v26, %v373_v23  ;;  %v351_v39 = vmul.f32 %v347_v33, %v300_v32  ;;  %v239_v32 = vmul.f32 0.5, %v852_v8 }
 0x154   :  { %v389_v30 = vadd.f32 1.0, %v385_v4  ;;  %v386_v31 = vsel %vm378_vm8, %v382_v62, %v374_v24  ;;  %v352_v42 = vmul.f32 %v348_v36, %v315_v53 }
 0x155   :  { %v390_v35 = vadd.f32 1.0, %v386_v31  ;;  %v371_v45 = vmul.f32 %v538_v40, %v351_v39 }
 0x156   :  { %v393_v37 = vmul.f32 %v389_v30, %v237_v29  ;;  %v372_v46 = vmul.f32 %v540_v43, %v352_v42 }
 0x157   :  { %v394_v41 = vmul.f32 %v390_v35, %v238_v34  ;;  %v375_v50 = vsub.f32 1.0, %v371_v45 }
 0x158   :  { %v397_v55 = vmul.f32 %v393_v37, %v130_v54  ;;  %v376_v48 = vsub.f32 1.0, %v372_v46 }
 0x159   :  { %v398_v47 = vmul.f32 %v394_v41, %v153_v44  ;;  %v383_v49 = vsub.f32 0.0, %v375_v50 }
 0x15a   :  { %449 = vmatmul.f32.vlgmr.msrb.gmra.mxu0 %v397_v55  ;;  %v384_v51 = vsub.f32 0.0, %v376_v48 }
 0x15b   :  { %472 = vmatmul.f32.vlgmr.msrb.gmra.mxu1 %v398_v47  ;;  %v387_v52 = vsel %vm379_vm9, %v383_v49, %v375_v50 }
 0x15c   :  { %v391_v53 = vadd.f32 1.0, %v387_v52  ;;  %v388_v56 = vsel %vm380_vm10, %v384_v51, %v376_v48 }
 0x15d   :  { %v392_v38 = vadd.f32 1.0, %v388_v56 }
 0x15e   :  { %v395_v58 = vmul.f32 %v391_v53, %v239_v32 }
 0x15f   :  { %v396_v61 = vmul.f32 %v392_v38, %v240_v57 }
 0x160   :  { %v399_v2 = vmul.f32 %v395_v58, %v133_v60 }
 0x161   :  { %v400_v59 = vmul.f32 %v396_v61, %v156_v63 }
 0x162   :  { %452 = vmatmul.f32.vlgmr.msrb.gmra.mxu2 %v399_v2 }
 0x163   :  { %475 = vmatmul.f32.vlgmr.msrb.gmra.mxu3 %v400_v59 }
 0x1d7   :  { %v450_v12 = vpop.f32.mrf.mxu0 }
 0x1d8   :  { %v451_v3 = vadd.f32 %v450_v12, %v580_v1  ;;  %v473_v5 = vpop.f32.mrf.mxu1 }
 0x1da   :  { %v474_v15 = vadd.f32 %v473_v5, %v451_v3 }
 0x1dc   :  { %479 = vst [vmem:[%s1034_s5] sm:$0xff] %v474_v15 }
 0x1e5   :  { %v453_v8 = vpop.f32.mrf.mxu2 }
 0x1e6   :  { %v454_v9 = vadd.f32 %v453_v8, %v575_v0  ;;  %v476_v6 = vpop.f32.mrf.mxu3 }
 0x1e8   :  { %v477_v7 = vadd.f32 %v476_v6, %v454_v9 }
 0x1ea   :  { %480 = vst [vmem:[%s1034_s5 + $0x8] sm:$0xff] %v477_v7 }

// kernel: transformer_forward.15
= control target key start
LH: loop header
LB: loop body
LE: loop exit
PB: predicated region body
PF: predicated region fallthrough
CT: control target
= control target key end

     0   :  { %s1073_s0 = inlined_call_operand.vmem [shape: f32[16,128], index: 0, kind: input, shape index: {}]   ;;  %s1074_s1 = inlined_call_operand.vmem [shape: f32[1,128], index: 1, kind: input, shape index: {}]   ;;  %s1075_s2 = inlined_call_operand.vmem [shape: f32[128,256], index: 2, kind: input, shape index: {}]   ;;  %s1076_s3 = inlined_call_operand.vmem [shape: f32[128,256], index: 3, kind: input, shape index: {}]   ;;  %s1077_s4 = inlined_call_operand.vmem [shape: f32[256,128], index: 4, kind: input, shape index: {}]   ;;  %s1078_s5 = inlined_call_operand.hbm [shape: f32[16,128], index: 5, kind: output, shape index: {}]  }
   0x1   :  { %v622_v0 = vld [vmem:[%s1073_s0 + $0x8] sm:$0xff]  ;;  %v627_v1 = vld [vmem:[%s1073_s0] sm:$0xff] }
   0x2   :  { %26 = vadd.xlane.f32.xlu1 %v622_v0  ;;  %24 = vadd.xlane.f32.xlu0 %v627_v1 }
   0x3   :  { %10 = vsyncpa [#allocation3], 0  ;;  %v29_v2 = vmul.f32 %v622_v0, %v622_v0  ;;  %v28_v3 = vmul.f32 %v627_v1, %v627_v1  ;;  %v112_v4 = vld [vmem:[%s1075_s2 + $0xf0] sm:$0xff]  ;;  %v113_v5 = vld [vmem:[%s1075_s2 + $0xf8] sm:$0xff]  ;;  %v585_v8 = vmov 128.0   ;;  %s488_s27 = sshll.u32 %s1078_s5, 4  ;;  %s489_s27 = int_to_ptr.hbm [resolvable:$true] %s488_s27 }
   0x4   :  { %v190_v6 = vld [vmem:[%s1076_s3 + $0xf0] sm:$0xff]  ;;  %114 = vmatpush.msra.mxu0 %v112_v4  ;;  %137 = vmatpush.msra.mxu1 %v113_v5  ;;  %v191_v7 = vld [vmem:[%s1076_s3 + $0xf8] sm:$0xff]  ;;  %537 = vrcp.f32 %v585_v8  ;;  %v110_v9 = vld [vmem:[%s1075_s2 + $0xe0] sm:$0xff]  ;;  %s587_s28 = smov 128   ;;  %s588_s29 = smov 8  }
   0x5   :  { %192 = vmatpush.msra.mxu2 %v190_v6  ;;  %215 = vmatpush.msra.mxu3 %v191_v7  ;;  %v111_v10 = vld [vmem:[%s1075_s2 + $0xe8] sm:$0xff]  ;;  %v188_v11 = vld [vmem:[%s1076_s3 + $0xe0] sm:$0xff]  ;;  %v108_v13 = vld [vmem:[%s1075_s2 + $0xd0] sm:$0xff] }
   0x6   :  { %115 = vmatpush.msra.mxu0 %v110_v9  ;;  %138 = vmatpush.msra.mxu1 %v111_v10  ;;  %v189_v12 = vld [vmem:[%s1076_s3 + $0xe8] sm:$0xff]  ;;  %v109_v14 = vld [vmem:[%s1075_s2 + $0xd8] sm:$0xff]  ;;  %v186_v15 = vld [vmem:[%s1076_s3 + $0xd0] sm:$0xff] }
   0x7   :  { %193 = vmatpush.msra.mxu2 %v188_v11  ;;  %216 = vmatpush.msra.mxu3 %v189_v12  ;;  %v187_v16 = vld [vmem:[%s1076_s3 + $0xd8] sm:$0xff]  ;;  %v106_v17 = vld [vmem:[%s1075_s2 + $0xc0] sm:$0xff]  ;;  %v107_v18 = vld [vmem:[%s1075_s2 + $0xc8] sm:$0xff] }
   0x8   :  { %116 = vmatpush.msra.mxu0 %v108_v13  ;;  %139 = vmatpush.msra.mxu1 %v109_v14  ;;  %v184_v19 = vld [vmem:[%s1076_s3 + $0xc0] sm:$0xff]  ;;  %v185_v21 = vld [vmem:[%s1076_s3 + $0xc8] sm:$0xff]  ;;  %v104_v22 = vld [vmem:[%s1075_s2 + $0xb0] sm:$0xff] }
   0x9   :  { %194 = vmatpush.msra.mxu2 %v186_v15  ;;  %217 = vmatpush.msra.mxu3 %v187_v16  ;;  %v105_v23 = vld [vmem:[%s1075_s2 + $0xb8] sm:$0xff]  ;;  %v182_v24 = vld [vmem:[%s1076_s3 + $0xb0] sm:$0xff]  ;;  %v102_v27 = vld [vmem:[%s1075_s2 + $0xa0] sm:$0xff] }
   0xa   :  { %32 = vadd.xlane.f32.xlu1 %v29_v2  ;;  %30 = vadd.xlane.f32.xlu0 %v28_v3  ;;  %v680_v20 = vpop.eup %537  ;;  %v183_v25 = vld [vmem:[%s1076_s3 + $0xb8] sm:$0xff]  ;;  %v103_v28 = vld [vmem:[%s1075_s2 + $0xa8] sm:$0xff]  ;;  %v180_v29 = vld [vmem:[%s1076_s3 + $0xa0] sm:$0xff] }
   0xb   :  { %117 = vmatpush.msra.mxu0 %v106_v17  ;;  %140 = vmatpush.msra.mxu1 %v107_v18  ;;  %v35_v26 = vmul.f32 128.0, %v680_v20  ;;  %v181_v30 = vld [vmem:[%s1076_s3 + $0xa8] sm:$0xff]  ;;  %v100_v31 = vld [vmem:[%s1075_s2 + $0x90] sm:$0xff]  ;;  %v101_v32 = vld [vmem:[%s1075_s2 + $0x98] sm:$0xff]  ;;  %vm39_vm0 = vweird.f32 %v680_v20 }
   0xc   :  { %195 = vmatpush.msra.mxu2 %v184_v19  ;;  %218 = vmatpush.msra.mxu3 %v185_v21  ;;  %v178_v33 = vld [vmem:[%s1076_s3 + $0x90] sm:$0xff]  ;;  %v179_v34 = vld [vmem:[%s1076_s3 + $0x98] sm:$0xff]  ;;  %v98_v36 = vld [vmem:[%s1075_s2 + $0x80] sm:$0xff] }
   0xd   :  { %118 = vmatpush.msra.mxu0 %v104_v22  ;;  %141 = vmatpush.msra.mxu1 %v105_v23  ;;  %v36_v35 = vsub.f32 1.0, %v35_v26  ;;  %v99_v37 = vld [vmem:[%s1075_s2 + $0x88] sm:$0xff]  ;;  %v176_v38 = vld [vmem:[%s1076_s3 + $0x80] sm:$0xff]  ;;  %v96_v40 = vld [vmem:[%s1075_s2 + $0x70] sm:$0xff] }
   0xe   :  { %196 = vmatpush.msra.mxu2 %v182_v24  ;;  %219 = vmatpush.msra.mxu3 %v183_v25  ;;  %v177_v39 = vld [vmem:[%s1076_s3 + $0x88] sm:$0xff]  ;;  %v97_v41 = vld [vmem:[%s1075_s2 + $0x78] sm:$0xff]  ;;  %v174_v42 = vld [vmem:[%s1076_s3 + $0x70] sm:$0xff] }
   0xf   :  { %119 = vmatpush.msra.mxu0 %v102_v27  ;;  %142 = vmatpush.msra.mxu1 %v103_v28  ;;  %v175_v43 = vld [vmem:[%s1076_s3 + $0x78] sm:$0xff]  ;;  %v37_v44 = vmul.f32 %v680_v20, %v36_v35  ;;  %v94_v45 = vld [vmem:[%s1075_s2 + $0x60] sm:$0xff]  ;;  %v95_v46 = vld [vmem:[%s1075_s2 + $0x68] sm:$0xff] }
  0x10   :  { %197 = vmatpush.msra.mxu2 %v180_v29  ;;  %220 = vmatpush.msra.mxu3 %v181_v30  ;;  %v172_v47 = vld [vmem:[%s1076_s3 + $0x60] sm:$0xff]  ;;  %v173_v48 = vld [vmem:[%s1076_s3 + $0x68] sm:$0xff]  ;;  %v92_v49 = vld [vmem:[%s1075_s2 + $0x50] sm:$0xff] }
  0x11   :  { %120 = vmatpush.msra.mxu0 %v100_v31  ;;  %143 = vmatpush.msra.mxu1 %v101_v32  ;;  %v93_v50 = vld [vmem:[%s1075_s2 + $0x58] sm:$0xff]  ;;  %v170_v51 = vld [vmem:[%s1076_s3 + $0x50] sm:$0xff]  ;;  %v38_v53 = vadd.f32 %v680_v20, %v37_v44  ;;  %v90_v54 = vld [vmem:[%s1075_s2 + $0x40] sm:$0xff] }
  0x12   :  { %198 = vmatpush.msra.mxu2 %v178_v33  ;;  %221 = vmatpush.msra.mxu3 %v179_v34  ;;  %v171_v52 = vld [vmem:[%s1076_s3 + $0x58] sm:$0xff]  ;;  %v91_v55 = vld [vmem:[%s1075_s2 + $0x48] sm:$0xff]  ;;  %v168_v56 = vld [vmem:[%s1076_s3 + $0x40] sm:$0xff] }
  0x13   :  { %121 = vmatpush.msra.mxu0 %v98_v36  ;;  %144 = vmatpush.msra.mxu1 %v99_v37  ;;  %v169_v57 = vld [vmem:[%s1076_s3 + $0x48] sm:$0xff]  ;;  %v88_v60 = vld [vmem:[%s1075_s2 + $0x30] sm:$0xff]  ;;  %v89_v61 = vld [vmem:[%s1075_s2 + $0x38] sm:$0xff]  ;;  %v40_v4 = vsel %vm39_vm0, %v680_v20, %v38_v53 }
  0x14   :  { %199 = vmatpush.msra.mxu2 %v176_v38  ;;  %222 = vmatpush.msra.mxu3 %v177_v39  ;;  %v166_v62 = vld [vmem:[%s1076_s3 + $0x30] sm:$0xff]  ;;  %v167_v63 = vld [vmem:[%s1076_s3 + $0x38] sm:$0xff]  ;;  %v86_v2 = vld [vmem:[%s1075_s2 + $0x20] sm:$0xff] }
  0x15   :  { %122 = vmatpush.msra.mxu0 %v96_v40  ;;  %145 = vmatpush.msra.mxu1 %v97_v41  ;;  %v87_v3 = vld [vmem:[%s1075_s2 + $0x28] sm:$0xff]  ;;  %v164_v5 = vld [vmem:[%s1076_s3 + $0x20] sm:$0xff]  ;;  %v84_v7 = vld [vmem:[%s1075_s2 + $0x10] sm:$0xff] }
  0x16   :  { %200 = vmatpush.msra.mxu2 %v174_v42  ;;  %223 = vmatpush.msra.mxu3 %v175_v43  ;;  %v165_v6 = vld [vmem:[%s1076_s3 + $0x28] sm:$0xff]  ;;  %v85_v9 = vld [vmem:[%s1075_s2 + $0x18] sm:$0xff]  ;;  %v162_v10 = vld [vmem:[%s1076_s3 + $0x10] sm:$0xff] }
  0x17   :  { %123 = vmatpush.msra.mxu0 %v94_v45  ;;  %146 = vmatpush.msra.mxu1 %v95_v46  ;;  %v163_v11 = vld [vmem:[%s1076_s3 + $0x18] sm:$0xff]  ;;  %v82_v12 = vld [vmem:[%s1075_s2] sm:$0xff]  ;;  %v83_v14 = vld [vmem:[%s1075_s2 + $0x8] sm:$0xff] }
  0x18   :  { %201 = vmatpush.msra.mxu2 %v172_v47  ;;  %224 = vmatpush.msra.mxu3 %v173_v48  ;;  %v160_v15 = vld [vmem:[%s1076_s3] sm:$0xff]  ;;  %v161_v16 = vld [vmem:[%s1076_s3 + $0x8] sm:$0xff]  ;;  %v433_v53 = vld [vmem:[%s1077_s4 + $0xf8] sm:$0xff] }
  0x19   :  { %124 = vmatpush.msra.mxu0 %v92_v49  ;;  %147 = vmatpush.msra.mxu1 %v93_v50  ;;  %v536_v41 = vld [vmem:[%s1074_s1] ss:$0 sm:$0xff] }
  0x1a   :  { %202 = vmatpush.msra.mxu2 %v170_v51  ;;  %225 = vmatpush.msra.mxu3 %v171_v52  ;;  %v417_v52 = vld [vmem:[%s1077_s4 + $0x78] sm:$0xff] }
  0x1b   :  { %125 = vmatpush.msra.mxu0 %v90_v54  ;;  %148 = vmatpush.msra.mxu1 %v91_v55 }
  0x1c   :  { %203 = vmatpush.msra.mxu2 %v168_v56  ;;  %226 = vmatpush.msra.mxu3 %v169_v57  ;;  %v416_v56 = vld [vmem:[%s1077_s4 + $0x70] sm:$0xff] }
  0x1d   :  { %126 = vmatpush.msra.mxu0 %v88_v60  ;;  %149 = vmatpush.msra.mxu1 %v89_v61  ;;  %v432_v57 = vld [vmem:[%s1077_s4 + $0xf0] sm:$0xff]  ;;  %v415_v60 = vld [vmem:[%s1077_s4 + $0x68] sm:$0xff] }
  0x1e   :  { %204 = vmatpush.msra.mxu2 %v166_v62  ;;  %227 = vmatpush.msra.mxu3 %v167_v63  ;;  %v431_v61 = vld [vmem:[%s1077_s4 + $0xe8] sm:$0xff] }
  0x1f   :  { %127 = vmatpush.msra.mxu0 %v86_v2  ;;  %150 = vmatpush.msra.mxu1 %v87_v3  ;;  %v414_v2 = vld [vmem:[%s1077_s4 + $0x60] sm:$0xff] }
  0x20   :  { %205 = vmatpush.msra.mxu2 %v164_v5  ;;  %228 = vmatpush.msra.mxu3 %v165_v6  ;;  %v430_v3 = vld [vmem:[%s1077_s4 + $0xe0] sm:$0xff]  ;;  %v413_v6 = vld [vmem:[%s1077_s4 + $0x58] sm:$0xff] }
  0x21   :  { %128 = vmatpush.msra.mxu0 %v84_v7  ;;  %151 = vmatpush.msra.mxu1 %v85_v9  ;;  %v429_v7 = vld [vmem:[%s1077_s4 + $0xd8] sm:$0xff] }
  0x22   :  { %206 = vmatpush.msra.mxu2 %v162_v10  ;;  %229 = vmatpush.msra.mxu3 %v163_v11  ;;  %v412_v10 = vld [vmem:[%s1077_s4 + $0x50] sm:$0xff] }
  0x23   :  { %129 = vmatpush.msra.mxu0 %v82_v12  ;;  %152 = vmatpush.msra.mxu1 %v83_v14  ;;  %v428_v11 = vld [vmem:[%s1077_s4 + $0xd0] sm:$0xff]  ;;  %v427_v14 = vld [vmem:[%s1077_s4 + $0xc8] sm:$0xff] }
  0x24   :  { %207 = vmatpush.msra.mxu2 %v160_v15  ;;  %230 = vmatpush.msra.mxu3 %v161_v16 }
  0x25   :  { %434 = vmatpush.msrb.mxu0 %v417_v52  ;;  %457 = vmatpush.msrb.mxu1 %v433_v53 }
  0x26   :  { %500 = vmatpush.msrb.mxu2 %v417_v52  ;;  %516 = vmatpush.msrb.mxu3 %v433_v53 }
  0x27   :  { %435 = vmatpush.msrb.mxu0 %v416_v56  ;;  %458 = vmatpush.msrb.mxu1 %v432_v57 }
  0x28   :  { %501 = vmatpush.msrb.mxu2 %v416_v56  ;;  %517 = vmatpush.msrb.mxu3 %v432_v57 }
  0x29   :  { %436 = vmatpush.msrb.mxu0 %v415_v60  ;;  %459 = vmatpush.msrb.mxu1 %v431_v61 }
  0x2a   :  { %502 = vmatpush.msrb.mxu2 %v415_v60  ;;  %518 = vmatpush.msrb.mxu3 %v431_v61  ;;  %v405_v60 = vld [vmem:[%s1077_s4 + $0x18] sm:$0xff] }
  0x2b   :  { %437 = vmatpush.msrb.mxu0 %v414_v2  ;;  %460 = vmatpush.msrb.mxu1 %v430_v3  ;;  %v421_v61 = vld [vmem:[%s1077_s4 + $0x98] sm:$0xff] }
  0x2c   :  { %503 = vmatpush.msrb.mxu2 %v414_v2  ;;  %519 = vmatpush.msrb.mxu3 %v430_v3 }
  0x2d   :  { %438 = vmatpush.msrb.mxu0 %v413_v6  ;;  %461 = vmatpush.msrb.mxu1 %v429_v7 }
  0x2e   :  { %504 = vmatpush.msrb.mxu2 %v413_v6  ;;  %520 = vmatpush.msrb.mxu3 %v429_v7  ;;  %v420_v6 = vld [vmem:[%s1077_s4 + $0x90] sm:$0xff] }
  0x2f   :  { %439 = vmatpush.msrb.mxu0 %v412_v10  ;;  %462 = vmatpush.msrb.mxu1 %v428_v11 }
  0x30   :  { %505 = vmatpush.msrb.mxu2 %v412_v10  ;;  %521 = vmatpush.msrb.mxu3 %v428_v11 }
  0x31   :  { %463 = vmatpush.msrb.mxu1 %v427_v14 }
  0x32   :  { %522 = vmatpush.msrb.mxu3 %v427_v14 }
  0x75   :  { %v27_v58 = vpop.xlane.xlu1 %26  ;;  %v25_v59 = vpop.xlane.xlu0 %24 }
  0x76   :  { %v815_v8 = vmul.f32 %v40_v4, %v27_v58  ;;  %v41_v13 = vmul.f32 %v40_v4, %v25_v59 }
  0x78   :  { %v46_v17 = vmul.f32 %v815_v8, %v815_v8  ;;  %v45_v20 = vmul.f32 %v41_v13, %v41_v13  ;;  %v51_v40 = vsub.f32 %v627_v1, %v41_v13  ;;  %v52_v47 = vsub.f32 %v622_v0, %v815_v8  ;;  %v411_v13 = vld [vmem:[%s1077_s4 + $0x48] sm:$0xff] }
  0x79   :  { %440 = vmatpush.msrb.mxu0 %v411_v13  ;;  %506 = vmatpush.msrb.mxu2 %v411_v13 }
  0x7d   :  { %v33_v18 = vpop.xlane.xlu1 %32  ;;  %v31_v19 = vpop.xlane.xlu0 %30 }
  0x7e   :  { %v44_v21 = vmul.f32 %v40_v4, %v33_v18  ;;  %v43_v22 = vmul.f32 %v40_v4, %v31_v19  ;;  %v410_v18 = vld [vmem:[%s1077_s4 + $0x40] sm:$0xff] }
  0x7f   :  { %v426_v19 = vld [vmem:[%s1077_s4 + $0xc0] sm:$0xff]  ;;  %441 = vmatpush.msrb.mxu0 %v410_v18  ;;  %507 = vmatpush.msrb.mxu2 %v410_v18  ;;  %v419_v18 = vld [vmem:[%s1077_s4 + $0x88] sm:$0xff] }
  0x80   :  { %v48_v23 = vsub.f32 %v44_v21, %v46_v17  ;;  %v47_v24 = vsub.f32 %v43_v22, %v45_v20  ;;  %464 = vmatpush.msrb.mxu1 %v426_v19  ;;  %523 = vmatpush.msrb.mxu3 %v426_v19 }
  0x82   :  { %v50_v25 = vmax.f32 %v48_v23, 0.0  ;;  %v49_v26 = vmax.f32 %v47_v24, 0.0 }
  0x84   :  { %v54_v27 = vadd.f32 1e-05, %v50_v25  ;;  %v53_v28 = vadd.f32 1e-05, %v49_v26  ;;  %v409_v25 = vld [vmem:[%s1077_s4 + $0x38] sm:$0xff] }
  0x85   :  { %v425_v26 = vld [vmem:[%s1077_s4 + $0xb8] sm:$0xff]  ;;  %442 = vmatpush.msrb.mxu0 %v409_v25  ;;  %508 = vmatpush.msrb.mxu2 %v409_v25 }
  0x86   :  { %539 = vrsqrt.f32 %v54_v27  ;;  %vm61_vm2 = vweird.f32 %v53_v28  ;;  %vm71_vm5 = vweird.f32 %v54_v27  ;;  %465 = vmatpush.msrb.mxu1 %v425_v26  ;;  %524 = vmatpush.msrb.mxu3 %v425_v26 }
  0x87   :  { %541 = vrsqrt.f32 %v53_v28 }
  0x8c   :  { %v540_v29 = vpop.eup %539 }
  0x8d   :  { %v542_v30 = vpop.eup %541  ;;  %v66_v31 = vmul.f32 %v540_v29, %v54_v27  ;;  %vm72_vm4 = vweird.f32 %v540_v29 }
  0x8e   :  { %v56_v32 = vmul.f32 %v542_v30, %v53_v28  ;;  %vm62_vm1 = vweird.f32 %v542_v30  ;;  %vm73_vm6 = vmor %vm71_vm5, %vm72_vm4 }
  0x8f   :  { %v67_v33 = vmul.f32 %v540_v29, %v66_v31  ;;  %vm63_vm3 = vmor %vm61_vm2, %vm62_vm1 }
  0x90   :  { %v57_v34 = vmul.f32 %v542_v30, %v56_v32 }
  0x91   :  { %v68_v35 = vmul.f32 0.5, %v67_v33  ;;  %v408_v33 = vld [vmem:[%s1077_s4 + $0x30] sm:$0xff] }
  0x92   :  { %v58_v36 = vmul.f32 0.5, %v57_v34  ;;  %v424_v34 = vld [vmem:[%s1077_s4 + $0xb0] sm:$0xff]  ;;  %443 = vmatpush.msrb.mxu0 %v408_v33  ;;  %509 = vmatpush.msrb.mxu2 %v408_v33 }
  0x93   :  { %v69_v37 = vsub.f32 1.5, %v68_v35  ;;  %466 = vmatpush.msrb.mxu1 %v424_v34  ;;  %525 = vmatpush.msrb.mxu3 %v424_v34 }
  0x94   :  { %v59_v38 = vsub.f32 1.5, %v58_v36 }
  0x95   :  { %v70_v42 = vmul.f32 %v540_v29, %v69_v37 }
  0x96   :  { %v60_v39 = vmul.f32 %v542_v30, %v59_v38 }
  0x97   :  { %v74_v46 = vsel %vm73_vm6, %v540_v29, %v70_v42  ;;  %v423_v42 = vld [vmem:[%s1077_s4 + $0xa8] sm:$0xff] }
  0x98   :  { %v64_v43 = vsel %vm63_vm3, %v542_v30, %v60_v39  ;;  %v76_v48 = vmul.f32 %v74_v46, %v52_v47  ;;  %467 = vmatpush.msrb.mxu1 %v423_v42  ;;  %v406_v46 = vld [vmem:[%s1077_s4 + $0x20] sm:$0xff]  ;;  %526 = vmatpush.msrb.mxu3 %v423_v42 }
  0x99   :  { %v75_v44 = vmul.f32 %v64_v43, %v51_v40  ;;  %v422_v47 = vld [vmem:[%s1077_s4 + $0xa0] sm:$0xff] }
  0x9a   :  { %v81_v49 = vmul.f32 %v536_v41, %v76_v48  ;;  %468 = vmatpush.msrb.mxu1 %v422_v47  ;;  %527 = vmatpush.msrb.mxu3 %v422_v47 }
  0x9b   :  { %v80_v45 = vmul.f32 %v536_v41, %v75_v44  ;;  %v407_v41 = vld [vmem:[%s1077_s4 + $0x28] sm:$0xff] }
  0x9c   :  { %444 = vmatpush.msrb.mxu0 %v407_v41  ;;  %510 = vmatpush.msrb.mxu2 %v407_v41 }
  0x9d   :  { %130 = vmatmul.f32.vlgmr.msra.gmra.mxu0 %v80_v45  ;;  %153 = vmatmul.f32.vlgmr.msra.gmra.mxu1 %v80_v45 }
  0x9e   :  { %208 = vmatmul.f32.vlgmr.msra.gmra.mxu2 %v80_v45  ;;  %231 = vmatmul.f32.vlgmr.msra.gmra.mxu3 %v80_v45 }
  0x9f   :  { %445 = vmatpush.msrb.mxu0 %v406_v46  ;;  %511 = vmatpush.msrb.mxu2 %v406_v46 }
  0xa0   :  { %469 = vmatpush.msrb.mxu1 %v421_v61  ;;  %528 = vmatpush.msrb.mxu3 %v421_v61 }
  0xa1   :  { %446 = vmatpush.msrb.mxu0 %v405_v60  ;;  %512 = vmatpush.msrb.mxu2 %v405_v60 }
  0xa2   :  { %470 = vmatpush.msrb.mxu1 %v420_v6  ;;  %529 = vmatpush.msrb.mxu3 %v420_v6 }
  0xa4   :  { %471 = vmatpush.msrb.mxu1 %v419_v18  ;;  %530 = vmatpush.msrb.mxu3 %v419_v18 }
  0xa5   :  { %133 = vmatmul.f32.gmra.mxu0 %v81_v49  ;;  %156 = vmatmul.f32.gmra.mxu1 %v81_v49 }
  0xa6   :  { %211 = vmatmul.f32.gmra.mxu2 %v81_v49  ;;  %234 = vmatmul.f32.gmra.mxu3 %v81_v49 }
 0x121   :  { %v846_v50 = vpop.f32.mrf.mxu2  ;;  %v848_v51 = vpop.f32.mrf.mxu3 }
 0x122   :  { %v857_v54 = vmul.f32 0.70710677, %v846_v50  ;;  %v860_v55 = vmul.f32 0.70710677, %v848_v51 }
 0x124   :  { %v869_v58 = vand.u32 2147483647, %v857_v54  ;;  %v872_v59 = vand.u32 2147483647, %v860_v55 }
 0x126   :  { %v250_v62 = vmul.f32 0.3275911, %v869_v58  ;;  %v251_v63 = vmul.f32 0.3275911, %v872_v59  ;;  %v354_v16 = vsub.f32 0.0, %v869_v58  ;;  %v355_v31 = vsub.f32 0.0, %v872_v59 }
 0x128   :  { %v888_v4 = vadd.f32 1.0, %v250_v62  ;;  %v890_v5 = vadd.f32 1.0, %v251_v63  ;;  %v358_v30 = vmul.f32 %v354_v16, %v869_v58  ;;  %v359_v58 = vmul.f32 %v355_v31, %v872_v59  ;;  %v403_v16 = vld [vmem:[%s1077_s4 + $0x8] sm:$0xff] }
 0x129   :  { %v899_v8 = vpop.f32.mrf.mxu2  ;;  %v902_v9 = vpop.f32.mrf.mxu3 }
 0x12a   :  { %543 = vrcp.f32 %v888_v4  ;;  %v911_v12 = vmul.f32 0.70710677, %v899_v8  ;;  %v920_v15 = vmul.f32 0.70710677, %v902_v9  ;;  %v267_v35 = vand.u32 2147483647, %v888_v4 }
 0x12b   :  { %545 = vrcp.f32 %v890_v5  ;;  %v269_v36 = vand.u32 2147483648, %v888_v4  ;;  %v284_v40 = vand.u32 2147483648, %v890_v5  ;;  %v282_v44 = vand.u32 2147483647, %v890_v5 }
 0x12c   :  { %v924_v17 = vand.u32 2147483647, %v911_v12  ;;  %v935_v21 = vand.u32 2147483647, %v920_v15  ;;  %vm263_vm9 = vweird.f32 %v888_v4  ;;  %vm278_vm11 = vweird.f32 %v890_v5 }
 0x12d   :  { %v270_v49 = vor.u32 1.1754944e-38, %v269_v36  ;;  %vm268_vm12 = vcmp.eq.f32.partialorder %v267_v35, 8.507059e+37  ;;  %v285_v57 = vor.u32 1.1754944e-38, %v284_v40  ;;  %v362_v63 = vmul.f32 1.442695, %v358_v30 }
 0x12e   :  { %v252_v24 = vmul.f32 0.3275911, %v924_v17  ;;  %v253_v28 = vmul.f32 0.3275911, %v935_v21  ;;  %vm283_vm14 = vcmp.eq.f32.partialorder %v282_v44, 8.507059e+37  ;;  %v357_v56 = vsub.f32 0.0, %v935_v21 }
 0x130   :  { %v932_v20 = vpop.eup %543  ;;  %v953_v32 = vadd.f32 1.0, %v252_v24  ;;  %v963_v38 = vadd.f32 1.0, %v253_v28  ;;  %v418_v28 = vld [vmem:[%s1077_s4 + $0x80] sm:$0xff] }
 0x131   :  { %v937_v22 = vpop.eup %545  ;;  %v259_v23 = vmul.f32 %v932_v20, %v888_v4  ;;  %vm264_vm7 = vweird.f32 %v932_v20  ;;  %472 = vmatpush.msrb.mxu1 %v418_v28  ;;  %531 = vmatpush.msrb.mxu3 %v418_v28 }
 0x132   :  { %v274_v27 = vmul.f32 %v937_v22, %v890_v5  ;;  %547 = vrcp.f32 %v953_v32  ;;  %vm279_vm8 = vweird.f32 %v937_v22  ;;  %vm989_vm10 = vmor %vm263_vm9, %vm264_vm7  ;;  %v404_v5 = vld [vmem:[%s1077_s4 + $0x10] sm:$0xff]  ;;  %v297_v24 = vand.u32 2147483647, %v953_v32 }
 0x133   :  { %v260_v29 = vsub.f32 1.0, %v259_v23  ;;  %549 = vrcp.f32 %v963_v38  ;;  %vm1000_vm13 = vmor %vm278_vm11, %vm279_vm8  ;;  %447 = vmatpush.msrb.mxu0 %v404_v5  ;;  %513 = vmatpush.msrb.mxu2 %v404_v5  ;;  %v299_v25 = vand.u32 2147483648, %v953_v32  ;;  %v314_v31 = vand.u32 2147483648, %v963_v38 }
 0x134   :  { %v275_v37 = vsub.f32 1.0, %v274_v27  ;;  %551 = vpow2.f32 %v362_v63  ;;  %v402_v27 = vld [vmem:[%s1077_s4] sm:$0xff]  ;;  %v312_v35 = vand.u32 2147483647, %v963_v38  ;;  %vm293_vm1 = vweird.f32 %v953_v32  ;;  %s586_s4 = smov [#allocation2]  }
 0x135   :  { %v261_v39 = vmul.f32 %v932_v20, %v260_v29  ;;  %448 = vmatpush.msrb.mxu0 %v403_v16  ;;  %514 = vmatpush.msrb.mxu2 %v403_v16  ;;  %v300_v41 = vor.u32 1.1754944e-38, %v299_v25  ;;  %vm308_vm3 = vweird.f32 %v963_v38  ;;  %vm298_vm4 = vcmp.eq.f32.partialorder %v297_v24, 8.507059e+37  ;;  %s486_s0 = sshll.u32 %s586_s4, 4  ;;  %s487_s0 = int_to_ptr.vmem [resolvable:$true] %s486_s0 }
 0x136   :  { %v276_v43 = vmul.f32 %v937_v22, %v275_v37  ;;  %v315_v46 = vor.u32 1.1754944e-38, %v314_v31  ;;  %vm313_vm6 = vcmp.eq.f32.partialorder %v312_v35, 8.507059e+37  ;;  %v361_v5 = vmul.f32 %v357_v56, %v935_v21 }
 0x137   :  { %v262_v45 = vadd.f32 %v932_v20, %v261_v39  ;;  %449 = vmatpush.msrb.mxu0 %v402_v27  ;;  %515 = vmatpush.msrb.mxu2 %v402_v27  ;;  %v356_v39 = vsub.f32 0.0, %v924_v17  ;;  %vm378_vm7 = vcmp.lt.f32.partialorder %v857_v54, 0.0  ;;  %vm379_vm8 = vcmp.lt.f32.partialorder %v860_v55, 0.0  ;;  %v131_v54 = vpop.f32.mrf.mxu0 }
 0x138   :  { %v277_v52 = vadd.f32 %v937_v22, %v276_v43  ;;  %v548_v59 = vpop.eup %547  ;;  %vm380_vm9 = vcmp.lt.f32.partialorder %v911_v12, 0.0 }
 0x139   :  { %v266_v53 = vsel %vm989_vm10, %v932_v20, %v262_v45  ;;  %v550_v7 = vpop.eup %549  ;;  %v289_v11 = vmul.f32 %v548_v59, %v953_v32  ;;  %v364_v20 = vmul.f32 1.442695, %v359_v58  ;;  %vm294_vm15 = vweird.f32 %v548_v59 }
 0x13a   :  { %v1011_v62 = vsel %vm268_vm12, %v270_v49, %v266_v53  ;;  %v281_v2 = vsel %vm1000_vm13, %v937_v22, %v277_v52  ;;  %v304_v14 = vmul.f32 %v550_v7, %v963_v38  ;;  %vm309_vm0 = vweird.f32 %v550_v7  ;;  %vm295_vm2 = vmor %vm293_vm1, %vm294_vm15  ;;  %v552_v43 = vpop.eup %551 }
 0x13b   :  { %v318_v3 = vmul.f32 1.0614054, %v1011_v62  ;;  %v1017_v4 = vsel %vm283_vm14, %v285_v57, %v281_v2  ;;  %v290_v22 = vsub.f32 1.0, %v289_v11  ;;  %vm310_vm5 = vmor %vm308_vm3, %vm309_vm0  ;;  %553 = vpow2.f32 %v364_v20 }
 0x13c   :  { %v319_v10 = vmul.f32 1.0614054, %v1017_v4  ;;  %v305_v26 = vsub.f32 1.0, %v304_v14  ;;  %v360_v63 = vmul.f32 %v356_v39, %v924_v17  ;;  %vm381_vm10 = vcmp.lt.f32.partialorder %v920_v15, 0.0 }
 0x13d   :  { %v322_v13 = vadd.f32 -1.4531521, %v318_v3  ;;  %v291_v30 = vmul.f32 %v548_v59, %v290_v22  ;;  %v368_v22 = vmul.f32 1.442695, %v361_v5 }
 0x13e   :  { %v323_v19 = vadd.f32 -1.4531521, %v319_v10  ;;  %v306_v34 = vmul.f32 %v550_v7, %v305_v26  ;;  %v366_v16 = vmul.f32 1.442695, %v360_v63 }
 0x13f   :  { %v326_v23 = vmul.f32 %v322_v13, %v1011_v62  ;;  %v292_v37 = vadd.f32 %v548_v59, %v291_v30 }
 0x140   :  { %v327_v29 = vmul.f32 %v323_v19, %v1017_v4  ;;  %v307_v42 = vadd.f32 %v550_v7, %v306_v34  ;;  %555 = vpow2.f32 %v366_v16  ;;  %v239_v34 = vmul.f32 0.5, %v848_v51 }
 0x141   :  { %v330_v33 = vadd.f32 1.4214138, %v326_v23  ;;  %v296_v45 = vsel %vm295_vm2, %v548_v59, %v292_v37  ;;  %v554_v13 = vpop.eup %553  ;;  %557 = vpow2.f32 %v368_v22 }
 0x142   :  { %v331_v36 = vadd.f32 1.4214138, %v327_v29  ;;  %v301_v32 = vsel %vm298_vm4, %v300_v41, %v296_v45  ;;  %v311_v48 = vsel %vm310_vm5, %v550_v7, %v307_v42  ;;  %v238_v29 = vmul.f32 0.5, %v846_v50 }
 0x143   :  { %v334_v40 = vmul.f32 %v330_v33, %v1011_v62  ;;  %v320_v52 = vmul.f32 1.0614054, %v301_v32  ;;  %v316_v53 = vsel %vm313_vm6, %v315_v46, %v311_v48 }
 0x144   :  { %v335_v44 = vmul.f32 %v331_v36, %v1017_v4  ;;  %v321_v38 = vmul.f32 1.0614054, %v316_v53 }
 0x145   :  { %v338_v47 = vadd.f32 -0.28449672, %v334_v40  ;;  %v324_v60 = vadd.f32 -1.4531521, %v320_v52 }
 0x146   :  { %v339_v49 = vadd.f32 -0.28449672, %v335_v44  ;;  %v325_v2 = vadd.f32 -1.4531521, %v321_v38  ;;  %v556_v40 = vpop.eup %555  ;;  %v154_v44 = vpop.f32.mrf.mxu1 }
 0x147   :  { %v342_v57 = vmul.f32 %v338_v47, %v1011_v62  ;;  %v328_v3 = vmul.f32 %v324_v60, %v301_v32  ;;  %v134_v60 = vpop.f32.mrf.mxu0 }
 0x148   :  { %v343_v58 = vmul.f32 %v339_v49, %v1017_v4  ;;  %v329_v7 = vmul.f32 %v325_v2, %v316_v53 }
 0x149   :  { %v346_v61 = vadd.f32 0.2548296, %v342_v57  ;;  %v332_v11 = vadd.f32 1.4214138, %v328_v3  ;;  %v241_v57 = vmul.f32 0.5, %v902_v9 }
 0x14a   :  { %v347_v59 = vadd.f32 0.2548296, %v343_v58  ;;  %v333_v18 = vadd.f32 1.4214138, %v329_v7 }
 0x14b   :  { %v350_v6 = vmul.f32 %v346_v61, %v1011_v62  ;;  %v336_v20 = vmul.f32 %v332_v11, %v301_v32 }
 0x14c   :  { %v351_v10 = vmul.f32 %v347_v59, %v1017_v4  ;;  %v337_v17 = vmul.f32 %v333_v18, %v316_v53 }
 0x14d   :  { %v370_v14 = vmul.f32 %v552_v43, %v350_v6  ;;  %v340_v25 = vadd.f32 -0.28449672, %v336_v20  ;;  %v558_v43 = vpop.eup %557 }
 0x14e   :  { %v371_v19 = vmul.f32 %v554_v13, %v351_v10  ;;  %v341_v21 = vadd.f32 -0.28449672, %v337_v17  ;;  %v157_v63 = vpop.f32.mrf.mxu1 }
 0x14f   :  { %v374_v23 = vsub.f32 1.0, %v370_v14  ;;  %v344_v27 = vmul.f32 %v340_v25, %v301_v32 }
 0x150   :  { %v375_v24 = vsub.f32 1.0, %v371_v19  ;;  %v345_v28 = vmul.f32 %v341_v21, %v316_v53 }
 0x151   :  { %v382_v26 = vsub.f32 0.0, %v374_v23  ;;  %v348_v33 = vadd.f32 0.2548296, %v344_v27 }
 0x152   :  { %v383_v62 = vsub.f32 0.0, %v375_v24  ;;  %v349_v36 = vadd.f32 0.2548296, %v345_v28 }
 0x153   :  { %v386_v4 = vsel %vm378_vm7, %v382_v26, %v374_v23  ;;  %v352_v39 = vmul.f32 %v348_v33, %v301_v32  ;;  %v240_v32 = vmul.f32 0.5, %v899_v8 }
 0x154   :  { %v390_v30 = vadd.f32 1.0, %v386_v4  ;;  %v387_v31 = vsel %vm379_vm8, %v383_v62, %v375_v24  ;;  %v353_v42 = vmul.f32 %v349_v36, %v316_v53 }
 0x155   :  { %v391_v35 = vadd.f32 1.0, %v387_v31  ;;  %v372_v45 = vmul.f32 %v556_v40, %v352_v39 }
 0x156   :  { %v394_v37 = vmul.f32 %v390_v30, %v238_v29  ;;  %v373_v46 = vmul.f32 %v558_v43, %v353_v42 }
 0x157   :  { %v395_v41 = vmul.f32 %v391_v35, %v239_v34  ;;  %v376_v50 = vsub.f32 1.0, %v372_v45 }
 0x158   :  { %v398_v55 = vmul.f32 %v394_v37, %v131_v54  ;;  %v377_v48 = vsub.f32 1.0, %v373_v46 }
 0x159   :  { %v399_v47 = vmul.f32 %v395_v41, %v154_v44  ;;  %v384_v49 = vsub.f32 0.0, %v376_v50 }
 0x15a   :  { %450 = vmatmul.f32.vlgmr.msrb.gmra.mxu0 %v398_v55  ;;  %v385_v51 = vsub.f32 0.0, %v377_v48 }
 0x15b   :  { %473 = vmatmul.f32.vlgmr.msrb.gmra.mxu1 %v399_v47  ;;  %v388_v52 = vsel %vm380_vm9, %v384_v49, %v376_v50 }
 0x15c   :  { %v392_v53 = vadd.f32 1.0, %v388_v52  ;;  %v389_v56 = vsel %vm381_vm10, %v385_v51, %v377_v48 }
 0x15d   :  { %v393_v38 = vadd.f32 1.0, %v389_v56 }
 0x15e   :  { %v396_v58 = vmul.f32 %v392_v53, %v240_v32 }
 0x15f   :  { %v397_v61 = vmul.f32 %v393_v38, %v241_v57 }
 0x160   :  { %v400_v2 = vmul.f32 %v396_v58, %v134_v60 }
 0x161   :  { %v401_v59 = vmul.f32 %v397_v61, %v157_v63 }
 0x162   :  { %453 = vmatmul.f32.vlgmr.msrb.gmra.mxu2 %v400_v2 }
 0x163   :  { %476 = vmatmul.f32.vlgmr.msrb.gmra.mxu3 %v401_v59 }
 0x1d7   :  { %v451_v12 = vpop.f32.mrf.mxu0 }
 0x1d8   :  { %v452_v3 = vadd.f32 %v451_v12, %v627_v1  ;;  %v474_v5 = vpop.f32.mrf.mxu1 }
 0x1da   :  { %v475_v15 = vadd.f32 %v474_v5, %v452_v3 }
 0x1dc   :  { %480 = vst [vmem:[#allocation2] sm:$0xff] %v475_v15 }
 0x1e5   :  { %v454_v8 = vpop.f32.mrf.mxu2 }
 0x1e6   :  { %v455_v9 = vadd.f32 %v454_v8, %v622_v0  ;;  %v477_v6 = vpop.f32.mrf.mxu3 }
 0x1e8   :  { %v478_v7 = vadd.f32 %v477_v6, %v455_v9 }
 0x1ea   :  { %481 = vst [vmem:[#allocation2 + $0x8] sm:$0xff] %v478_v7 }
 0x1eb   :  { %494 = dma.vmem_to_hbm [thread:$0]  %s487_s0, 256, %s489_s27, [#allocation3], %s587_s28, %s587_s28, %s588_s29  }
 0x1ec   :  { %583 = dma.done.wait [#allocation3], 256  }
 0x1ed   :  { %584 = vsyncadd [#allocation3], 4294967040 }
 0x1ee   :  { %499 = vsyncpa [#allocation3], 1 }

// kernel: transformer_forward.12
= control target key start
LH: loop header
LB: loop body
LE: loop exit
PB: predicated region body
PF: predicated region fallthrough
CT: control target
= control target key end

     0   :  { %13 = vsyncpa [#allocation3], 0  ;;  %s474_s0 = inlined_call_operand.vmem [shape: f32[16,128], index: 0, kind: input, shape index: {}]   ;;  %s475_s1 = inlined_call_operand.vmem [shape: f32[1,128], index: 1, kind: input, shape index: {}]   ;;  %s476_s2 = inlined_call_operand.hbm [shape: f32[128,128], index: 2, kind: input, shape index: {}]   ;;  %s477_s3 = inlined_call_operand.hbm [shape: f32[128,128], index: 3, kind: input, shape index: {}]   ;;  %s478_s4 = inlined_call_operand.hbm [shape: f32[128,128], index: 4, kind: input, shape index: {}]   ;;  %s479_s5 = inlined_call_operand.vmem [shape: f32[16,128], index: 5, kind: output, shape index: {0}]   ;;  %s480_s6 = inlined_call_operand.vmem [shape: f32[16,128], index: 6, kind: output, shape index: {1}]   ;;  %s481_s7 = inlined_call_operand.vmem [shape: f32[16,128], index: 7, kind: output, shape index: {2}]  }
   0x1   :  { %14 = vsyncpa [#allocation5], 0  ;;  %s36_s26 = sshll.u32 %s477_s3, 4  ;;  %s373_s27 = smov [#allocation4]   ;;  %s37_s26 = int_to_ptr.hbm [resolvable:$true] %s36_s26 }
   0x2   :  { %s38_s28 = sshll.u32 %s373_s27, 4  ;;  %s23_s8 = sshll.u32 %s476_s2, 4  ;;  %s39_s28 = int_to_ptr.vmem [resolvable:$true] %s38_s28  ;;  %s24_s8 = int_to_ptr.hbm [resolvable:$true] %s23_s8 }
   0x3   :  { %s374_s9 = smov 128   ;;  %s375_s10 = smov 8  }
   0x4   :  { %44 = dma.hbm_to_vmem [thread:$0]  %s37_s26, 2048, %s39_s28, [#allocation5], %s374_s9, %s374_s9, %s375_s10  }
   0x5   :  { %s376_s11 = smov [#allocation2]   ;;  %s49_s15 = sshll.u32 %s478_s4, 4  ;;  %s50_s15 = int_to_ptr.hbm [resolvable:$true] %s49_s15 }
   0x6   :  { %s25_s12 = sshll.u32 %s376_s11, 4  ;;  %s377_s3 = smov [#allocation6]   ;;  %s26_s12 = int_to_ptr.vmem [resolvable:$true] %s25_s12 }
   0x7   :  { %31 = dma.hbm_to_vmem [thread:$0]  %s24_s8, 2048, %s26_s12, [#allocation3], %s374_s9, %s374_s9, %s375_s10  }
   0x8   :  { %s51_s16 = sshll.u32 %s377_s3, 4  ;;  %s52_s16 = int_to_ptr.vmem [resolvable:$true] %s51_s16 }
   0x9   :  { %57 = dma.hbm_to_vmem [thread:$0]  %s50_s15, 2048, %s52_s16, [#allocation5], %s374_s9, %s374_s9, %s375_s10  }
   0xa   :  { %369 = dma.done.wait [#allocation3], 2048  }
   0xb   :  { %370 = vsyncadd [#allocation3], 4294965248 }
   0xc   :  { %371 = dma.done.wait [#allocation5], 4096  }
   0xd   :  { %372 = vsyncadd [#allocation5], 4294963200  ;;  %v431_v0 = vld [vmem:[%s474_s0 + $0x8] sm:$0xff]  ;;  %v436_v1 = vld [vmem:[%s474_s0] sm:$0xff]  ;;  %v378_v7 = vmov 128.0  }
   0xe   :  { %75 = vadd.xlane.f32.xlu1 %v431_v0  ;;  %73 = vadd.xlane.f32.xlu0 %v436_v1  ;;  %v78_v2 = vmul.f32 %v431_v0, %v431_v0  ;;  %v77_v3 = vmul.f32 %v436_v1, %v436_v1  ;;  %v146_v4 = vld [vmem:[#allocation2 + $0x78] sm:$0xff]  ;;  %291 = vrcp.f32 %v378_v7  ;;  %v145_v8 = vld [vmem:[#allocation2 + $0x70] sm:$0xff]  ;;  %v144_v11 = vld [vmem:[#allocation2 + $0x68] sm:$0xff] }
   0xf   :  { %v187_v5 = vld [vmem:[#allocation4 + $0x78] sm:$0xff]  ;;  %147 = vmatpush.msra.mxu0 %v146_v4  ;;  %268 = vmatpush.msra.mxu3 %v146_v4  ;;  %v186_v9 = vld [vmem:[#allocation4 + $0x70] sm:$0xff]  ;;  %v185_v12 = vld [vmem:[#allocation4 + $0x68] sm:$0xff] }
  0x10   :  { %v228_v6 = vld [vmem:[#allocation6 + $0x78] sm:$0xff]  ;;  %188 = vmatpush.msra.mxu1 %v187_v5  ;;  %v227_v10 = vld [vmem:[#allocation6 + $0x70] sm:$0xff]  ;;  %v226_v13 = vld [vmem:[#allocation6 + $0x68] sm:$0xff] }
  0x11   :  { %229 = vmatpush.msra.mxu2 %v228_v6  ;;  %148 = vmatpush.msra.mxu0 %v145_v8  ;;  %v143_v14 = vld [vmem:[#allocation2 + $0x60] sm:$0xff]  ;;  %v142_v18 = vld [vmem:[#allocation2 + $0x58] sm:$0xff]  ;;  %v141_v22 = vld [vmem:[#allocation2 + $0x50] sm:$0xff] }
  0x12   :  { %269 = vmatpush.msra.mxu3 %v145_v8  ;;  %189 = vmatpush.msra.mxu1 %v186_v9  ;;  %v184_v15 = vld [vmem:[#allocation4 + $0x60] sm:$0xff]  ;;  %v183_v19 = vld [vmem:[#allocation4 + $0x58] sm:$0xff]  ;;  %v182_v23 = vld [vmem:[#allocation4 + $0x50] sm:$0xff] }
  0x13   :  { %230 = vmatpush.msra.mxu2 %v227_v10  ;;  %149 = vmatpush.msra.mxu0 %v144_v11  ;;  %v225_v16 = vld [vmem:[#allocation6 + $0x60] sm:$0xff]  ;;  %v224_v20 = vld [vmem:[#allocation6 + $0x58] sm:$0xff]  ;;  %v223_v24 = vld [vmem:[#allocation6 + $0x50] sm:$0xff] }
  0x14   :  { %270 = vmatpush.msra.mxu3 %v144_v11  ;;  %190 = vmatpush.msra.mxu1 %v185_v12  ;;  %v444_v17 = vpop.eup %291  ;;  %v140_v25 = vld [vmem:[#allocation2 + $0x48] sm:$0xff]  ;;  %v139_v29 = vld [vmem:[#allocation2 + $0x40] sm:$0xff]  ;;  %v138_v32 = vld [vmem:[#allocation2 + $0x38] sm:$0xff] }
  0x15   :  { %231 = vmatpush.msra.mxu2 %v226_v13  ;;  %150 = vmatpush.msra.mxu0 %v143_v14  ;;  %v84_v21 = vmul.f32 128.0, %v444_v17  ;;  %v181_v26 = vld [vmem:[#allocation4 + $0x48] sm:$0xff]  ;;  %v180_v30 = vld [vmem:[#allocation4 + $0x40] sm:$0xff]  ;;  %v179_v33 = vld [vmem:[#allocation4 + $0x38] sm:$0xff]  ;;  %vm88_vm0 = vweird.f32 %v444_v17 }
  0x16   :  { %81 = vadd.xlane.f32.xlu1 %v78_v2  ;;  %79 = vadd.xlane.f32.xlu0 %v77_v3  ;;  %v222_v27 = vld [vmem:[#allocation6 + $0x48] sm:$0xff]  ;;  %v221_v31 = vld [vmem:[#allocation6 + $0x40] sm:$0xff]  ;;  %v220_v34 = vld [vmem:[#allocation6 + $0x38] sm:$0xff] }
  0x17   :  { %271 = vmatpush.msra.mxu3 %v143_v14  ;;  %191 = vmatpush.msra.mxu1 %v184_v15  ;;  %v85_v28 = vsub.f32 1.0, %v84_v21  ;;  %v137_v36 = vld [vmem:[#allocation2 + $0x30] sm:$0xff]  ;;  %v136_v39 = vld [vmem:[#allocation2 + $0x28] sm:$0xff]  ;;  %v135_v43 = vld [vmem:[#allocation2 + $0x20] sm:$0xff] }
  0x18   :  { %232 = vmatpush.msra.mxu2 %v225_v16  ;;  %151 = vmatpush.msra.mxu0 %v142_v18  ;;  %v178_v37 = vld [vmem:[#allocation4 + $0x30] sm:$0xff]  ;;  %v177_v40 = vld [vmem:[#allocation4 + $0x28] sm:$0xff]  ;;  %v176_v44 = vld [vmem:[#allocation4 + $0x20] sm:$0xff] }
  0x19   :  { %272 = vmatpush.msra.mxu3 %v142_v18  ;;  %192 = vmatpush.msra.mxu1 %v183_v19  ;;  %v86_v35 = vmul.f32 %v444_v17, %v85_v28  ;;  %v219_v38 = vld [vmem:[#allocation6 + $0x30] sm:$0xff]  ;;  %v218_v41 = vld [vmem:[#allocation6 + $0x28] sm:$0xff]  ;;  %v217_v45 = vld [vmem:[#allocation6 + $0x20] sm:$0xff] }
  0x1a   :  { %233 = vmatpush.msra.mxu2 %v224_v20  ;;  %152 = vmatpush.msra.mxu0 %v141_v22  ;;  %v134_v46 = vld [vmem:[#allocation2 + $0x18] sm:$0xff]  ;;  %v133_v51 = vld [vmem:[#allocation2 + $0x10] sm:$0xff]  ;;  %v132_v55 = vld [vmem:[#allocation2 + $0x8] sm:$0xff] }
  0x1b   :  { %273 = vmatpush.msra.mxu3 %v141_v22  ;;  %193 = vmatpush.msra.mxu1 %v182_v23  ;;  %v87_v42 = vadd.f32 %v444_v17, %v86_v35  ;;  %v175_v47 = vld [vmem:[#allocation4 + $0x18] sm:$0xff]  ;;  %v174_v52 = vld [vmem:[#allocation4 + $0x10] sm:$0xff]  ;;  %v173_v57 = vld [vmem:[#allocation4 + $0x8] sm:$0xff] }
  0x1c   :  { %234 = vmatpush.msra.mxu2 %v223_v24  ;;  %153 = vmatpush.msra.mxu0 %v140_v25  ;;  %v216_v48 = vld [vmem:[#allocation6 + $0x18] sm:$0xff]  ;;  %v215_v54 = vld [vmem:[#allocation6 + $0x10] sm:$0xff]  ;;  %v214_v58 = vld [vmem:[#allocation6 + $0x8] sm:$0xff] }
  0x1d   :  { %274 = vmatpush.msra.mxu3 %v140_v25  ;;  %194 = vmatpush.msra.mxu1 %v181_v26  ;;  %v89_v53 = vsel %vm88_vm0, %v444_v17, %v87_v42  ;;  %v131_v59 = vld [vmem:[#allocation2] sm:$0xff] }
  0x1e   :  { %235 = vmatpush.msra.mxu2 %v222_v27  ;;  %154 = vmatpush.msra.mxu0 %v139_v29  ;;  %v172_v61 = vld [vmem:[#allocation4] sm:$0xff] }
  0x1f   :  { %275 = vmatpush.msra.mxu3 %v139_v29  ;;  %195 = vmatpush.msra.mxu1 %v180_v30  ;;  %v213_v62 = vld [vmem:[#allocation6] sm:$0xff] }
  0x20   :  { %236 = vmatpush.msra.mxu2 %v221_v31  ;;  %155 = vmatpush.msra.mxu0 %v138_v32  ;;  %v290_v26 = vld [vmem:[%s475_s1] ss:$0 sm:$0xff] }
  0x21   :  { %276 = vmatpush.msra.mxu3 %v138_v32  ;;  %196 = vmatpush.msra.mxu1 %v179_v33 }
  0x22   :  { %237 = vmatpush.msra.mxu2 %v220_v34  ;;  %156 = vmatpush.msra.mxu0 %v137_v36 }
  0x23   :  { %277 = vmatpush.msra.mxu3 %v137_v36  ;;  %197 = vmatpush.msra.mxu1 %v178_v37 }
  0x24   :  { %238 = vmatpush.msra.mxu2 %v219_v38  ;;  %157 = vmatpush.msra.mxu0 %v136_v39 }
  0x25   :  { %278 = vmatpush.msra.mxu3 %v136_v39  ;;  %198 = vmatpush.msra.mxu1 %v177_v40 }
  0x26   :  { %239 = vmatpush.msra.mxu2 %v218_v41  ;;  %158 = vmatpush.msra.mxu0 %v135_v43 }
  0x27   :  { %279 = vmatpush.msra.mxu3 %v135_v43  ;;  %199 = vmatpush.msra.mxu1 %v176_v44 }
  0x28   :  { %240 = vmatpush.msra.mxu2 %v217_v45  ;;  %159 = vmatpush.msra.mxu0 %v134_v46 }
  0x29   :  { %280 = vmatpush.msra.mxu3 %v134_v46  ;;  %200 = vmatpush.msra.mxu1 %v175_v47 }
  0x2a   :  { %241 = vmatpush.msra.mxu2 %v216_v48  ;;  %160 = vmatpush.msra.mxu0 %v133_v51 }
  0x2b   :  { %281 = vmatpush.msra.mxu3 %v133_v51  ;;  %201 = vmatpush.msra.mxu1 %v174_v52 }
  0x2c   :  { %242 = vmatpush.msra.mxu2 %v215_v54  ;;  %161 = vmatpush.msra.mxu0 %v132_v55 }
  0x2d   :  { %282 = vmatpush.msra.mxu3 %v132_v55  ;;  %202 = vmatpush.msra.mxu1 %v173_v57 }
  0x2e   :  { %243 = vmatpush.msra.mxu2 %v214_v58  ;;  %162 = vmatpush.msra.mxu0 %v131_v59 }
  0x2f   :  { %283 = vmatpush.msra.mxu3 %v131_v59  ;;  %203 = vmatpush.msra.mxu1 %v172_v61 }
  0x30   :  { %244 = vmatpush.msra.mxu2 %v213_v62 }
  0x81   :  { %v76_v49 = vpop.xlane.xlu1 %75  ;;  %v74_v50 = vpop.xlane.xlu0 %73 }
  0x82   :  { %v91_v56 = vmul.f32 %v89_v53, %v76_v49  ;;  %v90_v60 = vmul.f32 %v89_v53, %v74_v50 }
  0x84   :  { %v95_v63 = vmul.f32 %v91_v56, %v91_v56  ;;  %v94_v4 = vmul.f32 %v90_v60, %v90_v60  ;;  %v101_v24 = vsub.f32 %v431_v0, %v91_v56  ;;  %v100_v27 = vsub.f32 %v436_v1, %v90_v60 }
  0x89   :  { %v82_v2 = vpop.xlane.xlu1 %81  ;;  %v80_v3 = vpop.xlane.xlu0 %79 }
  0x8a   :  { %v93_v5 = vmul.f32 %v89_v53, %v82_v2  ;;  %v92_v6 = vmul.f32 %v89_v53, %v80_v3 }
  0x8c   :  { %v97_v7 = vsub.f32 %v93_v5, %v95_v63  ;;  %v96_v8 = vsub.f32 %v92_v6, %v94_v4 }
  0x8e   :  { %v99_v9 = vmax.f32 %v97_v7, 0.0  ;;  %v98_v10 = vmax.f32 %v96_v8, 0.0 }
  0x90   :  { %v103_v11 = vadd.f32 1e-05, %v99_v9  ;;  %v102_v12 = vadd.f32 1e-05, %v98_v10 }
  0x92   :  { %293 = vrsqrt.f32 %v103_v11  ;;  %vm120_vm3 = vweird.f32 %v103_v11  ;;  %vm110_vm5 = vweird.f32 %v102_v12 }
  0x93   :  { %295 = vrsqrt.f32 %v102_v12 }
  0x98   :  { %v294_v13 = vpop.eup %293 }
  0x99   :  { %v296_v14 = vpop.eup %295  ;;  %v115_v15 = vmul.f32 %v294_v13, %v103_v11  ;;  %vm121_vm1 = vweird.f32 %v294_v13 }
  0x9a   :  { %v105_v16 = vmul.f32 %v296_v14, %v102_v12  ;;  %vm111_vm2 = vweird.f32 %v296_v14  ;;  %vm122_vm4 = vmor %vm120_vm3, %vm121_vm1 }
  0x9b   :  { %v116_v17 = vmul.f32 %v294_v13, %v115_v15  ;;  %vm112_vm6 = vmor %vm110_vm5, %vm111_vm2 }
  0x9c   :  { %v106_v18 = vmul.f32 %v296_v14, %v105_v16 }
  0x9d   :  { %v117_v19 = vmul.f32 0.5, %v116_v17 }
  0x9e   :  { %v107_v20 = vmul.f32 0.5, %v106_v18 }
  0x9f   :  { %v118_v21 = vsub.f32 1.5, %v117_v19 }
  0xa0   :  { %v108_v22 = vsub.f32 1.5, %v107_v20 }
  0xa1   :  { %v119_v23 = vmul.f32 %v294_v13, %v118_v21 }
  0xa2   :  { %v109_v25 = vmul.f32 %v296_v14, %v108_v22 }
  0xa3   :  { %v123_v28 = vsel %vm122_vm4, %v294_v13, %v119_v23 }
  0xa4   :  { %v113_v29 = vsel %vm112_vm6, %v296_v14, %v109_v25  ;;  %v125_v30 = vmul.f32 %v123_v28, %v101_v24 }
  0xa5   :  { %v124_v31 = vmul.f32 %v113_v29, %v100_v27 }
  0xa6   :  { %v130_v32 = vmul.f32 %v290_v26, %v125_v30 }
  0xa7   :  { %v129_v33 = vmul.f32 %v290_v26, %v124_v31 }
  0xa8   :  { %166 = vmatmul.f32.vlgmr.msra.gmra.mxu3 %v130_v32 }
  0xa9   :  { %163 = vmatmul.f32.vlgmr.msra.gmra.mxu0 %v129_v33  ;;  %204 = vmatmul.f32.vlgmr.msra.gmra.mxu1 %v129_v33 }
  0xaa   :  { %245 = vmatmul.f32.vlgmr.msra.gmra.mxu2 %v129_v33 }
  0xb1   :  { %207 = vmatmul.f32.gmra.mxu1 %v130_v32 }
  0xb2   :  { %248 = vmatmul.f32.gmra.mxu2 %v130_v32 }
 0x126   :  { %v164_v0 = vpop.f32.mrf.mxu0  ;;  %v205_v34 = vpop.f32.mrf.mxu1 }
 0x127   :  { %170 = vst [vmem:[%s479_s5] sm:$0xff] %v164_v0 }
 0x128   :  { %211 = vst [vmem:[%s480_s6] sm:$0xff] %v205_v34 }
 0x12b   :  { %v167_v1 = vpop.f32.mrf.mxu3 }
 0x12c   :  { %171 = vst [vmem:[%s479_s5 + $0x8] sm:$0xff] %v167_v1 }
 0x12d   :  { %v246_v35 = vpop.f32.mrf.mxu2 }
 0x12e   :  { %252 = vst [vmem:[%s481_s7] sm:$0xff] %v246_v35  ;;  %v208_v36 = vpop.f32.mrf.mxu1 }
 0x12f   :  { %212 = vst [vmem:[%s480_s6 + $0x8] sm:$0xff] %v208_v36 }
 0x135   :  { %v249_v37 = vpop.f32.mrf.mxu2 }
 0x136   :  { %253 = vst [vmem:[%s481_s7 + $0x8] sm:$0xff] %v249_v37 }
 0x137   :  { %266 = vsyncpa [#allocation3], 1 }
 0x138   :  { %267 = vsyncpa [#allocation5], 1 }

</bundles_post_ra>
